<compile_context>
chip_gen: v5e
topology: v5e:2x2
jax: 0.10.0
libtpu: 0.0.40
codegen_flags: <defaults>
</compile_context>

<pallas_src>
import functools
import math

import jax
import jax.numpy as jnp
import numpy as np
from jax.experimental import pallas as pl
from jax.experimental.pallas import tpu as pltpu

EPS = 1e-5
LANE = 128


def _round_up(n, m):
    return ((n + m - 1) // m) * m


def _compiler_params():
    # Explicit scoped-VMEM budget (fits v7x's 64 MiB per TC with headroom);
    # batch axis is "parallel" so v7x shards it across its 2 TensorCores.
    return pltpu.CompilerParams(
        dimension_semantics=("parallel",),
        vmem_limit_bytes=32 * 1024 * 1024,
    )


# ---------------------------------------------------------------------------
# In-kernel helpers
# ---------------------------------------------------------------------------
def _tap_accumulate(load_tap, w_ref, kh, kw, stride, ph_rows, oh, ow, cout):
    """Sum over KH*KW taps of (window @ W_tap); bf16 operands, f32 accumulate.

    `load_tap(r0, c0)` returns the (oh, ow, cin) bf16 window whose element
    [y, x] corresponds to padded-input position (stride*y + tap_row,
    stride*x + tap_col); strided inputs are pre-repacked into phases so every
    in-kernel slice is static and unstrided.
    """
    acc = jnp.zeros((oh * ow, cout), jnp.float32)
    for i in range(kh):
        for j in range(kw):
            ph = (i % stride) * stride + (j % stride)
            r0 = ph * ph_rows + i // stride
            c0 = j // stride
            tap = load_tap(r0, c0)                       # (oh, ow, cin) bf16
            # NOTE: ow is a multiple of 8 at these shapes, so this reshape is
            # layout-preserving (merge into the sublane dim).
            acc = acc + jnp.dot(tap.reshape(oh * ow, tap.shape[-1]),
                                w_ref[i * kw + j],
                                preferred_element_type=jnp.float32)
    return acc


def _write_stats(s_ref, acc):
    """Per-tile BatchNorm partials: row 0 = sum, row 1 = sum of squares."""
    s_ref[0, 0:1, :] = jnp.sum(acc, axis=0, keepdims=True)
    s_ref[0, 1:2, :] = jnp.sum(acc * acc, axis=0, keepdims=True)


# ---------------------------------------------------------------------------
# Kernels
# ---------------------------------------------------------------------------
def _conv_kernel(x_ref, w_ref, y_ref, s_ref, *, kh, kw, stride, ph_rows, oh, ow):
    """conv (as shifted matmuls) + BN sum/sumsq partials. One image per step."""
    cout = y_ref.shape[-1]
    load = lambda r0, c0: x_ref[0, r0:r0 + oh, c0:c0 + ow, :]
    acc = _tap_accumulate(load, w_ref, kh, kw, stride, ph_rows, oh, ow, cout)
    y_ref[0] = acc.reshape(oh, ow, cout)
    _write_stats(s_ref, acc)


def _conv_res_kernel(x_ref, w_ref, wr_ref, y_ref, s_ref, yr_ref, sr_ref, *,
                     kh, kw, stride, ph_rows, oh, ow):
    """Same as _conv_kernel, plus the fused 1x1 stride-s projection conv."""
    cout = y_ref.shape[-1]
    load = lambda r0, c0: x_ref[0, r0:r0 + oh, c0:c0 + ow, :]
    acc = _tap_accumulate(load, w_ref, kh, kw, stride, ph_rows, oh, ow, cout)
    y_ref[0] = acc.reshape(oh, ow, cout)
    _write_stats(s_ref, acc)

    # 1x1 stride-s, pad-0 conv on x: x[::s, ::s] == (pad-1 input) phase (1, 1),
    # window offset (0, 0) -> reuse the already-resident input block.
    ph = (1 % stride) * stride + (1 % stride)
    tap = x_ref[0, ph * ph_rows: ph * ph_rows + oh, 0:ow, :]
    accr = jnp.dot(tap.reshape(oh * ow, tap.shape[-1]), wr_ref[0],
                   preferred_element_type=jnp.float32)
    yr_ref[0] = accr.reshape(oh, ow, cout)
    _write_stats(sr_ref, accr)


def _bn_relu_conv_kernel(y1_ref, w_ref, sc_ref, sh_ref, y2_ref, s_ref, pad_scr,
                         *, oh, ow):
    """Fused BN1(scale/shift) + ReLU + zero-pad + 3x3/s1 conv + BN2 partials."""
    cout = y2_ref.shape[-1]
    sc = sc_ref[...].reshape(1, 1, cout)
    sh = sh_ref[...].reshape(1, 1, cout)
    h = jnp.maximum(y1_ref[0] * sc + sh, 0.0).astype(jnp.bfloat16)

    pad_scr[...] = jnp.zeros_like(pad_scr)               # zero border
    pad_scr[1:1 + oh, 1:1 + ow, :] = h                   # interior

    load = lambda r0, c0: pad_scr[r0:r0 + oh, c0:c0 + ow, :]
    acc = _tap_accumulate(load, w_ref, 3, 3, 1, oh + 2, oh, ow, cout)
    y2_ref[0] = acc.reshape(oh, ow, cout)
    _write_stats(s_ref, acc)


def _bn_add_relu_kernel(y_ref, r_ref, s2_ref, b2_ref, sr_ref, br_ref, o_ref):
    """Epilogue: BN2(left) + BN_r(right) (or identity) + add + ReLU."""
    c = o_ref.shape[-1]
    left = y_ref[0] * s2_ref[...].reshape(1, 1, c) + b2_ref[...].reshape(1, 1, c)
    right = r_ref[0] * sr_ref[...].reshape(1, 1, c) + br_ref[...].reshape(1, 1, c)
    o_ref[0] = jnp.maximum(left + right, 0.0)


# ---------------------------------------------------------------------------
# pallas_call wrappers (grid over batch, per-image blocks)
# ---------------------------------------------------------------------------
def _conv_call(xph, w, oh, ow, *, kh, kw, stride, ph_rows):
    B, RH, PW, cin = xph.shape
    T, _, cout = w.shape
    kern = functools.partial(_conv_kernel, kh=kh, kw=kw, stride=stride,
                             ph_rows=ph_rows, oh=oh, ow=ow)
    return pl.pallas_call(
        kern,
        grid=(B,),
        in_specs=[
            pl.BlockSpec((1, RH, PW, cin), lambda b: (b, 0, 0, 0)),
            pl.BlockSpec((T, cin, cout), lambda b: (0, 0, 0)),
        ],
        out_specs=[
            pl.BlockSpec((1, oh, ow, cout), lambda b: (b, 0, 0, 0)),
            pl.BlockSpec((1, 2, cout), lambda b: (b, 0, 0)),
        ],
        out_shape=[
            jax.ShapeDtypeStruct((B, oh, ow, cout), jnp.float32),
            jax.ShapeDtypeStruct((B, 2, cout), jnp.float32),
        ],
        compiler_params=_compiler_params(),
    )(xph, w)


def _conv_res_call(xph, w, wr, oh, ow, *, kh, kw, stride, ph_rows):
    B, RH, PW, cin = xph.shape
    T, _, cout = w.shape
    kern = functools.partial(_conv_res_kernel, kh=kh, kw=kw, stride=stride,
                             ph_rows=ph_rows, oh=oh, ow=ow)
    return pl.pallas_call(
        kern,
        grid=(B,),
        in_specs=[
            pl.BlockSpec((1, RH, PW, cin), lambda b: (b, 0, 0, 0)),
            pl.BlockSpec((T, cin, cout), lambda b: (0, 0, 0)),
            pl.BlockSpec((1, cin, cout), lambda b: (0, 0, 0)),
        ],
        out_specs=[
            pl.BlockSpec((1, oh, ow, cout), lambda b: (b, 0, 0, 0)),
            pl.BlockSpec((1, 2, cout), lambda b: (b, 0, 0)),
            pl.BlockSpec((1, oh, ow, cout), lambda b: (b, 0, 0, 0)),
            pl.BlockSpec((1, 2, cout), lambda b: (b, 0, 0)),
        ],
        out_shape=[
            jax.ShapeDtypeStruct((B, oh, ow, cout), jnp.float32),
            jax.ShapeDtypeStruct((B, 2, cout), jnp.float32),
            jax.ShapeDtypeStruct((B, oh, ow, cout), jnp.float32),
            jax.ShapeDtypeStruct((B, 2, cout), jnp.float32),
        ],
        compiler_params=_compiler_params(),
    )(xph, w, wr)


def _bn_relu_conv_call(y1, w2, scale1, shift1):
    B, oh, ow, cout = y1.shape
    kern = functools.partial(_bn_relu_conv_kernel, oh=oh, ow=ow)
    return pl.pallas_call(
        kern,
        grid=(B,),
        in_specs=[
            pl.BlockSpec((1, oh, ow, cout), lambda b: (b, 0, 0, 0)),
            pl.BlockSpec((9, cout, cout), lambda b: (0, 0, 0)),
            pl.BlockSpec((1, cout), lambda b: (0, 0)),
            pl.BlockSpec((1, cout), lambda b: (0, 0)),
        ],
        out_specs=[
            pl.BlockSpec((1, oh, ow, cout), lambda b: (b, 0, 0, 0)),
            pl.BlockSpec((1, 2, cout), lambda b: (b, 0, 0)),
        ],
        out_shape=[
            jax.ShapeDtypeStruct((B, oh, ow, cout), jnp.float32),
            jax.ShapeDtypeStruct((B, 2, cout), jnp.float32),
        ],
        scratch_shapes=[pltpu.VMEM((oh + 2, ow + 2, cout), jnp.bfloat16)],
        compiler_params=_compiler_params(),
    )(y1, w2, scale1, shift1)


def _bn_add_relu_call(y2, right, s2, b2, sr, br):
    B, oh, ow, cout = y2.shape
    return pl.pallas_call(
        _bn_add_relu_kernel,
        grid=(B,),
        in_specs=[
            pl.BlockSpec((1, oh, ow, cout), lambda b: (b, 0, 0, 0)),
            pl.BlockSpec((1, oh, ow, cout), lambda b: (b, 0, 0, 0)),
            pl.BlockSpec((1, cout), lambda b: (0, 0)),
            pl.BlockSpec((1, cout), lambda b: (0, 0)),
            pl.BlockSpec((1, cout), lambda b: (0, 0)),
            pl.BlockSpec((1, cout), lambda b: (0, 0)),
        ],
        out_specs=pl.BlockSpec((1, oh, ow, cout), lambda b: (b, 0, 0, 0)),
        out_shape=jax.ShapeDtypeStruct((B, oh, ow, cout), jnp.float32),
        compiler_params=_compiler_params(),
    )(y2, right, s2, b2, sr, br)


# ---------------------------------------------------------------------------
# Pure-JAX glue: layout plumbing only (no FLOPs)
# ---------------------------------------------------------------------------
def _phase_pack(x, stride, pad):
    """Zero-pad spatially, then repack into stride*stride phase grids stacked
    along H so the kernel only needs static unstrided window slices.
    Returns (packed, rows_per_phase)."""
    xp = jnp.pad(x, ((0, 0), (pad, pad), (pad, pad), (0, 0)))
    B, Hp, Wp, C = xp.shape
    if stride == 1:
        return xp, Hp
    PH = -(-Hp // stride)
    PW = -(-Wp // stride)
    xp = jnp.pad(xp, ((0, 0), (0, stride * PH - Hp), (0, stride * PW - Wp), (0, 0)))
    phases = [xp[:, p::stride, q::stride, :]
              for p in range(stride) for q in range(stride)]
    return jnp.concatenate(phases, axis=1), PH


def _prep_w(w_oihw, cinp, coutp):
    """(O, I, KH, KW) -> (KH*KW, Cin_pad, Cout_pad) bf16, lane-dense."""
    O, I, KH, KW = w_oihw.shape
    w = jnp.transpose(w_oihw, (2, 3, 1, 0))                 # (KH, KW, I, O)
    w = jnp.pad(w, ((0, 0), (0, 0), (0, cinp - I), (0, coutp - O)))
    return w.reshape(KH * KW, cinp, coutp).astype(jnp.bfloat16)


def _fold_bn_stats(stats, count, gamma, beta, coutp):
    """(B, 2, Coutp) sum/sumsq partials -> per-channel (scale, shift), f32."""
    tot = jnp.sum(stats, axis=0)                            # (2, Coutp)
    mean = tot[0] / count
    var = jnp.maximum(tot[1] / count - mean * mean, 0.0)    # biased var, >= 0
    g = jnp.pad(gamma, (0, coutp - gamma.shape[0]), constant_values=1.0)
    b = jnp.pad(beta, (0, coutp - beta.shape[0]))
    scale = g / (jnp.sqrt(var) + EPS)                       # matches sqrt(var)+eps
    shift = b - mean * scale
    return (scale.reshape(1, -1).astype(jnp.float32),
            shift.reshape(1, -1).astype(jnp.float32))


# ---------------------------------------------------------------------------
# ResidualBlock forward (Pallas)
# ---------------------------------------------------------------------------
def residual_block_forward(x_nchw, params, first_stride):
    """x: (B, in_feats, H, W) -> (B, out_feats, H/first_stride, W/first_stride)."""
    x = jnp.transpose(x_nchw, (0, 2, 3, 1)).astype(jnp.float32)   # NHWC
    B, H, W, Cin = x.shape
    Cout = params["w1"].shape[0]
    Cinp = _round_up(Cin, LANE)
    Coutp = _round_up(Cout, LANE)
    s = first_stride
    OH = (H + 2 - 3) // s + 1
    OW = (W + 2 - 3) // s + 1
    count = B * OH * OW

    x_pc = jnp.pad(x, ((0, 0), (0, 0), (0, 0), (0, Cinp - Cin)))        # f32
    xph, ph_rows = _phase_pack(x_pc.astype(jnp.bfloat16), s, 1)         # bf16

    w1 = _prep_w(params["w1"], Cinp, Coutp)
    w2 = _prep_w(params["w2"], Coutp, Coutp)

    if s == 1:
        assert Cin == Cout, "identity residual requires in_feats == out_feats"
        y1, st1 = _conv_call(xph, w1, OH, OW, kh=3, kw=3, stride=1, ph_rows=ph_rows)
        right = x_pc                                   # identity residual (f32)
        scale_r = jnp.ones((1, Coutp), jnp.float32)
        shift_r = jnp.zeros((1, Coutp), jnp.float32)
    else:
        wr = _prep_w(params["wr"], Cinp, Coutp)
        y1, st1, yr, str_ = _conv_res_call(xph, w1, wr, OH, OW,
                                           kh=3, kw=3, stride=s, ph_rows=ph_rows)
        right = yr
        scale_r, shift_r = _fold_bn_stats(str_, count, params["gr"], params["br"], Coutp)

    scale1, shift1 = _fold_bn_stats(st1, count, params["g1"], params["b1"], Coutp)
    y2, st2 = _bn_relu_conv_call(y1, w2, scale1, shift1)
    scale2, shift2 = _fold_bn_stats(st2, count, params["g2"], params["b2"], Coutp)

    out = _bn_add_relu_call(y2, right, scale2, shift2, scale_r, shift_r)
    out = out[:, :, :, :Cout]                                   # crop channel pad
    return jnp.transpose(out, (0, 3, 1, 2))                     # back to NCHW


# ---------------------------------------------------------------------------
# Deterministic parameter init (shapes from the module's __init__)
# ---------------------------------------------------------------------------
def init_residual_block_params(key, in_feats, out_feats, first_stride):
    def conv_w(k, o, i, kh, kw):
        limit = 1.0 / math.sqrt(i * kh * kw)
        return jax.random.uniform(k, (o, i, kh, kw), jnp.float32, -limit, limit)

    ks = jax.random.split(key, 9)
    params = {
        "w1": conv_w(ks[0], out_feats, in_feats, 3, 3),
        "g1": 1.0 + 0.1 * jax.random.normal(ks[1], (out_feats,), jnp.float32),
        "b1": 0.1 * jax.random.normal(ks[2], (out_feats,), jnp.float32),
        "w2": conv_w(ks[3], out_feats, out_feats, 3, 3),
        "g2": 1.0 + 0.1 * jax.random.normal(ks[4], (out_feats,), jnp.float32),
        "b2": 0.1 * jax.random.normal(ks[5], (out_feats,), jnp.float32),
    }
    if first_stride != 1:
        params["wr"] = conv_w(ks[6], out_feats, in_feats, 1, 1)
        params["gr"] = 1.0 + 0.1 * jax.random.normal(ks[7], (out_feats,), jnp.float32)
        params["br"] = 0.1 * jax.random.normal(ks[8], (out_feats,), jnp.float32)
    return params


# ---------------------------------------------------------------------------
# Pure-JAX reference (mirrors the PyTorch math, NCHW, f32)
# ---------------------------------------------------------------------------
def _ref_conv(x, w, stride, padding):
    return jax.lax.conv_general_dilated(
        x, w, window_strides=(stride, stride),
        padding=((padding, padding), (padding, padding)),
        dimension_numbers=("NCHW", "OIHW", "NCHW"),
        precision=jax.lax.Precision.HIGHEST)


def _ref_bn(x, gamma, beta):
    mean = jnp.mean(x, axis=(0, 2, 3))
    var = jnp.mean((x - mean[None, :, None, None]) ** 2, axis=(0, 2, 3))
    return ((x - mean[None, :, None, None])
            / (jnp.sqrt(var)[None, :, None, None] + EPS)
            * gamma[None, :, None, None] + beta[None, :, None, None])


def residual_block_reference(x, params, first_stride):
    h = _ref_conv(x, params["w1"], first_stride, 1)
    h = jnp.maximum(_ref_bn(h, params["g1"], params["b1"]), 0.0)
    h = _ref_conv(h, params["w2"], 1, 1)
    left = _ref_bn(h, params["g2"], params["b2"])
    if first_stride == 1:
        right = x
    else:
        r = _ref_conv(x, params["wr"], first_stride, 0)
        right = _ref_bn(r, params["gr"], params["br"])
    return jnp.maximum(left + right, 0.0)


# ---------------------------------------------------------------------------
if __name__ == "__main__":
    key = jax.random.PRNGKey(0)
    kx, kp_down, kp_id = jax.random.split(key, 3)

    fwd = jax.jit(residual_block_forward, static_argnums=(2,))

    # Case 1: downsampling block (first_stride=2, projection branch present)
    B, Cin, H, W = 2, 4, 16, 16
    Cout = 8
    x = jax.random.normal(kx, (B, Cin, H, W), jnp.float32)
    params = init_residual_block_params(kp_down, Cin, Cout, 2)
    out = jax.block_until_ready(fwd(x, params, 2))
    ref = residual_block_reference(x, params, 2)
    assert out.shape == (B, Cout, H // 2, W // 2)
    # bf16 MXU operands -> slightly looser tolerance than a pure-f32 check.
    np.testing.assert_allclose(np.asarray(out), np.asarray(ref), atol=3e-2, rtol=3e-2)

    # Case 2: identity block (first_stride=1, in_feats == out_feats)
    params_id = init_residual_block_params(kp_id, Cin, Cin, 1)
    out_id = jax.block_until_ready(fwd(x, params_id, 1))
    ref_id = residual_block_reference(x, params_id, 1)
    assert out_id.shape == (B, Cin, H, W)
    np.testing.assert_allclose(np.asarray(out_id), np.asarray(ref_id), atol=3e-2, rtol=3e-2)

    print("KERNEL_OK")
</pallas_src>

<mosaic_0001>
module attributes {stable_mosaic.version = 11 : i64} {
  func.func @_bn_relu_conv_kernel(%arg0: i32, %arg1: memref<1x8x8x128xf32, #tpu.memory_space<vmem>>, %arg2: memref<9x128x128xbf16, #tpu.memory_space<vmem>>, %arg3: memref<1x128xf32, #tpu.memory_space<vmem>>, %arg4: memref<1x128xf32, #tpu.memory_space<vmem>>, %arg5: memref<1x8x8x128xf32, #tpu.memory_space<vmem>>, %arg6: memref<1x2x128xf32, #tpu.memory_space<vmem>>, %arg7: memref<10x10x128xbf16, #tpu.memory_space<vmem>>) attributes {dimension_semantics = [#tpu.dimension_semantics<parallel>], iteration_bounds = array<i64: 2>, scalar_prefetch = 0 : i64, scratch_operands = 1 : i64, tpu.core_type = #tpu.core_type<tc>, window_params = [{transform_indices = @transform_0, window_bounds = array<i64: 1, 8, 8, 128>}, {pipeline_mode = #tpu.pipeline_mode<synchronous>, transform_indices = @transform_1, window_bounds = array<i64: 9, 128, 128>}, {pipeline_mode = #tpu.pipeline_mode<synchronous>, transform_indices = @transform_2, window_bounds = array<i64: 1, 128>}, {pipeline_mode = #tpu.pipeline_mode<synchronous>, transform_indices = @transform_3, window_bounds = array<i64: 1, 128>}, {transform_indices = @transform_4, window_bounds = array<i64: 1, 8, 8, 128>}, {transform_indices = @transform_5, window_bounds = array<i64: 1, 2, 128>}]} {
    %c0 = arith.constant 0 : index
    %c0_0 = arith.constant 0 : index
    %0 = vector.load %arg3[%c0, %c0_0] : memref<1x128xf32, #tpu.memory_space<vmem>>, vector<1x128xf32>
    %1 = vector.shape_cast %0 : vector<1x128xf32> to vector<1x1x128xf32>
    %c0_1 = arith.constant 0 : index
    %c0_2 = arith.constant 0 : index
    %2 = vector.load %arg4[%c0_1, %c0_2] : memref<1x128xf32, #tpu.memory_space<vmem>>, vector<1x128xf32>
    %3 = vector.shape_cast %2 : vector<1x128xf32> to vector<1x1x128xf32>
    %c0_3 = arith.constant 0 : index
    %c0_4 = arith.constant 0 : index
    %c0_5 = arith.constant 0 : index
    %c0_6 = arith.constant 0 : index
    %4 = vector.load %arg1[%c0_3, %c0_4, %c0_5, %c0_6] : memref<1x8x8x128xf32, #tpu.memory_space<vmem>>, vector<1x8x8x128xf32>
    %5 = vector.shape_cast %4 : vector<1x8x8x128xf32> to vector<8x8x128xf32>
    %6 = vector.broadcast %1 : vector<1x1x128xf32> to vector<8x8x128xf32>
    %7 = arith.mulf %5, %6 : vector<8x8x128xf32>
    %8 = vector.broadcast %3 : vector<1x1x128xf32> to vector<8x8x128xf32>
    %9 = arith.addf %7, %8 : vector<8x8x128xf32>
    %cst = arith.constant 0.000000e+00 : f32
    %10 = vector.broadcast %cst : f32 to vector<8x8x128xf32>
    %11 = arith.maximumf %9, %10 : vector<8x8x128xf32>
    %12 = arith.truncf %11 : vector<8x8x128xf32> to vector<8x8x128xbf16>
    %cst_7 = arith.constant 0.000000e+00 : bf16
    %13 = vector.broadcast %cst_7 : bf16 to vector<10x10x128xbf16>
    %c0_8 = arith.constant 0 : index
    %c0_9 = arith.constant 0 : index
    %c0_10 = arith.constant 0 : index
    %14 = vector.load %arg7[%c0_8, %c0_9, %c0_10] : memref<10x10x128xbf16, #tpu.memory_space<vmem>>, vector<10x10x128xbf16>
    tpu.vector_store %arg7[%c0_8, %c0_9, %c0_10], %13 {strides = array<i32>} : memref<10x10x128xbf16, #tpu.memory_space<vmem>>, vector<10x10x128xbf16>,
    %c1 = arith.constant 1 : index
    %c1_11 = arith.constant 1 : index
    %c0_12 = arith.constant 0 : index
    %15 = vector.load %arg7[%c1, %c1_11, %c0_12] : memref<10x10x128xbf16, #tpu.memory_space<vmem>>, vector<8x8x128xbf16>
    tpu.vector_store %arg7[%c1, %c1_11, %c0_12], %12 {strides = array<i32>} : memref<10x10x128xbf16, #tpu.memory_space<vmem>>, vector<8x8x128xbf16>,
    %cst_13 = arith.constant 0.000000e+00 : f32
    %16 = vector.broadcast %cst_13 : f32 to vector<64x128xf32>
    %c0_14 = arith.constant 0 : index
    %c0_15 = arith.constant 0 : index
    %c0_16 = arith.constant 0 : index
    %17 = vector.load %arg7[%c0_14, %c0_15, %c0_16] : memref<10x10x128xbf16, #tpu.memory_space<vmem>>, vector<8x8x128xbf16>
    %18 = vector.shape_cast %17 : vector<8x8x128xbf16> to vector<64x128xbf16>
    %c0_17 = arith.constant 0 : index
    %c0_18 = arith.constant 0 : index
    %c0_19 = arith.constant 0 : index
    %19 = vector.load %arg2[%c0_17, %c0_18, %c0_19] : memref<9x128x128xbf16, #tpu.memory_space<vmem>>, vector<1x128x128xbf16>
    %20 = vector.shape_cast %19 : vector<1x128x128xbf16> to vector<128x128xbf16>
    %cst_20 = arith.constant dense<0.000000e+00> : vector<64x128xf32>
    %21 = tpu.matmul %18, %20, %cst_20 {dimension_numbers = #tpu.dot_dimension_numbers<[1], [0], [0], [1], [0, 0, 1, 1], [], []>} : vector<64x128xbf16>, vector<128x128xbf16>, vector<64x128xf32> -> vector<64x128xf32>
    %22 = arith.addf %16, %21 : vector<64x128xf32>
    %c0_21 = arith.constant 0 : index
    %c1_22 = arith.constant 1 : index
    %c0_23 = arith.constant 0 : index
    %23 = vector.load %arg7[%c0_21, %c1_22, %c0_23] : memref<10x10x128xbf16, #tpu.memory_space<vmem>>, vector<8x8x128xbf16>
    %24 = vector.shape_cast %23 : vector<8x8x128xbf16> to vector<64x128xbf16>
    %c1_24 = arith.constant 1 : index
    %c0_25 = arith.constant 0 : index
    %c0_26 = arith.constant 0 : index
    %25 = vector.load %arg2[%c1_24, %c0_25, %c0_26] : memref<9x128x128xbf16, #tpu.memory_space<vmem>>, vector<1x128x128xbf16>
    %26 = vector.shape_cast %25 : vector<1x128x128xbf16> to vector<128x128xbf16>
    %cst_27 = arith.constant dense<0.000000e+00> : vector<64x128xf32>
    %27 = tpu.matmul %24, %26, %cst_27 {dimension_numbers = #tpu.dot_dimension_numbers<[1], [0], [0], [1], [0, 0, 1, 1], [], []>} : vector<64x128xbf16>, vector<128x128xbf16>, vector<64x128xf32> -> vector<64x128xf32>
    %28 = arith.addf %22, %27 : vector<64x128xf32>
    %c0_28 = arith.constant 0 : index
    %c2 = arith.constant 2 : index
    %c0_29 = arith.constant 0 : index
    %29 = vector.load %arg7[%c0_28, %c2, %c0_29] : memref<10x10x128xbf16, #tpu.memory_space<vmem>>, vector<8x8x128xbf16>
    %30 = vector.shape_cast %29 : vector<8x8x128xbf16> to vector<64x128xbf16>
    %c2_30 = arith.constant 2 : index
    %c0_31 = arith.constant 0 : index
    %c0_32 = arith.constant 0 : index
    %31 = vector.load %arg2[%c2_30, %c0_31, %c0_32] : memref<9x128x128xbf16, #tpu.memory_space<vmem>>, vector<1x128x128xbf16>
    %32 = vector.shape_cast %31 : vector<1x128x128xbf16> to vector<128x128xbf16>
    %cst_33 = arith.constant dense<0.000000e+00> : vector<64x128xf32>
    %33 = tpu.matmul %30, %32, %cst_33 {dimension_numbers = #tpu.dot_dimension_numbers<[1], [0], [0], [1], [0, 0, 1, 1], [], []>} : vector<64x128xbf16>, vector<128x128xbf16>, vector<64x128xf32> -> vector<64x128xf32>
    %34 = arith.addf %28, %33 : vector<64x128xf32>
    %c1_34 = arith.constant 1 : index
    %c0_35 = arith.constant 0 : index
    %c0_36 = arith.constant 0 : index
    %35 = vector.load %arg7[%c1_34, %c0_35, %c0_36] : memref<10x10x128xbf16, #tpu.memory_space<vmem>>, vector<8x8x128xbf16>
    %36 = vector.shape_cast %35 : vector<8x8x128xbf16> to vector<64x128xbf16>
    %c3 = arith.constant 3 : index
    %c0_37 = arith.constant 0 : index
    %c0_38 = arith.constant 0 : index
    %37 = vector.load %arg2[%c3, %c0_37, %c0_38] : memref<9x128x128xbf16, #tpu.memory_space<vmem>>, vector<1x128x128xbf16>
    %38 = vector.shape_cast %37 : vector<1x128x128xbf16> to vector<128x128xbf16>
    %cst_39 = arith.constant dense<0.000000e+00> : vector<64x128xf32>
    %39 = tpu.matmul %36, %38, %cst_39 {dimension_numbers = #tpu.dot_dimension_numbers<[1], [0], [0], [1], [0, 0, 1, 1], [], []>} : vector<64x128xbf16>, vector<128x128xbf16>, vector<64x128xf32> -> vector<64x128xf32>
    %40 = arith.addf %34, %39 : vector<64x128xf32>
    %c1_40 = arith.constant 1 : index
    %c1_41 = arith.constant 1 : index
    %c0_42 = arith.constant 0 : index
    %41 = vector.load %arg7[%c1_40, %c1_41, %c0_42] : memref<10x10x128xbf16, #tpu.memory_space<vmem>>, vector<8x8x128xbf16>
    %42 = vector.shape_cast %41 : vector<8x8x128xbf16> to vector<64x128xbf16>
    %c4 = arith.constant 4 : index
    %c0_43 = arith.constant 0 : index
    %c0_44 = arith.constant 0 : index
    %43 = vector.load %arg2[%c4, %c0_43, %c0_44] : memref<9x128x128xbf16, #tpu.memory_space<vmem>>, vector<1x128x128xbf16>
    %44 = vector.shape_cast %43 : vector<1x128x128xbf16> to vector<128x128xbf16>
    %cst_45 = arith.constant dense<0.000000e+00> : vector<64x128xf32>
    %45 = tpu.matmul %42, %44, %cst_45 {dimension_numbers = #tpu.dot_dimension_numbers<[1], [0], [0], [1], [0, 0, 1, 1], [], []>} : vector<64x128xbf16>, vector<128x128xbf16>, vector<64x128xf32> -> vector<64x128xf32>
    %46 = arith.addf %40, %45 : vector<64x128xf32>
    %c1_46 = arith.constant 1 : index
    %c2_47 = arith.constant 2 : index
    %c0_48 = arith.constant 0 : index
    %47 = vector.load %arg7[%c1_46, %c2_47, %c0_48] : memref<10x10x128xbf16, #tpu.memory_space<vmem>>, vector<8x8x128xbf16>
    %48 = vector.shape_cast %47 : vector<8x8x128xbf16> to vector<64x128xbf16>
    %c5 = arith.constant 5 : index
    %c0_49 = arith.constant 0 : index
    %c0_50 = arith.constant 0 : index
    %49 = vector.load %arg2[%c5, %c0_49, %c0_50] : memref<9x128x128xbf16, #tpu.memory_space<vmem>>, vector<1x128x128xbf16>
    %50 = vector.shape_cast %49 : vector<1x128x128xbf16> to vector<128x128xbf16>
    %cst_51 = arith.constant dense<0.000000e+00> : vector<64x128xf32>
    %51 = tpu.matmul %48, %50, %cst_51 {dimension_numbers = #tpu.dot_dimension_numbers<[1], [0], [0], [1], [0, 0, 1, 1], [], []>} : vector<64x128xbf16>, vector<128x128xbf16>, vector<64x128xf32> -> vector<64x128xf32>
    %52 = arith.addf %46, %51 : vector<64x128xf32>
    %c2_52 = arith.constant 2 : index
    %c0_53 = arith.constant 0 : index
    %c0_54 = arith.constant 0 : index
    %53 = vector.load %arg7[%c2_52, %c0_53, %c0_54] : memref<10x10x128xbf16, #tpu.memory_space<vmem>>, vector<8x8x128xbf16>
    %54 = vector.shape_cast %53 : vector<8x8x128xbf16> to vector<64x128xbf16>
    %c6 = arith.constant 6 : index
    %c0_55 = arith.constant 0 : index
    %c0_56 = arith.constant 0 : index
    %55 = vector.load %arg2[%c6, %c0_55, %c0_56] : memref<9x128x128xbf16, #tpu.memory_space<vmem>>, vector<1x128x128xbf16>
    %56 = vector.shape_cast %55 : vector<1x128x128xbf16> to vector<128x128xbf16>
    %cst_57 = arith.constant dense<0.000000e+00> : vector<64x128xf32>
    %57 = tpu.matmul %54, %56, %cst_57 {dimension_numbers = #tpu.dot_dimension_numbers<[1], [0], [0], [1], [0, 0, 1, 1], [], []>} : vector<64x128xbf16>, vector<128x128xbf16>, vector<64x128xf32> -> vector<64x128xf32>
    %58 = arith.addf %52, %57 : vector<64x128xf32>
    %c2_58 = arith.constant 2 : index
    %c1_59 = arith.constant 1 : index
    %c0_60 = arith.constant 0 : index
    %59 = vector.load %arg7[%c2_58, %c1_59, %c0_60] : memref<10x10x128xbf16, #tpu.memory_space<vmem>>, vector<8x8x128xbf16>
    %60 = vector.shape_cast %59 : vector<8x8x128xbf16> to vector<64x128xbf16>
    %c7 = arith.constant 7 : index
    %c0_61 = arith.constant 0 : index
    %c0_62 = arith.constant 0 : index
    %61 = vector.load %arg2[%c7, %c0_61, %c0_62] : memref<9x128x128xbf16, #tpu.memory_space<vmem>>, vector<1x128x128xbf16>
    %62 = vector.shape_cast %61 : vector<1x128x128xbf16> to vector<128x128xbf16>
    %cst_63 = arith.constant dense<0.000000e+00> : vector<64x128xf32>
    %63 = tpu.matmul %60, %62, %cst_63 {dimension_numbers = #tpu.dot_dimension_numbers<[1], [0], [0], [1], [0, 0, 1, 1], [], []>} : vector<64x128xbf16>, vector<128x128xbf16>, vector<64x128xf32> -> vector<64x128xf32>
    %64 = arith.addf %58, %63 : vector<64x128xf32>
    %c2_64 = arith.constant 2 : index
    %c2_65 = arith.constant 2 : index
    %c0_66 = arith.constant 0 : index
    %65 = vector.load %arg7[%c2_64, %c2_65, %c0_66] : memref<10x10x128xbf16, #tpu.memory_space<vmem>>, vector<8x8x128xbf16>
    %66 = vector.shape_cast %65 : vector<8x8x128xbf16> to vector<64x128xbf16>
    %c8 = arith.constant 8 : index
    %c0_67 = arith.constant 0 : index
    %c0_68 = arith.constant 0 : index
    %67 = vector.load %arg2[%c8, %c0_67, %c0_68] : memref<9x128x128xbf16, #tpu.memory_space<vmem>>, vector<1x128x128xbf16>
    %68 = vector.shape_cast %67 : vector<1x128x128xbf16> to vector<128x128xbf16>
    %cst_69 = arith.constant dense<0.000000e+00> : vector<64x128xf32>
    %69 = tpu.matmul %66, %68, %cst_69 {dimension_numbers = #tpu.dot_dimension_numbers<[1], [0], [0], [1], [0, 0, 1, 1], [], []>} : vector<64x128xbf16>, vector<128x128xbf16>, vector<64x128xf32> -> vector<64x128xf32>
    %70 = arith.addf %64, %69 : vector<64x128xf32>
    %71 = vector.shape_cast %70 : vector<64x128xf32> to vector<8x8x128xf32>
    %c0_70 = arith.constant 0 : index
    %c0_71 = arith.constant 0 : index
    %c0_72 = arith.constant 0 : index
    %c0_73 = arith.constant 0 : index
    %72 = vector.load %arg5[%c0_70, %c0_71, %c0_72, %c0_73] : memref<1x8x8x128xf32, #tpu.memory_space<vmem>>, vector<1x8x8x128xf32>
    %73 = vector.shape_cast %72 : vector<1x8x8x128xf32> to vector<8x8x128xf32>
    %74 = vector.shape_cast %71 : vector<8x8x128xf32> to vector<1x8x8x128xf32>
    tpu.vector_store %arg5[%c0_70, %c0_71, %c0_72, %c0_73], %74 {strides = array<i32>} : memref<1x8x8x128xf32, #tpu.memory_space<vmem>>, vector<1x8x8x128xf32>,
    %cst_74 = arith.constant dense<0.000000e+00> : vector<128xf32>
    %75 = vector.multi_reduction <add>, %70, %cst_74 [0] : vector<64x128xf32> to vector<128xf32>
    %76 = vector.shape_cast %75 : vector<128xf32> to vector<1x128xf32>
    %c0_75 = arith.constant 0 : index
    %c0_76 = arith.constant 0 : index
    %c0_77 = arith.constant 0 : index
    %77 = vector.load %arg6[%c0_75, %c0_76, %c0_77] : memref<1x2x128xf32, #tpu.memory_space<vmem>>, vector<1x1x128xf32>
    %78 = vector.shape_cast %77 : vector<1x1x128xf32> to vector<1x128xf32>
    %79 = vector.shape_cast %76 : vector<1x128xf32> to vector<1x1x128xf32>
    tpu.vector_store %arg6[%c0_75, %c0_76, %c0_77], %79 {strides = array<i32>} : memref<1x2x128xf32, #tpu.memory_space<vmem>>, vector<1x1x128xf32>,
    %80 = arith.mulf %70, %70 : vector<64x128xf32>
    %cst_78 = arith.constant dense<0.000000e+00> : vector<128xf32>
    %81 = vector.multi_reduction <add>, %80, %cst_78 [0] : vector<64x128xf32> to vector<128xf32>
    %82 = vector.shape_cast %81 : vector<128xf32> to vector<1x128xf32>
    %c0_79 = arith.constant 0 : index
    %c1_80 = arith.constant 1 : index
    %c0_81 = arith.constant 0 : index
    %83 = vector.load %arg6[%c0_79, %c1_80, %c0_81] : memref<1x2x128xf32, #tpu.memory_space<vmem>>, vector<1x1x128xf32>
    %84 = vector.shape_cast %83 : vector<1x1x128xf32> to vector<1x128xf32>
    %85 = vector.shape_cast %82 : vector<1x128xf32> to vector<1x1x128xf32>
    tpu.vector_store %arg6[%c0_79, %c1_80, %c0_81], %85 {strides = array<i32>} : memref<1x2x128xf32, #tpu.memory_space<vmem>>, vector<1x1x128xf32>,
    return
  }
  func.func @transform_0(%arg0: i32) -> (i32, i32, i32, i32) {
    %c0_i32 = arith.constant 0 : i32
    %c0_i32_0 = arith.constant 0 : i32
    %c0_i32_1 = arith.constant 0 : i32
    %c0_i32_2 = arith.constant 0 : i32
    return %arg0, %c0_i32, %c0_i32_0, %c0_i32_1 : i32, i32, i32, i32
  }
  func.func @transform_1(%arg0: i32) -> (i32, i32, i32) {
    %c0_i32 = arith.constant 0 : i32
    %c0_i32_0 = arith.constant 0 : i32
    %c0_i32_1 = arith.constant 0 : i32
    %c0_i32_2 = arith.constant 0 : i32
    return %c0_i32, %c0_i32_0, %c0_i32_1 : i32, i32, i32
  }
  func.func @transform_2(%arg0: i32) -> (i32, i32) {
    %c0_i32 = arith.constant 0 : i32
    %c0_i32_0 = arith.constant 0 : i32
    %c0_i32_1 = arith.constant 0 : i32
    return %c0_i32, %c0_i32_0 : i32, i32
  }
  func.func @transform_3(%arg0: i32) -> (i32, i32) {
    %c0_i32 = arith.constant 0 : i32
    %c0_i32_0 = arith.constant 0 : i32
    %c0_i32_1 = arith.constant 0 : i32
    return %c0_i32, %c0_i32_0 : i32, i32
  }
  func.func @transform_4(%arg0: i32) -> (i32, i32, i32, i32) {
    %c0_i32 = arith.constant 0 : i32
    %c0_i32_0 = arith.constant 0 : i32
    %c0_i32_1 = arith.constant 0 : i32
    %c0_i32_2 = arith.constant 0 : i32
    return %arg0, %c0_i32, %c0_i32_0, %c0_i32_1 : i32, i32, i32, i32
  }
  func.func @transform_5(%arg0: i32) -> (i32, i32, i32) {
    %c0_i32 = arith.constant 0 : i32
    %c0_i32_0 = arith.constant 0 : i32
    %c0_i32_1 = arith.constant 0 : i32
    return %arg0, %c0_i32, %c0_i32_0 : i32, i32, i32
  }
}

module attributes {stable_mosaic.version = 11 : i64} {
  func.func @_conv_res_kernel(%arg0: i32, %arg1: memref<1x36x9x128xbf16, #tpu.memory_space<vmem>>, %arg2: memref<9x128x128xbf16, #tpu.memory_space<vmem>>, %arg3: memref<1x128x128xbf16, #tpu.memory_space<vmem>>, %arg4: memref<1x8x8x128xf32, #tpu.memory_space<vmem>>, %arg5: memref<1x2x128xf32, #tpu.memory_space<vmem>>, %arg6: memref<1x8x8x128xf32, #tpu.memory_space<vmem>>, %arg7: memref<1x2x128xf32, #tpu.memory_space<vmem>>) attributes {dimension_semantics = [#tpu.dimension_semantics<parallel>], iteration_bounds = array<i64: 2>, scalar_prefetch = 0 : i64, scratch_operands = 0 : i64, tpu.core_type = #tpu.core_type<tc>, window_params = [{transform_indices = @transform_0, window_bounds = array<i64: 1, 36, 9, 128>}, {pipeline_mode = #tpu.pipeline_mode<synchronous>, transform_indices = @transform_1, window_bounds = array<i64: 9, 128, 128>}, {pipeline_mode = #tpu.pipeline_mode<synchronous>, transform_indices = @transform_2, window_bounds = array<i64: 1, 128, 128>}, {transform_indices = @transform_3, window_bounds = array<i64: 1, 8, 8, 128>}, {transform_indices = @transform_4, window_bounds = array<i64: 1, 2, 128>}, {transform_indices = @transform_5, window_bounds = array<i64: 1, 8, 8, 128>}, {transform_indices = @transform_6, window_bounds = array<i64: 1, 2, 128>}]} {
    %cst = arith.constant 0.000000e+00 : f32
    %0 = vector.broadcast %cst : f32 to vector<64x128xf32>
    %c0 = arith.constant 0 : index
    %c0_0 = arith.constant 0 : index
    %c0_1 = arith.constant 0 : index
    %c0_2 = arith.constant 0 : index
    %1 = vector.load %arg1[%c0, %c0_0, %c0_1, %c0_2] : memref<1x36x9x128xbf16, #tpu.memory_space<vmem>>, vector<1x8x8x128xbf16>
    %2 = vector.shape_cast %1 : vector<1x8x8x128xbf16> to vector<8x8x128xbf16>
    %3 = vector.shape_cast %2 : vector<8x8x128xbf16> to vector<64x128xbf16>
    %c0_3 = arith.constant 0 : index
    %c0_4 = arith.constant 0 : index
    %c0_5 = arith.constant 0 : index
    %4 = vector.load %arg2[%c0_3, %c0_4, %c0_5] : memref<9x128x128xbf16, #tpu.memory_space<vmem>>, vector<1x128x128xbf16>
    %5 = vector.shape_cast %4 : vector<1x128x128xbf16> to vector<128x128xbf16>
    %cst_6 = arith.constant dense<0.000000e+00> : vector<64x128xf32>
    %6 = tpu.matmul %3, %5, %cst_6 {dimension_numbers = #tpu.dot_dimension_numbers<[1], [0], [0], [1], [0, 0, 1, 1], [], []>} : vector<64x128xbf16>, vector<128x128xbf16>, vector<64x128xf32> -> vector<64x128xf32>
    %7 = arith.addf %0, %6 : vector<64x128xf32>
    %c0_7 = arith.constant 0 : index
    %c9 = arith.constant 9 : index
    %c0_8 = arith.constant 0 : index
    %c0_9 = arith.constant 0 : index
    %8 = vector.load %arg1[%c0_7, %c9, %c0_8, %c0_9] : memref<1x36x9x128xbf16, #tpu.memory_space<vmem>>, vector<1x8x8x128xbf16>
    %9 = vector.shape_cast %8 : vector<1x8x8x128xbf16> to vector<8x8x128xbf16>
    %10 = vector.shape_cast %9 : vector<8x8x128xbf16> to vector<64x128xbf16>
    %c1 = arith.constant 1 : index
    %c0_10 = arith.constant 0 : index
    %c0_11 = arith.constant 0 : index
    %11 = vector.load %arg2[%c1, %c0_10, %c0_11] : memref<9x128x128xbf16, #tpu.memory_space<vmem>>, vector<1x128x128xbf16>
    %12 = vector.shape_cast %11 : vector<1x128x128xbf16> to vector<128x128xbf16>
    %cst_12 = arith.constant dense<0.000000e+00> : vector<64x128xf32>
    %13 = tpu.matmul %10, %12, %cst_12 {dimension_numbers = #tpu.dot_dimension_numbers<[1], [0], [0], [1], [0, 0, 1, 1], [], []>} : vector<64x128xbf16>, vector<128x128xbf16>, vector<64x128xf32> -> vector<64x128xf32>
    %14 = arith.addf %7, %13 : vector<64x128xf32>
    %c0_13 = arith.constant 0 : index
    %c0_14 = arith.constant 0 : index
    %c1_15 = arith.constant 1 : index
    %c0_16 = arith.constant 0 : index
    %15 = vector.load %arg1[%c0_13, %c0_14, %c1_15, %c0_16] : memref<1x36x9x128xbf16, #tpu.memory_space<vmem>>, vector<1x8x8x128xbf16>
    %16 = vector.shape_cast %15 : vector<1x8x8x128xbf16> to vector<8x8x128xbf16>
    %17 = vector.shape_cast %16 : vector<8x8x128xbf16> to vector<64x128xbf16>
    %c2 = arith.constant 2 : index
    %c0_17 = arith.constant 0 : index
    %c0_18 = arith.constant 0 : index
    %18 = vector.load %arg2[%c2, %c0_17, %c0_18] : memref<9x128x128xbf16, #tpu.memory_space<vmem>>, vector<1x128x128xbf16>
    %19 = vector.shape_cast %18 : vector<1x128x128xbf16> to vector<128x128xbf16>
    %cst_19 = arith.constant dense<0.000000e+00> : vector<64x128xf32>
    %20 = tpu.matmul %17, %19, %cst_19 {dimension_numbers = #tpu.dot_dimension_numbers<[1], [0], [0], [1], [0, 0, 1, 1], [], []>} : vector<64x128xbf16>, vector<128x128xbf16>, vector<64x128xf32> -> vector<64x128xf32>
    %21 = arith.addf %14, %20 : vector<64x128xf32>
    %c0_20 = arith.constant 0 : index
    %c18 = arith.constant 18 : index
    %c0_21 = arith.constant 0 : index
    %c0_22 = arith.constant 0 : index
    %22 = vector.load %arg1[%c0_20, %c18, %c0_21, %c0_22] : memref<1x36x9x128xbf16, #tpu.memory_space<vmem>>, vector<1x8x8x128xbf16>
    %23 = vector.shape_cast %22 : vector<1x8x8x128xbf16> to vector<8x8x128xbf16>
    %24 = vector.shape_cast %23 : vector<8x8x128xbf16> to vector<64x128xbf16>
    %c3 = arith.constant 3 : index
    %c0_23 = arith.constant 0 : index
    %c0_24 = arith.constant 0 : index
    %25 = vector.load %arg2[%c3, %c0_23, %c0_24] : memref<9x128x128xbf16, #tpu.memory_space<vmem>>, vector<1x128x128xbf16>
    %26 = vector.shape_cast %25 : vector<1x128x128xbf16> to vector<128x128xbf16>
    %cst_25 = arith.constant dense<0.000000e+00> : vector<64x128xf32>
    %27 = tpu.matmul %24, %26, %cst_25 {dimension_numbers = #tpu.dot_dimension_numbers<[1], [0], [0], [1], [0, 0, 1, 1], [], []>} : vector<64x128xbf16>, vector<128x128xbf16>, vector<64x128xf32> -> vector<64x128xf32>
    %28 = arith.addf %21, %27 : vector<64x128xf32>
    %c0_26 = arith.constant 0 : index
    %c27 = arith.constant 27 : index
    %c0_27 = arith.constant 0 : index
    %c0_28 = arith.constant 0 : index
    %29 = vector.load %arg1[%c0_26, %c27, %c0_27, %c0_28] : memref<1x36x9x128xbf16, #tpu.memory_space<vmem>>, vector<1x8x8x128xbf16>
    %30 = vector.shape_cast %29 : vector<1x8x8x128xbf16> to vector<8x8x128xbf16>
    %31 = vector.shape_cast %30 : vector<8x8x128xbf16> to vector<64x128xbf16>
    %c4 = arith.constant 4 : index
    %c0_29 = arith.constant 0 : index
    %c0_30 = arith.constant 0 : index
    %32 = vector.load %arg2[%c4, %c0_29, %c0_30] : memref<9x128x128xbf16, #tpu.memory_space<vmem>>, vector<1x128x128xbf16>
    %33 = vector.shape_cast %32 : vector<1x128x128xbf16> to vector<128x128xbf16>
    %cst_31 = arith.constant dense<0.000000e+00> : vector<64x128xf32>
    %34 = tpu.matmul %31, %33, %cst_31 {dimension_numbers = #tpu.dot_dimension_numbers<[1], [0], [0], [1], [0, 0, 1, 1], [], []>} : vector<64x128xbf16>, vector<128x128xbf16>, vector<64x128xf32> -> vector<64x128xf32>
    %35 = arith.addf %28, %34 : vector<64x128xf32>
    %c0_32 = arith.constant 0 : index
    %c18_33 = arith.constant 18 : index
    %c1_34 = arith.constant 1 : index
    %c0_35 = arith.constant 0 : index
    %36 = vector.load %arg1[%c0_32, %c18_33, %c1_34, %c0_35] : memref<1x36x9x128xbf16, #tpu.memory_space<vmem>>, vector<1x8x8x128xbf16>
    %37 = vector.shape_cast %36 : vector<1x8x8x128xbf16> to vector<8x8x128xbf16>
    %38 = vector.shape_cast %37 : vector<8x8x128xbf16> to vector<64x128xbf16>
    %c5 = arith.constant 5 : index
    %c0_36 = arith.constant 0 : index
    %c0_37 = arith.constant 0 : index
    %39 = vector.load %arg2[%c5, %c0_36, %c0_37] : memref<9x128x128xbf16, #tpu.memory_space<vmem>>, vector<1x128x128xbf16>
    %40 = vector.shape_cast %39 : vector<1x128x128xbf16> to vector<128x128xbf16>
    %cst_38 = arith.constant dense<0.000000e+00> : vector<64x128xf32>
    %41 = tpu.matmul %38, %40, %cst_38 {dimension_numbers = #tpu.dot_dimension_numbers<[1], [0], [0], [1], [0, 0, 1, 1], [], []>} : vector<64x128xbf16>, vector<128x128xbf16>, vector<64x128xf32> -> vector<64x128xf32>
    %42 = arith.addf %35, %41 : vector<64x128xf32>
    %c0_39 = arith.constant 0 : index
    %c1_40 = arith.constant 1 : index
    %c0_41 = arith.constant 0 : index
    %c0_42 = arith.constant 0 : index
    %43 = vector.load %arg1[%c0_39, %c1_40, %c0_41, %c0_42] : memref<1x36x9x128xbf16, #tpu.memory_space<vmem>>, vector<1x8x8x128xbf16>
    %44 = vector.shape_cast %43 : vector<1x8x8x128xbf16> to vector<8x8x128xbf16>
    %45 = vector.shape_cast %44 : vector<8x8x128xbf16> to vector<64x128xbf16>
    %c6 = arith.constant 6 : index
    %c0_43 = arith.constant 0 : index
    %c0_44 = arith.constant 0 : index
    %46 = vector.load %arg2[%c6, %c0_43, %c0_44] : memref<9x128x128xbf16, #tpu.memory_space<vmem>>, vector<1x128x128xbf16>
    %47 = vector.shape_cast %46 : vector<1x128x128xbf16> to vector<128x128xbf16>
    %cst_45 = arith.constant dense<0.000000e+00> : vector<64x128xf32>
    %48 = tpu.matmul %45, %47, %cst_45 {dimension_numbers = #tpu.dot_dimension_numbers<[1], [0], [0], [1], [0, 0, 1, 1], [], []>} : vector<64x128xbf16>, vector<128x128xbf16>, vector<64x128xf32> -> vector<64x128xf32>
    %49 = arith.addf %42, %48 : vector<64x128xf32>
    %c0_46 = arith.constant 0 : index
    %c10 = arith.constant 10 : index
    %c0_47 = arith.constant 0 : index
    %c0_48 = arith.constant 0 : index
    %50 = vector.load %arg1[%c0_46, %c10, %c0_47, %c0_48] : memref<1x36x9x128xbf16, #tpu.memory_space<vmem>>, vector<1x8x8x128xbf16>
    %51 = vector.shape_cast %50 : vector<1x8x8x128xbf16> to vector<8x8x128xbf16>
    %52 = vector.shape_cast %51 : vector<8x8x128xbf16> to vector<64x128xbf16>
    %c7 = arith.constant 7 : index
    %c0_49 = arith.constant 0 : index
    %c0_50 = arith.constant 0 : index
    %53 = vector.load %arg2[%c7, %c0_49, %c0_50] : memref<9x128x128xbf16, #tpu.memory_space<vmem>>, vector<1x128x128xbf16>
    %54 = vector.shape_cast %53 : vector<1x128x128xbf16> to vector<128x128xbf16>
    %cst_51 = arith.constant dense<0.000000e+00> : vector<64x128xf32>
    %55 = tpu.matmul %52, %54, %cst_51 {dimension_numbers = #tpu.dot_dimension_numbers<[1], [0], [0], [1], [0, 0, 1, 1], [], []>} : vector<64x128xbf16>, vector<128x128xbf16>, vector<64x128xf32> -> vector<64x128xf32>
    %56 = arith.addf %49, %55 : vector<64x128xf32>
    %c0_52 = arith.constant 0 : index
    %c1_53 = arith.constant 1 : index
    %c1_54 = arith.constant 1 : index
    %c0_55 = arith.constant 0 : index
    %57 = vector.load %arg1[%c0_52, %c1_53, %c1_54, %c0_55] : memref<1x36x9x128xbf16, #tpu.memory_space<vmem>>, vector<1x8x8x128xbf16>
    %58 = vector.shape_cast %57 : vector<1x8x8x128xbf16> to vector<8x8x128xbf16>
    %59 = vector.shape_cast %58 : vector<8x8x128xbf16> to vector<64x128xbf16>
    %c8 = arith.constant 8 : index
    %c0_56 = arith.constant 0 : index
    %c0_57 = arith.constant 0 : index
    %60 = vector.load %arg2[%c8, %c0_56, %c0_57] : memref<9x128x128xbf16, #tpu.memory_space<vmem>>, vector<1x128x128xbf16>
    %61 = vector.shape_cast %60 : vector<1x128x128xbf16> to vector<128x128xbf16>
    %cst_58 = arith.constant dense<0.000000e+00> : vector<64x128xf32>
    %62 = tpu.matmul %59, %61, %cst_58 {dimension_numbers = #tpu.dot_dimension_numbers<[1], [0], [0], [1], [0, 0, 1, 1], [], []>} : vector<64x128xbf16>, vector<128x128xbf16>, vector<64x128xf32> -> vector<64x128xf32>
    %63 = arith.addf %56, %62 : vector<64x128xf32>
    %64 = vector.shape_cast %63 : vector<64x128xf32> to vector<8x8x128xf32>
    %c0_59 = arith.constant 0 : index
    %c0_60 = arith.constant 0 : index
    %c0_61 = arith.constant 0 : index
    %c0_62 = arith.constant 0 : index
    %65 = vector.load %arg4[%c0_59, %c0_60, %c0_61, %c0_62] : memref<1x8x8x128xf32, #tpu.memory_space<vmem>>, vector<1x8x8x128xf32>
    %66 = vector.shape_cast %65 : vector<1x8x8x128xf32> to vector<8x8x128xf32>
    %67 = vector.shape_cast %64 : vector<8x8x128xf32> to vector<1x8x8x128xf32>
    tpu.vector_store %arg4[%c0_59, %c0_60, %c0_61, %c0_62], %67 {strides = array<i32>} : memref<1x8x8x128xf32, #tpu.memory_space<vmem>>, vector<1x8x8x128xf32>,
    %cst_63 = arith.constant dense<0.000000e+00> : vector<128xf32>
    %68 = vector.multi_reduction <add>, %63, %cst_63 [0] : vector<64x128xf32> to vector<128xf32>
    %69 = vector.shape_cast %68 : vector<128xf32> to vector<1x128xf32>
    %c0_64 = arith.constant 0 : index
    %c0_65 = arith.constant 0 : index
    %c0_66 = arith.constant 0 : index
    %70 = vector.load %arg5[%c0_64, %c0_65, %c0_66] : memref<1x2x128xf32, #tpu.memory_space<vmem>>, vector<1x1x128xf32>
    %71 = vector.shape_cast %70 : vector<1x1x128xf32> to vector<1x128xf32>
    %72 = vector.shape_cast %69 : vector<1x128xf32> to vector<1x1x128xf32>
    tpu.vector_store %arg5[%c0_64, %c0_65, %c0_66], %72 {strides = array<i32>} : memref<1x2x128xf32, #tpu.memory_space<vmem>>, vector<1x1x128xf32>,
    %73 = arith.mulf %63, %63 : vector<64x128xf32>
    %cst_67 = arith.constant dense<0.000000e+00> : vector<128xf32>
    %74 = vector.multi_reduction <add>, %73, %cst_67 [0] : vector<64x128xf32> to vector<128xf32>
    %75 = vector.shape_cast %74 : vector<128xf32> to vector<1x128xf32>
    %c0_68 = arith.constant 0 : index
    %c1_69 = arith.constant 1 : index
    %c0_70 = arith.constant 0 : index
    %76 = vector.load %arg5[%c0_68, %c1_69, %c0_70] : memref<1x2x128xf32, #tpu.memory_space<vmem>>, vector<1x1x128xf32>
    %77 = vector.shape_cast %76 : vector<1x1x128xf32> to vector<1x128xf32>
    %78 = vector.shape_cast %75 : vector<1x128xf32> to vector<1x1x128xf32>
    tpu.vector_store %arg5[%c0_68, %c1_69, %c0_70], %78 {strides = array<i32>} : memref<1x2x128xf32, #tpu.memory_space<vmem>>, vector<1x1x128xf32>,
    %c0_71 = arith.constant 0 : index
    %c27_72 = arith.constant 27 : index
    %c0_73 = arith.constant 0 : index
    %c0_74 = arith.constant 0 : index
    %79 = vector.load %arg1[%c0_71, %c27_72, %c0_73, %c0_74] : memref<1x36x9x128xbf16, #tpu.memory_space<vmem>>, vector<1x8x8x128xbf16>
    %80 = vector.shape_cast %79 : vector<1x8x8x128xbf16> to vector<8x8x128xbf16>
    %81 = vector.shape_cast %80 : vector<8x8x128xbf16> to vector<64x128xbf16>
    %c0_75 = arith.constant 0 : index
    %c0_76 = arith.constant 0 : index
    %c0_77 = arith.constant 0 : index
    %82 = vector.load %arg3[%c0_75, %c0_76, %c0_77] : memref<1x128x128xbf16, #tpu.memory_space<vmem>>, vector<1x128x128xbf16>
    %83 = vector.shape_cast %82 : vector<1x128x128xbf16> to vector<128x128xbf16>
    %cst_78 = arith.constant dense<0.000000e+00> : vector<64x128xf32>
    %84 = tpu.matmul %81, %83, %cst_78 {dimension_numbers = #tpu.dot_dimension_numbers<[1], [0], [0], [1], [0, 0, 1, 1], [], []>} : vector<64x128xbf16>, vector<128x128xbf16>, vector<64x128xf32> -> vector<64x128xf32>
    %85 = vector.shape_cast %84 : vector<64x128xf32> to vector<8x8x128xf32>
    %c0_79 = arith.constant 0 : index
    %c0_80 = arith.constant 0 : index
    %c0_81 = arith.constant 0 : index
    %c0_82 = arith.constant 0 : index
    %86 = vector.load %arg6[%c0_79, %c0_80, %c0_81, %c0_82] : memref<1x8x8x128xf32, #tpu.memory_space<vmem>>, vector<1x8x8x128xf32>
    %87 = vector.shape_cast %86 : vector<1x8x8x128xf32> to vector<8x8x128xf32>
    %88 = vector.shape_cast %85 : vector<8x8x128xf32> to vector<1x8x8x128xf32>
    tpu.vector_store %arg6[%c0_79, %c0_80, %c0_81, %c0_82], %88 {strides = array<i32>} : memref<1x8x8x128xf32, #tpu.memory_space<vmem>>, vector<1x8x8x128xf32>,
    %cst_83 = arith.constant dense<0.000000e+00> : vector<128xf32>
    %89 = vector.multi_reduction <add>, %84, %cst_83 [0] : vector<64x128xf32> to vector<128xf32>
    %90 = vector.shape_cast %89 : vector<128xf32> to vector<1x128xf32>
    %c0_84 = arith.constant 0 : index
    %c0_85 = arith.constant 0 : index
    %c0_86 = arith.constant 0 : index
    %91 = vector.load %arg7[%c0_84, %c0_85, %c0_86] : memref<1x2x128xf32, #tpu.memory_space<vmem>>, vector<1x1x128xf32>
    %92 = vector.shape_cast %91 : vector<1x1x128xf32> to vector<1x128xf32>
    %93 = vector.shape_cast %90 : vector<1x128xf32> to vector<1x1x128xf32>
    tpu.vector_store %arg7[%c0_84, %c0_85, %c0_86], %93 {strides = array<i32>} : memref<1x2x128xf32, #tpu.memory_space<vmem>>, vector<1x1x128xf32>,
    %94 = arith.mulf %84, %84 : vector<64x128xf32>
    %cst_87 = arith.constant dense<0.000000e+00> : vector<128xf32>
    %95 = vector.multi_reduction <add>, %94, %cst_87 [0] : vector<64x128xf32> to vector<128xf32>
    %96 = vector.shape_cast %95 : vector<128xf32> to vector<1x128xf32>
    %c0_88 = arith.constant 0 : index
    %c1_89 = arith.constant 1 : index
    %c0_90 = arith.constant 0 : index
    %97 = vector.load %arg7[%c0_88, %c1_89, %c0_90] : memref<1x2x128xf32, #tpu.memory_space<vmem>>, vector<1x1x128xf32>
    %98 = vector.shape_cast %97 : vector<1x1x128xf32> to vector<1x128xf32>
    %99 = vector.shape_cast %96 : vector<1x128xf32> to vector<1x1x128xf32>
    tpu.vector_store %arg7[%c0_88, %c1_89, %c0_90], %99 {strides = array<i32>} : memref<1x2x128xf32, #tpu.memory_space<vmem>>, vector<1x1x128xf32>,
    return
  }
  func.func @transform_0(%arg0: i32) -> (i32, i32, i32, i32) {
    %c0_i32 = arith.constant 0 : i32
    %c0_i32_0 = arith.constant 0 : i32
    %c0_i32_1 = arith.constant 0 : i32
    %c0_i32_2 = arith.constant 0 : i32
    return %arg0, %c0_i32, %c0_i32_0, %c0_i32_1 : i32, i32, i32, i32
  }
  func.func @transform_1(%arg0: i32) -> (i32, i32, i32) {
    %c0_i32 = arith.constant 0 : i32
    %c0_i32_0 = arith.constant 0 : i32
    %c0_i32_1 = arith.constant 0 : i32
    %c0_i32_2 = arith.constant 0 : i32
    return %c0_i32, %c0_i32_0, %c0_i32_1 : i32, i32, i32
  }
  func.func @transform_2(%arg0: i32) -> (i32, i32, i32) {
    %c0_i32 = arith.constant 0 : i32
    %c0_i32_0 = arith.constant 0 : i32
    %c0_i32_1 = arith.constant 0 : i32
    %c0_i32_2 = arith.constant 0 : i32
    return %c0_i32, %c0_i32_0, %c0_i32_1 : i32, i32, i32
  }
  func.func @transform_3(%arg0: i32) -> (i32, i32, i32, i32) {
    %c0_i32 = arith.constant 0 : i32
    %c0_i32_0 = arith.constant 0 : i32
    %c0_i32_1 = arith.constant 0 : i32
    %c0_i32_2 = arith.constant 0 : i32
    return %arg0, %c0_i32, %c0_i32_0, %c0_i32_1 : i32, i32, i32, i32
  }
  func.func @transform_4(%arg0: i32) -> (i32, i32, i32) {
    %c0_i32 = arith.constant 0 : i32
    %c0_i32_0 = arith.constant 0 : i32
    %c0_i32_1 = arith.constant 0 : i32
    return %arg0, %c0_i32, %c0_i32_0 : i32, i32, i32
  }
  func.func @transform_5(%arg0: i32) -> (i32, i32, i32, i32) {
    %c0_i32 = arith.constant 0 : i32
    %c0_i32_0 = arith.constant 0 : i32
    %c0_i32_1 = arith.constant 0 : i32
    %c0_i32_2 = arith.constant 0 : i32
    return %arg0, %c0_i32, %c0_i32_0, %c0_i32_1 : i32, i32, i32, i32
  }
  func.func @transform_6(%arg0: i32) -> (i32, i32, i32) {
    %c0_i32 = arith.constant 0 : i32
    %c0_i32_0 = arith.constant 0 : i32
    %c0_i32_1 = arith.constant 0 : i32
    return %arg0, %c0_i32, %c0_i32_0 : i32, i32, i32
  }
}

module attributes {stable_mosaic.version = 11 : i64} {
  func.func @_bn_add_relu_kernel(%arg0: i32, %arg1: memref<1x8x8x128xf32, #tpu.memory_space<vmem>>, %arg2: memref<1x8x8x128xf32, #tpu.memory_space<vmem>>, %arg3: memref<1x128xf32, #tpu.memory_space<vmem>>, %arg4: memref<1x128xf32, #tpu.memory_space<vmem>>, %arg5: memref<1x128xf32, #tpu.memory_space<vmem>>, %arg6: memref<1x128xf32, #tpu.memory_space<vmem>>, %arg7: memref<1x8x8x128xf32, #tpu.memory_space<vmem>>) attributes {dimension_semantics = [#tpu.dimension_semantics<parallel>], iteration_bounds = array<i64: 2>, scalar_prefetch = 0 : i64, scratch_operands = 0 : i64, tpu.core_type = #tpu.core_type<tc>, window_params = [{transform_indices = @transform_0, window_bounds = array<i64: 1, 8, 8, 128>}, {transform_indices = @transform_1, window_bounds = array<i64: 1, 8, 8, 128>}, {pipeline_mode = #tpu.pipeline_mode<synchronous>, transform_indices = @transform_2, window_bounds = array<i64: 1, 128>}, {pipeline_mode = #tpu.pipeline_mode<synchronous>, transform_indices = @transform_3, window_bounds = array<i64: 1, 128>}, {pipeline_mode = #tpu.pipeline_mode<synchronous>, transform_indices = @transform_4, window_bounds = array<i64: 1, 128>}, {pipeline_mode = #tpu.pipeline_mode<synchronous>, transform_indices = @transform_5, window_bounds = array<i64: 1, 128>}, {transform_indices = @transform_6, window_bounds = array<i64: 1, 8, 8, 128>}]} {
    %c0 = arith.constant 0 : index
    %c0_0 = arith.constant 0 : index
    %c0_1 = arith.constant 0 : index
    %c0_2 = arith.constant 0 : index
    %0 = vector.load %arg1[%c0, %c0_0, %c0_1, %c0_2] : memref<1x8x8x128xf32, #tpu.memory_space<vmem>>, vector<1x8x8x128xf32>
    %1 = vector.shape_cast %0 : vector<1x8x8x128xf32> to vector<8x8x128xf32>
    %c0_3 = arith.constant 0 : index
    %c0_4 = arith.constant 0 : index
    %2 = vector.load %arg3[%c0_3, %c0_4] : memref<1x128xf32, #tpu.memory_space<vmem>>, vector<1x128xf32>
    %3 = vector.shape_cast %2 : vector<1x128xf32> to vector<1x1x128xf32>
    %4 = vector.broadcast %3 : vector<1x1x128xf32> to vector<8x8x128xf32>
    %5 = arith.mulf %1, %4 : vector<8x8x128xf32>
    %c0_5 = arith.constant 0 : index
    %c0_6 = arith.constant 0 : index
    %6 = vector.load %arg4[%c0_5, %c0_6] : memref<1x128xf32, #tpu.memory_space<vmem>>, vector<1x128xf32>
    %7 = vector.shape_cast %6 : vector<1x128xf32> to vector<1x1x128xf32>
    %8 = vector.broadcast %7 : vector<1x1x128xf32> to vector<8x8x128xf32>
    %9 = arith.addf %5, %8 : vector<8x8x128xf32>
    %c0_7 = arith.constant 0 : index
    %c0_8 = arith.constant 0 : index
    %c0_9 = arith.constant 0 : index
    %c0_10 = arith.constant 0 : index
    %10 = vector.load %arg2[%c0_7, %c0_8, %c0_9, %c0_10] : memref<1x8x8x128xf32, #tpu.memory_space<vmem>>, vector<1x8x8x128xf32>
    %11 = vector.shape_cast %10 : vector<1x8x8x128xf32> to vector<8x8x128xf32>
    %c0_11 = arith.constant 0 : index
    %c0_12 = arith.constant 0 : index
    %12 = vector.load %arg5[%c0_11, %c0_12] : memref<1x128xf32, #tpu.memory_space<vmem>>, vector<1x128xf32>
    %13 = vector.shape_cast %12 : vector<1x128xf32> to vector<1x1x128xf32>
    %14 = vector.broadcast %13 : vector<1x1x128xf32> to vector<8x8x128xf32>
    %15 = arith.mulf %11, %14 : vector<8x8x128xf32>
    %c0_13 = arith.constant 0 : index
    %c0_14 = arith.constant 0 : index
    %16 = vector.load %arg6[%c0_13, %c0_14] : memref<1x128xf32, #tpu.memory_space<vmem>>, vector<1x128xf32>
    %17 = vector.shape_cast %16 : vector<1x128xf32> to vector<1x1x128xf32>
    %18 = vector.broadcast %17 : vector<1x1x128xf32> to vector<8x8x128xf32>
    %19 = arith.addf %15, %18 : vector<8x8x128xf32>
    %20 = arith.addf %9, %19 : vector<8x8x128xf32>
    %cst = arith.constant 0.000000e+00 : f32
    %21 = vector.broadcast %cst : f32 to vector<8x8x128xf32>
    %22 = arith.maximumf %20, %21 : vector<8x8x128xf32>
    %c0_15 = arith.constant 0 : index
    %c0_16 = arith.constant 0 : index
    %c0_17 = arith.constant 0 : index
    %c0_18 = arith.constant 0 : index
    %23 = vector.load %arg7[%c0_15, %c0_16, %c0_17, %c0_18] : memref<1x8x8x128xf32, #tpu.memory_space<vmem>>, vector<1x8x8x128xf32>
    %24 = vector.shape_cast %23 : vector<1x8x8x128xf32> to vector<8x8x128xf32>
    %25 = vector.shape_cast %22 : vector<8x8x128xf32> to vector<1x8x8x128xf32>
    tpu.vector_store %arg7[%c0_15, %c0_16, %c0_17, %c0_18], %25 {strides = array<i32>} : memref<1x8x8x128xf32, #tpu.memory_space<vmem>>, vector<1x8x8x128xf32>,
    return
  }
  func.func @transform_0(%arg0: i32) -> (i32, i32, i32, i32) {
    %c0_i32 = arith.constant 0 : i32
    %c0_i32_0 = arith.constant 0 : i32
    %c0_i32_1 = arith.constant 0 : i32
    %c0_i32_2 = arith.constant 0 : i32
    return %arg0, %c0_i32, %c0_i32_0, %c0_i32_1 : i32, i32, i32, i32
  }
  func.func @transform_1(%arg0: i32) -> (i32, i32, i32, i32) {
    %c0_i32 = arith.constant 0 : i32
    %c0_i32_0 = arith.constant 0 : i32
    %c0_i32_1 = arith.constant 0 : i32
    %c0_i32_2 = arith.constant 0 : i32
    return %arg0, %c0_i32, %c0_i32_0, %c0_i32_1 : i32, i32, i32, i32
  }
  func.func @transform_2(%arg0: i32) -> (i32, i32) {
    %c0_i32 = arith.constant 0 : i32
    %c0_i32_0 = arith.constant 0 : i32
    %c0_i32_1 = arith.constant 0 : i32
    return %c0_i32, %c0_i32_0 : i32, i32
  }
  func.func @transform_3(%arg0: i32) -> (i32, i32) {
    %c0_i32 = arith.constant 0 : i32
    %c0_i32_0 = arith.constant 0 : i32
    %c0_i32_1 = arith.constant 0 : i32
    return %c0_i32, %c0_i32_0 : i32, i32
  }
  func.func @transform_4(%arg0: i32) -> (i32, i32) {
    %c0_i32 = arith.constant 0 : i32
    %c0_i32_0 = arith.constant 0 : i32
    %c0_i32_1 = arith.constant 0 : i32
    return %c0_i32, %c0_i32_0 : i32, i32
  }
  func.func @transform_5(%arg0: i32) -> (i32, i32) {
    %c0_i32 = arith.constant 0 : i32
    %c0_i32_0 = arith.constant 0 : i32
    %c0_i32_1 = arith.constant 0 : i32
    return %c0_i32, %c0_i32_0 : i32, i32
  }
  func.func @transform_6(%arg0: i32) -> (i32, i32, i32, i32) {
    %c0_i32 = arith.constant 0 : i32
    %c0_i32_0 = arith.constant 0 : i32
    %c0_i32_1 = arith.constant 0 : i32
    %c0_i32_2 = arith.constant 0 : i32
    return %arg0, %c0_i32, %c0_i32_0, %c0_i32_1 : i32, i32, i32, i32
  }
}

</mosaic_0001>

<bundles_post_ra>
// kernel: residual_block_forward.5
= control target key start
LH: loop header
LB: loop body
LE: loop exit
PB: predicated region body
PF: predicated region fallthrough
CT: control target
= control target key end

     0   :  { %s498_s21 = smov 0   ;;  %s585_s0 = inlined_call_operand.vmem [shape: f32[2,8,8,128], index: 0, kind: input, shape index: {}]   ;;  %s586_s1 = inlined_call_operand.vmem [shape: f32[2,8,8,128], index: 1, kind: input, shape index: {}]   ;;  %s587_s2 = inlined_call_operand.vmem [shape: f32[1,128], index: 2, kind: input, shape index: {}]   ;;  %s588_s3 = inlined_call_operand.vmem [shape: f32[1,128], index: 3, kind: input, shape index: {}]   ;;  %s589_s4 = inlined_call_operand.vmem [shape: f32[1,128], index: 4, kind: input, shape index: {}]   ;;  %s590_s5 = inlined_call_operand.vmem [shape: f32[1,128], index: 5, kind: input, shape index: {}]   ;;  %s591_s6 = inlined_call_operand.vmem [shape: f32[2,8,8,128], index: 6, kind: output, shape index: {}]  }
   0x1 LB: > { %s427_s22 = sadd.s32 4294967295, %s461_s21   ;;  %p431_p0 = scmp.ge.s32.totalorder %s461_s21, 1  ;;  %s461_s21 = sphi %s498_s21, %s16_s21  }
   0x2   : > { %p222_p1 = scmp.lt.s32.totalorder %s461_s21, 3 }
   0x4   : > { %p223_p2 = pnand %p431_p0, %p222_p1 }
   0x5   : > { %p257_p3 = scmp.lt.s32.totalorder (!%p223_p2), %s427_s22, 1 }
   0x6   : > { %226 = sbr.rel (%p223_p2) target bundleno = 34 (0x22), region = 44 }
   0xb   : > { %s593_s22 = smov (!%p257_p3, %s427_s22), 1  ;;  %v451_v0 = vld [vmem:[%s587_s2] ss:$0 sm:$0xff] }
   0xc   : > { %v453_v1 = vld [vmem:[%s589_s4] ss:$0 sm:$0xff]  ;;  %s512_s27 = sshll.u32 %s593_s22, 6 }
   0xd   : > { %s518_s30 = scalar_lea.vmem %s585_s0, %s512_s27  ;;  %s524_s9 = scalar_lea.vmem %s586_s1, %s512_s27  ;;  %v529_v2 = vld [vmem:[%s588_s3] ss:$0 sm:$0xff] }
   0xe   : > { %v534_v3 = vld [vmem:[%s590_s5] ss:$0 sm:$0xff]  ;;  %v273_v6 = vld [vmem:[%s518_s30 + $0x8] sm:$0xff]  ;;  %v274_v11 = vld [vmem:[%s518_s30 + $0x10] sm:$0xff]  ;;  %s559_s16 = scalar_lea.vmem %s591_s6, %s512_s27 }
   0xf   : > { %v272_v4 = vld [vmem:[%s518_s30] sm:$0xff]  ;;  %v285_v9 = vmul.f32 %v451_v0, %v273_v6  ;;  %v305_v10 = vld [vmem:[%s524_s9 + $0x8] sm:$0xff]  ;;  %v306_v12 = vld [vmem:[%s524_s9 + $0x10] sm:$0xff]  ;;  %v286_v14 = vmul.f32 %v451_v0, %v274_v11 }
  0x10   : > { %v304_v5 = vld [vmem:[%s524_s9] sm:$0xff]  ;;  %v284_v7 = vmul.f32 %v451_v0, %v272_v4  ;;  %v317_v13 = vmul.f32 %v453_v1, %v305_v10  ;;  %v318_v15 = vmul.f32 %v453_v1, %v306_v12  ;;  %v275_v16 = vld [vmem:[%s518_s30 + $0x18] sm:$0xff]  ;;  %v277_v24 = vld [vmem:[%s518_s30 + $0x28] sm:$0xff] }
  0x11   : > { %v316_v8 = vmul.f32 %v453_v1, %v304_v5  ;;  %v307_v17 = vld [vmem:[%s524_s9 + $0x18] sm:$0xff]  ;;  %v276_v18 = vld [vmem:[%s518_s30 + $0x20] sm:$0xff]  ;;  %v297_v21 = vadd.f32 %v529_v2, %v285_v9  ;;  %v287_v22 = vmul.f32 %v451_v0, %v275_v16  ;;  %v298_v26 = vadd.f32 %v529_v2, %v286_v14  ;;  %v309_v29 = vld [vmem:[%s524_s9 + $0x28] sm:$0xff] }
  0x12   : > { %v296_v19 = vadd.f32 %v529_v2, %v284_v7  ;;  %v308_v23 = vld [vmem:[%s524_s9 + $0x20] sm:$0xff]  ;;  %v329_v25 = vadd.f32 %v534_v3, %v317_v13  ;;  %v330_v27 = vadd.f32 %v534_v3, %v318_v15  ;;  %v319_v28 = vmul.f32 %v453_v1, %v307_v17  ;;  %v278_v38 = vld [vmem:[%s518_s30 + $0x30] sm:$0xff]  ;;  %v279_v44 = vld [vmem:[%s518_s30 + $0x38] sm:$0xff] }
  0x13   : > { %v328_v20 = vadd.f32 %v534_v3, %v316_v8  ;;  %v299_v31 = vadd.f32 %v529_v2, %v287_v22  ;;  %v288_v32 = vmul.f32 %v451_v0, %v276_v18  ;;  %v320_v33 = vmul.f32 %v453_v1, %v308_v23  ;;  %v310_v39 = vld [vmem:[%s524_s9 + $0x30] sm:$0xff]  ;;  %v311_v45 = vld [vmem:[%s524_s9 + $0x38] sm:$0xff] }
  0x14   : > { %v337_v34 = vadd.f32 %v329_v25, %v297_v21  ;;  %v338_v35 = vadd.f32 %v330_v27, %v298_v26  ;;  %v331_v36 = vadd.f32 %v534_v3, %v319_v28  ;;  %v289_v37 = vmul.f32 %v451_v0, %v277_v24 }
  0x15   : > { %v336_v30 = vadd.f32 %v328_v20, %v296_v19  ;;  %v300_v41 = vadd.f32 %v529_v2, %v288_v32  ;;  %v332_v42 = vadd.f32 %v534_v3, %v320_v33  ;;  %v321_v43 = vmul.f32 %v453_v1, %v309_v29 }
  0x16   : > { %v345_v46 = vmax.f32 %v337_v34, 0.0  ;;  %v346_v47 = vmax.f32 %v338_v35, 0.0  ;;  %v339_v48 = vadd.f32 %v331_v36, %v299_v31  ;;  %v301_v49 = vadd.f32 %v529_v2, %v289_v37 }
  0x17   : > { %v344_v40 = vmax.f32 %v336_v30, 0.0  ;;  %v340_v50 = vadd.f32 %v332_v42, %v300_v41  ;;  %v333_v51 = vadd.f32 %v534_v3, %v321_v43  ;;  %v290_v52 = vmul.f32 %v451_v0, %v278_v38 }
  0x18   : > { %v322_v53 = vmul.f32 %v453_v1, %v310_v39  ;;  %353 = vst [vmem:[%s559_s16 + $0x8] sm:$0xff] %v345_v46  ;;  %v347_v54 = vmax.f32 %v339_v48, 0.0  ;;  %v291_v55 = vmul.f32 %v451_v0, %v279_v44  ;;  %v323_v56 = vmul.f32 %v453_v1, %v311_v45 }
  0x19   : > { %352 = vst [vmem:[%s559_s16] sm:$0xff] %v344_v40  ;;  %v348_v57 = vmax.f32 %v340_v50, 0.0  ;;  %v341_v58 = vadd.f32 %v333_v51, %v301_v49  ;;  %v302_v59 = vadd.f32 %v529_v2, %v290_v52 }
  0x1a   : > { %354 = vst [vmem:[%s559_s16 + $0x10] sm:$0xff] %v346_v47  ;;  %v334_v60 = vadd.f32 %v534_v3, %v322_v53  ;;  %v303_v61 = vadd.f32 %v529_v2, %v291_v55  ;;  %v335_v62 = vadd.f32 %v534_v3, %v323_v56 }
  0x1b   : > { %355 = vst [vmem:[%s559_s16 + $0x18] sm:$0xff] %v347_v54  ;;  %v349_v63 = vmax.f32 %v341_v58, 0.0 }
  0x1c   : > { %356 = vst [vmem:[%s559_s16 + $0x20] sm:$0xff] %v348_v57  ;;  %v342_v4 = vadd.f32 %v334_v60, %v302_v59  ;;  %v343_v5 = vadd.f32 %v335_v62, %v303_v61 }
  0x1d   : > { %357 = vst [vmem:[%s559_s16 + $0x28] sm:$0xff] %v349_v63 }
  0x1e   : > { %v350_v0 = vmax.f32 %v342_v4, 0.0  ;;  %v351_v1 = vmax.f32 %v343_v5, 0.0 }
  0x20   : > { %358 = vst [vmem:[%s559_s16 + $0x30] sm:$0xff] %v350_v0 }
  0x21   : > { %359 = vst [vmem:[%s559_s16 + $0x38] sm:$0xff] %v351_v1 }
  0x22 PF: > { %s16_s21 = sadd.s32 1, %s461_s21  }
  0x23   : > { %p13_p4 = scmp.ge.s32.totalorder %s16_s21, 4  }
  0x25   :  { %15 = sbr.rel (!%p13_p4) target bundleno = 1 (0x1), region = 77 }

// kernel: residual_block_forward.3
= control target key start
LH: loop header
LB: loop body
LE: loop exit
PB: predicated region body
PF: predicated region fallthrough
CT: control target
= control target key end

     0   :  { %s3013_s21 = smov 0   ;;  %s3500_s0 = inlined_call_operand.vmem [shape: bf16[2,36,9,128], index: 0, kind: input, shape index: {}]   ;;  %s3501_s1 = inlined_call_operand.vmem [shape: bf16[9,128,128], index: 1, kind: input, shape index: {}]   ;;  %s3502_s2 = inlined_call_operand.vmem [shape: bf16[1,128,128], index: 2, kind: input, shape index: {}]   ;;  %s3503_s3 = inlined_call_operand.vmem [shape: f32[2,8,8,128], index: 3, kind: output, shape index: {0}]   ;;  %s3504_s4 = inlined_call_operand.vmem [shape: f32[2,2,128], index: 4, kind: output, shape index: {1}]   ;;  %s3505_s5 = inlined_call_operand.vmem [shape: f32[2,8,8,128], index: 5, kind: output, shape index: {2}]   ;;  %s3506_s6 = inlined_call_operand.vmem [shape: f32[2,2,128], index: 6, kind: output, shape index: {3}]  }
   0x1 LB: > { %s2181_s22 = sadd.s32 4294967295, %s2976_s21   ;;  %p2185_p0 = scmp.ge.s32.totalorder %s2976_s21, 1  ;;  %s2976_s21 = sphi %s3013_s21, %s17_s21  }
   0x2   : > { %p219_p1 = scmp.lt.s32.totalorder %s2976_s21, 3 }
   0x4   : > { %p220_p2 = pnand %p2185_p0, %p219_p1 }
   0x5   : > { %p262_p3 = scmp.lt.s32.totalorder (!%p220_p2), %s2181_s22, 1 }
   0x6   : > { %223 = sbr.rel (%p220_p2) target bundleno = 351 (0x15f), region = 32 }
   0xb   : > { %v2860_v0 = vld [vmem:[%s3501_s1 + $0x78] sm:$0xff]  ;;  %v2859_v2 = vld [vmem:[%s3501_s1 + $0x70] sm:$0xff]  ;;  %v2858_v4 = vld [vmem:[%s3501_s1 + $0x68] sm:$0xff]  ;;  %s3510_s22 = smov (!%p262_p3, %s2181_s22), 1  ;;  %vm553_vm0 = vsmask.f32 3328 }
   0xc   : > { %v2848_v1 = vld [vmem:[%s3501_s1 + $0x38] sm:$0xff]  ;;  %2945 = vmatpush.bf16.msra.mxu2 %v2860_v0  ;;  %v2847_v3 = vld [vmem:[%s3501_s1 + $0x30] sm:$0xff]  ;;  %407 = vmatpush.bf16.msra.mxu0 %v2860_v0  ;;  %v2846_v5 = vld [vmem:[%s3501_s1 + $0x28] sm:$0xff]  ;;  %s2961_s25 = smul.u32 288, %s3510_s22  ;;  %vm554_vm1 = vsmask.f32 7440 }
   0xd   : > { %508 = vmatpush.bf16.msra.mxu1 %v2848_v1  ;;  %2953 = vmatpush.bf16.msra.mxu3 %v2848_v1  ;;  %v2857_v6 = vld [vmem:[%s3501_s1 + $0x60] sm:$0xff]  ;;  %v2856_v8 = vld [vmem:[%s3501_s1 + $0x58] sm:$0xff]  ;;  %v2855_v10 = vld [vmem:[%s3501_s1 + $0x50] sm:$0xff]  ;;  %s2189_s23 = sshll.u32 %s3510_s22, 1 }
   0xe   : > { %v2845_v7 = vld [vmem:[%s3501_s1 + $0x20] sm:$0xff]  ;;  %v2844_v9 = vld [vmem:[%s3501_s1 + $0x18] sm:$0xff]  ;;  %v2843_v11 = vld [vmem:[%s3501_s1 + $0x10] sm:$0xff]  ;;  %s3073_s8 = scalar_lea.vmem %s3500_s0, %s2961_s25  ;;  %s284_s26 = scalar_lea.vmem %s3506_s6, %s2189_s23 }
   0xf   : > { %v2854_v12 = vld [vmem:[%s3501_s1 + $0x48] sm:$0xff]  ;;  %v2853_v14 = vld [vmem:[%s3501_s1 + $0x40] sm:$0xff]  ;;  %v2851_v17 = vld [vmem:[%s3073_s8 + $0x6c] sm:$0xf0]  ;;  %s275_s28 = scalar_lea.vmem %s3504_s4, %s2189_s23 }
  0x10   : > { %2946 = vmatpush.bf16.msra.mxu2 %v2859_v2  ;;  %408 = vmatpush.bf16.msra.mxu0 %v2859_v2  ;;  %v2842_v13 = vld [vmem:[%s3501_s1 + $0x8] sm:$0xff]  ;;  %v2841_v15 = vld [vmem:[%s3501_s1] sm:$0xff]  ;;  %v2868_v22 = vld [vmem:[%s3501_s1 + $0xb8] sm:$0xff] }
  0x11   : > { %509 = vmatpush.bf16.msra.mxu1 %v2847_v3  ;;  %2954 = vmatpush.bf16.msra.mxu3 %v2847_v3  ;;  %v2227_v16 = vld [vmem:[%s3073_s8 + $0x68] sm:$0xf]  ;;  %v2267_v18 = vld [vmem:[%s3073_s8] sm:$0xf]  ;;  %v2880_v23 = vld [vmem:[%s3501_s1 + $0xf8] sm:$0xff] }
  0x12   : > { %v2837_v19 = vld [vmem:[%s3073_s8 + $0x4] sm:$0xf0]  ;;  %v2275_v20 = vld [vmem:[%s3073_s8 + $0x20] sm:$0xf]  ;;  %v2849_v25 = vld [vmem:[%s3073_s8 + $0x4c] sm:$0xf0]  ;;  %v2228_v26 = vor.u32 %v2851_v17, %v2227_v16 }
  0x13   : > { %v2839_v21 = vld [vmem:[%s3073_s8 + $0x24] sm:$0xf0]  ;;  %v2268_v27 = vor.u32 %v2837_v19, %v2267_v18  ;;  %v2900_v29 = vld [vmem:[%s3501_s1 + $0x178] sm:$0xff]  ;;  %v2867_v32 = vld [vmem:[%s3501_s1 + $0xb0] sm:$0xff] }
  0x14   : > { %2947 = vmatpush.bf16.msra.mxu2 %v2858_v4  ;;  %409 = vmatpush.bf16.msra.mxu0 %v2858_v4  ;;  %v2219_v24 = vld [vmem:[%s3073_s8 + $0x48] sm:$0xf]  ;;  %v2276_v28 = vor.u32 %v2839_v21, %v2275_v20  ;;  %v2892_v31 = vld [vmem:[%s3501_s1 + $0x138] sm:$0xff]  ;;  %v537_v33 = vld [vmem:[%s3073_s8] sm:$0xf] }
  0x15   : > { %510 = vmatpush.bf16.msra.mxu1 %v2846_v5  ;;  %2955 = vmatpush.bf16.msra.mxu3 %v2846_v5  ;;  %v2220_v30 = vor.u32 %v2849_v25, %v2219_v24  ;;  %v539_v34 = vld [vmem:[%s3073_s8 + $0x8] sm:$0xf]  ;;  %v2879_v35 = vld [vmem:[%s3501_s1 + $0xf0] sm:$0xff]  ;;  %v2507_v37 = vld [vmem:[%s3073_s8 + $0x98] sm:$0xf]  ;;  %v557_v39 = vshrl.u32 %v537_v33, 16 }
  0x16   : > { %v2505_v36 = vld [vmem:[%s3073_s8 + $0x90] sm:$0xf]  ;;  %v560_v40 = vshll.u32 %v537_v33, 16  ;;  %v571_v41 = vshrl.u32 %v539_v34, 16  ;;  %v574_v42 = vshll.u32 %v539_v34, 16  ;;  %v2866_v44 = vld [vmem:[%s3501_s1 + $0xa8] sm:$0xff]  ;;  %vm3169_vm2 = vmor %vm553_vm0, %vm554_vm1 }
  0x17   : > { %v2899_v38 = vld [vmem:[%s3501_s1 + $0x170] sm:$0xff]  ;;  %v1073_v45 = vshrl.u32 %v2505_v36, 16  ;;  %v1076_v46 = vshll.u32 %v2505_v36, 16  ;;  %v1087_v47 = vshrl.u32 %v2507_v37, 16  ;;  %v1090_v48 = vshll.u32 %v2507_v37, 16  ;;  %v2878_v49 = vld [vmem:[%s3501_s1 + $0xe8] sm:$0xff] }
  0x18   : > { %2948 = vmatpush.bf16.msra.mxu2 %v2857_v6  ;;  %410 = vmatpush.bf16.msra.mxu0 %v2857_v6  ;;  %v2891_v43 = vld [vmem:[%s3501_s1 + $0x130] sm:$0xff]  ;;  %v2898_v50 = vld [vmem:[%s3501_s1 + $0x168] sm:$0xff]  ;;  %v2865_v52 = vld [vmem:[%s3501_s1 + $0xa0] sm:$0xff]  ;;  %v559_v55 = vrot.slane %v557_v39, 4  ;;  %v562_v56 = vrot.slane %v560_v40, 5  ;;  %v573_v57 = vrot.slane %v571_v41, 4 }
  0x19   : > { %511 = vmatpush.bf16.msra.mxu1 %v2845_v7  ;;  %2956 = vmatpush.bf16.msra.mxu3 %v2845_v7  ;;  %v2890_v51 = vld [vmem:[%s3501_s1 + $0x128] sm:$0xff]  ;;  %v2877_v53 = vld [vmem:[%s3501_s1 + $0xe0] sm:$0xff]  ;;  %v576_v58 = vrot.slane %v574_v42, 5  ;;  %v2231_v60 = vld [vmem:[%s3073_s8 + $0x78] sm:$0xf]  ;;  %v1075_v63 = vrot.slane %v1073_v45, 4 }
  0x1a   : > { %v538_v54 = vld [vmem:[%s3073_s8 + $0x4] sm:$0x1]  ;;  %v2852_v61 = vld [vmem:[%s3073_s8 + $0x7c] sm:$0xf0]  ;;  %v540_v62 = vld [vmem:[%s3073_s8 + $0xc] sm:$0x1] }
  0x1b   : > { %v2897_v59 = vld [vmem:[%s3501_s1 + $0x160] sm:$0xff]  ;;  %v1078_v0 = vrot.slane %v1076_v46, 5  ;;  %v1089_v1 = vrot.slane %v1087_v47, 4  ;;  %v1092_v2 = vrot.slane %v1090_v48, 5  ;;  %v2271_v3 = vld [vmem:[%s3073_s8 + $0x10] sm:$0xf]  ;;  %v2232_v21 = vor.u32 %v2852_v61, %v2231_v60 }
  0x1c   : > { %2949 = vmatpush.bf16.msra.mxu2 %v2856_v8  ;;  %411 = vmatpush.bf16.msra.mxu0 %v2856_v8  ;;  %v2506_v4 = vld [vmem:[%s3073_s8 + $0x94] sm:$0x1]  ;;  %v2508_v5 = vld [vmem:[%s3073_s8 + $0x9c] sm:$0x1]  ;;  %v2838_v6 = vld [vmem:[%s3073_s8 + $0x14] sm:$0xf0] }
  0x1d   : > { %512 = vmatpush.bf16.msra.mxu1 %v2844_v9  ;;  %2957 = vmatpush.bf16.msra.mxu3 %v2844_v9  ;;  %v2279_v7 = vld [vmem:[%s3073_s8 + $0x30] sm:$0xf]  ;;  %v2840_v8 = vld [vmem:[%s3073_s8 + $0x34] sm:$0xf0]  ;;  %v1079_v17 = vor.u32 %v1078_v0, %v1075_v63  ;;  %v1082_v18 = vshll.u32 %v2506_v4, 16  ;;  %v1093_v19 = vor.u32 %v1092_v2, %v1089_v1  ;;  %v1096_v20 = vshll.u32 %v2508_v5, 16 }
  0x1e   : > { %v2223_v9 = vld [vmem:[%s3073_s8 + $0x58] sm:$0xf]  ;;  %v541_v39 = vld [vmem:[%s3073_s8 + $0x10] sm:$0xf]  ;;  %v2862_v46 = vld [vmem:[%s3501_s1 + $0x88] sm:$0xff] }
  0x1f   : > { %v2864_v16 = vld [vmem:[%s3501_s1 + $0x98] sm:$0xff]  ;;  %v1080_v34 = vrot.slane %v1079_v17, 4  ;;  %v1094_v36 = vrot.slane %v1093_v19, 4  ;;  %v1098_v37 = vrot.slane %v1096_v20, 5  ;;  %v2875_v41 = vld [vmem:[%s3501_s1 + $0xd0] sm:$0xff]  ;;  %v2886_v60 = vld [vmem:[%s3501_s1 + $0x108] sm:$0xff] }
  0x20   : > { %2950 = vmatpush.bf16.msra.mxu2 %v2855_v10  ;;  %412 = vmatpush.bf16.msra.mxu0 %v2855_v10  ;;  %v2850_v10 = vld [vmem:[%s3073_s8 + $0x5c] sm:$0xf0]  ;;  %v2896_v24 = vld [vmem:[%s3501_s1 + $0x158] sm:$0xff]  ;;  %v2887_v45 = vld [vmem:[%s3501_s1 + $0x110] sm:$0xff] }
  0x21   : > { %513 = vmatpush.bf16.msra.mxu1 %v2843_v11  ;;  %2958 = vmatpush.bf16.msra.mxu3 %v2843_v11  ;;  %v563_v11 = vor.u32 %v562_v56, %v559_v55  ;;  %v2224_v25 = vor.u32 %v2850_v10, %v2223_v9  ;;  %v543_v40 = vld [vmem:[%s3073_s8 + $0x18] sm:$0xf]  ;;  %v2894_v55 = vld [vmem:[%s3501_s1 + $0x148] sm:$0xff]  ;;  %v2861_v61 = vld [vmem:[%s3501_s1 + $0x80] sm:$0xff] }
  0x22   : > { %v2893_v63 = vld [vmem:[%s3501_s1 + $0x140] sm:$0xff]  ;;  %v2869_v2 = vld [vmem:[%s3073_s8 + $0x94] sm:$0xf0]  ;;  %v2512_v20 = vld [vmem:[%s3073_s8 + $0xac] sm:$0x1] }
  0x23   : > { %v2912_v5 = vld [vmem:[%s3501_s1 + $0x1b8] sm:$0xff] }
  0x24   : > { %2951 = vmatpush.bf16.msra.mxu2 %v2854_v12  ;;  %413 = vmatpush.bf16.msra.mxu0 %v2854_v12  ;;  %v566_v12 = vshll.u32 %v538_v54, 16  ;;  %v2874_v54 = vld [vmem:[%s3501_s1 + $0xc8] sm:$0xff]  ;;  %v2944_v19 = vld [vmem:[%s3502_s2 + $0x38] sm:$0xff] }
  0x25   : > { %514 = vmatpush.bf16.msra.mxu1 %v2842_v13  ;;  %2959 = vmatpush.bf16.msra.mxu3 %v2842_v13  ;;  %v577_v13 = vor.u32 %v576_v58, %v573_v57 }
  0x28   : > { %2952 = vmatpush.bf16.msra.mxu2 %v2853_v14  ;;  %414 = vmatpush.bf16.msra.mxu0 %v2853_v14  ;;  %v580_v14 = vshll.u32 %v540_v62, 16  ;;  %v3210_v62 = vld [vmem:[%s3073_s8 + $0x90] sm:$0xf] }
  0x29   : > { %515 = vmatpush.bf16.msra.mxu1 %v2841_v15  ;;  %2960 = vmatpush.bf16.msra.mxu3 %v2841_v15  ;;  %v2889_v15 = vld [vmem:[%s3501_s1 + $0x120] sm:$0xff] }
  0x2b   : > { %425 = vmatmul.bf16.vlgmr.msra.gmra.mxu2 %v2228_v26  ;;  %415 = vmatmul.bf16.vlgmr.msra.gmra.mxu0 %v2220_v30  ;;  %v2876_v26 = vld [vmem:[%s3501_s1 + $0xd8] sm:$0xff]  ;;  %v582_v30 = vrot.slane %v580_v14, 5 }
  0x2c   : > { %749 = vmatpush.bf16.msrb.mxu2 %v2868_v22  ;;  %516 = vmatmul.bf16.vlgmr.msra.gmra.mxu1 %v2268_v27  ;;  %v2272_v22 = vor.u32 %v2838_v6, %v2271_v3  ;;  %v564_v27 = vrot.slane %v563_v11, 4  ;;  %v542_v6 = vld [vmem:[%s3073_s8 + $0x14] sm:$0x1] }
  0x2d   : > { %884 = vmatpush.bf16.msrb.mxu3 %v2880_v23  ;;  %1265 = vmatpush.bf16.msrb.mxu1 %v2900_v29  ;;  %v2280_v23 = vor.u32 %v2840_v8, %v2279_v7  ;;  %v578_v29 = vrot.slane %v577_v13, 4  ;;  %v2873_v7 = vld [vmem:[%s3501_s1 + $0xc0] sm:$0xff]  ;;  %v544_v8 = vld [vmem:[%s3073_s8 + $0x1c] sm:$0x1] }
  0x2e   : > { %526 = vmatmul.bf16.vlgmr.msra.gmra.mxu3 %v2276_v28  ;;  %1019 = vmatpush.bf16.msrb.mxu0 %v2892_v31  ;;  %v568_v28 = vrot.slane %v566_v12, 5  ;;  %v2888_v31 = vld [vmem:[%s3501_s1 + $0x118] sm:$0xff]  ;;  %v2510_v13 = vld [vmem:[%s3073_s8 + $0xa4] sm:$0x1] }
  0x2f   : > { %v583_v47 = vsel %vm3169_vm2, %v578_v29, %v582_v30  ;;  %v1110_v30 = vshll.u32 %v2510_v13, 16 }
  0x30   : > { %750 = vmatpush.bf16.msrb.mxu2 %v2867_v32  ;;  %v2863_v32 = vld [vmem:[%s3501_s1 + $0x90] sm:$0xff]  ;;  %v569_v42 = vsel %vm3169_vm2, %v564_v27, %v568_v28  ;;  %v686_v1 = vunpack.c.l.b16 %v583_v47 }
  0x31   : > { %885 = vmatpush.bf16.msrb.mxu3 %v2879_v35  ;;  %1266 = vmatpush.bf16.msrb.mxu1 %v2899_v38  ;;  %v1084_v35 = vrot.slane %v1082_v18, 5  ;;  %v2895_v38 = vld [vmem:[%s3501_s1 + $0x150] sm:$0xff]  ;;  %v685_v0 = vunpack.c.l.b16 %v569_v42  ;;  %v2459_v18 = vld [vmem:[%s3073_s8 + $0xd8] sm:$0xf] }
  0x32   : > { %1020 = vmatpush.bf16.msrb.mxu0 %v2891_v43  ;;  %v2509_v43 = vld [vmem:[%s3073_s8 + $0xa0] sm:$0xf]  ;;  %v2513_v47 = vld [vmem:[%s3073_s8 + $0xb0] sm:$0xf] }
  0x33   : > { %v1085_v48 = vsel %vm3169_vm2, %v1080_v34, %v1084_v35  ;;  %v1101_v56 = vshrl.u32 %v2509_v43, 16  ;;  %v1104_v57 = vshll.u32 %v2509_v43, 16  ;;  %v693_v27 = vpack.c.b16 %v686_v1, %v685_v0  ;;  %v545_v43 = vld [vmem:[%s3073_s8 + $0x20] sm:$0xf] }
  0x34   : > { %751 = vmatpush.bf16.msrb.mxu2 %v2866_v44  ;;  %v2511_v44 = vld [vmem:[%s3073_s8 + $0xa8] sm:$0xf]  ;;  %v1201_v3 = vunpack.c.l.b16 %v1085_v48  ;;  %v2515_v48 = vld [vmem:[%s3073_s8 + $0xb8] sm:$0xf]  ;;  %v2909_v1 = vld [vmem:[%s3501_s1 + $0x1a0] sm:$0xff] }
  0x35   : > { %886 = vmatpush.bf16.msrb.mxu3 %v2878_v49  ;;  %1267 = vmatpush.bf16.msrb.mxu1 %v2898_v50  ;;  %v1099_v49 = vsel %vm3169_vm2, %v1094_v36, %v1098_v37  ;;  %v585_v50 = vshrl.u32 %v541_v39, 16  ;;  %v1115_v58 = vshrl.u32 %v2511_v44, 16  ;;  %v1103_v14 = vrot.slane %v1101_v56, 4 }
  0x36   : > { %1021 = vmatpush.bf16.msrb.mxu0 %v2890_v51  ;;  %v588_v51 = vshll.u32 %v541_v39, 16  ;;  %v1202_v4 = vunpack.c.l.b16 %v1099_v49  ;;  %v1124_v36 = vshll.u32 %v2512_v20, 16  ;;  %v2932_v39 = vld [vmem:[%s3501_s1 + $0x238] sm:$0xff]  ;;  %v616_v56 = vshll.u32 %v545_v43, 16 }
  0x37   : > { %v587_v9 = vrot.slane %v585_v50, 4  ;;  %v1146_v0 = vshll.u32 %v2515_v48, 16 }
  0x38   : > { %752 = vmatpush.bf16.msrb.mxu2 %v2865_v52  ;;  %v599_v52 = vshrl.u32 %v543_v40, 16  ;;  %v590_v10 = vrot.slane %v588_v51, 5  ;;  %v1209_v28 = vpack.c.b16 %v1202_v4, %v1201_v3 }
  0x39   : > { %887 = vmatpush.bf16.msrb.mxu3 %v2877_v53  ;;  %1268 = vmatpush.bf16.msrb.mxu1 %v2897_v59  ;;  %v602_v53 = vshll.u32 %v543_v40, 16  ;;  %v1118_v59 = vshll.u32 %v2511_v44, 16  ;;  %v2943_v40 = vld [vmem:[%s3502_s2 + $0x30] sm:$0xff]  ;;  %v547_v44 = vld [vmem:[%s3073_s8 + $0x28] sm:$0xf] }
  0x3a   : > { %1022 = vmatpush.bf16.msrb.mxu0 %v2889_v15  ;;  %v601_v11 = vrot.slane %v599_v52, 4  ;;  %v1106_v15 = vrot.slane %v1104_v57, 5  ;;  %v591_v29 = vor.u32 %v590_v10, %v587_v9  ;;  %v1126_v52 = vrot.slane %v1124_v36, 5  ;;  %v2930_v9 = vld [vmem:[%s3501_s1 + $0x228] sm:$0xff] }
  0x3b   : > { %430 = vmatmul.bf16.gmra.mxu2 %v2232_v21  ;;  %420 = vmatmul.bf16.gmra.mxu0 %v2224_v25  ;;  %v604_v12 = vrot.slane %v602_v53, 5  ;;  %v1120_v17 = vrot.slane %v1118_v59, 5  ;;  %v2885_v21 = vld [vmem:[%s3501_s1 + $0x100] sm:$0xff]  ;;  %v594_v25 = vshll.u32 %v542_v6, 16  ;;  %v2910_v53 = vld [vmem:[%s3501_s1 + $0x1a8] sm:$0xff]  ;;  %v627_v57 = vshrl.u32 %v547_v44, 16 }
  0x3c   : > { %753 = vmatpush.bf16.msrb.mxu2 %v2864_v16  ;;  %521 = vmatmul.bf16.gmra.mxu1 %v2272_v22  ;;  %v1117_v16 = vrot.slane %v1115_v58, 4  ;;  %v2388_v22 = vor.u32 %v2869_v2, %v3210_v62  ;;  %v1107_v34 = vor.u32 %v1106_v15, %v1103_v14  ;;  %v630_v58 = vshll.u32 %v547_v44, 16  ;;  %v2922_v59 = vld [vmem:[%s3501_s1 + $0x1e8] sm:$0xff]  ;;  %v2921_v6 = vld [vmem:[%s3501_s1 + $0x1e0] sm:$0xff]  ;;  %v2514_v15 = vld [vmem:[%s3073_s8 + $0xb4] sm:$0x1] }
  0x3d   : > { %1269 = vmatpush.bf16.msrb.mxu1 %v2896_v24  ;;  %888 = vmatpush.bf16.msrb.mxu3 %v2876_v26  ;;  %v2924_v24 = vld [vmem:[%s3501_s1 + $0x1f8] sm:$0xff]  ;;  %v608_v26 = vshll.u32 %v544_v8, 16  ;;  %v1132_v62 = vshll.u32 %v2513_v47, 16  ;;  %v548_v8 = vld [vmem:[%s3073_s8 + $0x2c] sm:$0x1]  ;;  %v2941_v14 = vld [vmem:[%s3502_s2 + $0x20] sm:$0xff] }
  0x3e   : > { %531 = vmatmul.bf16.gmra.mxu3 %v2280_v23  ;;  %1023 = vmatpush.bf16.msrb.mxu0 %v2888_v31  ;;  %v2881_v23 = vld [vmem:[%s3073_s8 + $0xdc] sm:$0xf0]  ;;  %v2911_v31 = vld [vmem:[%s3501_s1 + $0x1b0] sm:$0xff]  ;;  %v1121_v35 = vor.u32 %v1120_v17, %v1117_v16  ;;  %v1108_v50 = vrot.slane %v1107_v34, 4  ;;  %v632_v13 = vrot.slane %v630_v58, 5  ;;  %v1138_v34 = vshll.u32 %v2514_v15, 16 }
  0x3f   : > { %v2460_v37 = vor.u32 %v2881_v23, %v2459_v18  ;;  %v610_v42 = vrot.slane %v608_v26, 5  ;;  %v1134_v17 = vrot.slane %v1132_v62, 5  ;;  %v2870_v26 = vld [vmem:[%s3073_s8 + $0xa4] sm:$0xf0]  ;;  %v551_v58 = vld [vmem:[%s3073_s8 + $0x38] sm:$0xf] }
  0x40   : > { %754 = vmatpush.bf16.msrb.mxu2 %v2863_v32  ;;  %v605_v32 = vor.u32 %v604_v12, %v601_v11  ;;  %v1122_v51 = vrot.slane %v1121_v35, 4  ;;  %v618_v11 = vrot.slane %v616_v56, 5  ;;  %v629_v12 = vrot.slane %v627_v57, 4  ;;  %v2940_v35 = vld [vmem:[%s3502_s2 + $0x18] sm:$0xff]  ;;  %v549_v57 = vld [vmem:[%s3073_s8 + $0x30] sm:$0xf] }
  0x41   : > { %1270 = vmatpush.bf16.msrb.mxu1 %v2895_v38  ;;  %889 = vmatpush.bf16.msrb.mxu3 %v2875_v41  ;;  %v2923_v38 = vld [vmem:[%s3501_s1 + $0x1f0] sm:$0xff]  ;;  %v596_v41 = vrot.slane %v594_v25, 5  ;;  %v2516_v25 = vld [vmem:[%s3073_s8 + $0xbc] sm:$0x1]  ;;  %v2519_v62 = vld [vmem:[%s3073_s8 + $0xc8] sm:$0xf] }
  0x42   : > { %1024 = vmatpush.bf16.msrb.mxu0 %v2887_v45  ;;  %v592_v45 = vrot.slane %v591_v29, 4  ;;  %v606_v49 = vrot.slane %v605_v32, 4  ;;  %v2882_v29 = vld [vmem:[%s3073_s8 + $0xec] sm:$0xf0]  ;;  %v636_v32 = vshll.u32 %v548_v8, 16  ;;  %v633_v36 = vor.u32 %v632_v13, %v629_v12  ;;  %v2928_v56 = vld [vmem:[%s3501_s1 + $0x218] sm:$0xff] }
  0x43   : > { %v658_v8 = vshll.u32 %v551_v58, 16  ;;  %v1171_v12 = vshrl.u32 %v2519_v62, 16  ;;  %v1174_v13 = vshll.u32 %v2519_v62, 16  ;;  %v2395_v15 = vld [vmem:[%s3073_s8 + $0xb0] sm:$0xf] }
  0x44   : > { %755 = vmatpush.bf16.msrb.mxu2 %v2862_v46  ;;  %v1112_v46 = vrot.slane %v1110_v30, 5  ;;  %v597_v2 = vsel %vm3169_vm2, %v592_v45, %v596_v41  ;;  %v611_v3 = vsel %vm3169_vm2, %v606_v49, %v610_v42  ;;  %v2929_v41 = vld [vmem:[%s3501_s1 + $0x220] sm:$0xff]  ;;  %v638_v49 = vrot.slane %v636_v32, 5 }
  0x45   : > { %1271 = vmatpush.bf16.msrb.mxu1 %v2894_v55  ;;  %890 = vmatpush.bf16.msrb.mxu3 %v2874_v54  ;;  %v2942_v54 = vld [vmem:[%s3502_s2 + $0x28] sm:$0xff]  ;;  %v613_v55 = vshrl.u32 %v545_v43, 16  ;;  %v687_v20 = vunpack.c.l.b16 %v597_v2 }
  0x46   : > { %1025 = vmatpush.bf16.msrb.mxu0 %v2886_v60  ;;  %v2931_v60 = vld [vmem:[%s3501_s1 + $0x230] sm:$0xff]  ;;  %v1113_v4 = vsel %vm3169_vm2, %v1108_v50, %v1112_v46  ;;  %v1140_v50 = vrot.slane %v1138_v34, 5  ;;  %v1173_v34 = vrot.slane %v1171_v12, 4  ;;  %v2471_v12 = vld [vmem:[%s3073_s8 + $0x108] sm:$0xf] }
  0x47   : > { %v615_v10 = vrot.slane %v613_v55, 4  ;;  %v1203_v23 = vunpack.c.l.b16 %v1113_v4  ;;  %v2907_v46 = vld [vmem:[%s3501_s1 + $0x190] sm:$0xff] }
  0x48   : > { %756 = vmatpush.bf16.msrb.mxu2 %v2861_v61  ;;  %v1129_v61 = vshrl.u32 %v2513_v47, 16  ;;  %v2919_v55 = vld [vmem:[%s3501_s1 + $0x1d0] sm:$0xff] }
  0x49   : > { %1272 = vmatpush.bf16.msrb.mxu1 %v2893_v63  ;;  %891 = vmatpush.bf16.msrb.mxu3 %v2873_v7  ;;  %v1143_v63 = vshrl.u32 %v2515_v48, 16  ;;  %v546_v7 = vld [vmem:[%s3073_s8 + $0x24] sm:$0x1]  ;;  %v619_v30 = vor.u32 %v618_v11, %v615_v10  ;;  %v2927_v4 = vld [vmem:[%s3501_s1 + $0x210] sm:$0xff] }
  0x4a   : > { %1026 = vmatpush.bf16.msrb.mxu0 %v2885_v21  ;;  %v1131_v16 = vrot.slane %v1129_v61, 4  ;;  %v688_v21 = vunpack.c.l.b16 %v611_v3  ;;  %v2517_v61 = vld [vmem:[%s3073_s8 + $0xc0] sm:$0xf]  ;;  %v2918_v3 = vld [vmem:[%s3501_s1 + $0x1c8] sm:$0xff] }
  0x4b   : > { %757 = vmatmul.bf16.vlgmr.msrb.gmra.mxu2 %v693_v27  ;;  %v1145_v18 = vrot.slane %v1143_v63, 4  ;;  %v2463_v27 = vld [vmem:[%s3073_s8 + $0xe8] sm:$0xf]  ;;  %v620_v47 = vrot.slane %v619_v30, 4  ;;  %v2939_v63 = vld [vmem:[%s3502_s2 + $0x10] sm:$0xff]  ;;  %v1157_v10 = vshrl.u32 %v2517_v61, 16 }
  0x4c   : > { %1400 = vmatpush.bf16.msra.mxu2 %v2912_v5  ;;  %1273 = vmatmul.bf16.vlgmr.msrb.gmra.mxu1 %v1209_v28  ;;  %v1127_v5 = vsel %vm3169_vm2, %v1122_v51, %v1126_v52  ;;  %v2908_v28 = vld [vmem:[%s3501_s1 + $0x198] sm:$0xff]  ;;  %v694_v42 = vpack.c.b16 %v688_v21, %v687_v20  ;;  %v2464_v45 = vor.u32 %v2882_v29, %v2463_v27  ;;  %v634_v51 = vrot.slane %v633_v36, 4  ;;  %v550_v21 = vld [vmem:[%s3073_s8 + $0x34] sm:$0x1]  ;;  %v2937_v29 = vld [vmem:[%s3502_s2] sm:$0xff] }
  0x4d   : > { %1958 = vmatpush.bf16.msra.mxu1 %v2944_v19  ;;  %1535 = vmatpush.bf16.msra.mxu3 %v2924_v24  ;;  %v1148_v19 = vrot.slane %v1146_v0, 5  ;;  %v1204_v24 = vunpack.c.l.b16 %v1127_v5  ;;  %v641_v5 = vshrl.u32 %v549_v57, 16  ;;  %v1160_v11 = vshll.u32 %v2517_v61, 16  ;;  %v2518_v30 = vld [vmem:[%s3073_s8 + $0xc4] sm:$0x1] }
  0x4e   : > { %892 = vmatmul.bf16.vlgmr.msrb.gmra.mxu3 %v2388_v22  ;;  %1027 = vmatmul.bf16.vlgmr.msrb.gmra.mxu0 %v2460_v37  ;;  %v2391_v22 = vld [vmem:[%s3073_s8 + $0xa0] sm:$0xf]  ;;  %v1135_v37 = vor.u32 %v1134_v17, %v1131_v16  ;;  %v639_v0 = vsel %vm3169_vm2, %v634_v51, %v638_v49  ;;  %v2871_v16 = vld [vmem:[%s3073_s8 + $0xb4] sm:$0xf0]  ;;  %v2520_v36 = vld [vmem:[%s3073_s8 + $0xcc] sm:$0x1] }
  0x4f   : > { %1781 = vmatpush.bf16.msra.mxu0 %v2932_v39  ;;  %v1152_v39 = vshll.u32 %v2516_v25, 16  ;;  %v1210_v43 = vpack.c.b16 %v1204_v24, %v1203_v23  ;;  %v2392_v44 = vor.u32 %v2870_v26, %v2391_v22  ;;  %v552_v22 = vld [vmem:[%s3073_s8 + $0x3c] sm:$0x1]  ;;  %v2917_v23 = vld [vmem:[%s3501_s1 + $0x1c0] sm:$0xff]  ;;  %v2926_v24 = vld [vmem:[%s3501_s1 + $0x208] sm:$0xff]  ;;  %v643_v25 = vrot.slane %v641_v5, 4 }
  0x50   : > { %1401 = vmatpush.bf16.msra.mxu2 %v2911_v31  ;;  %v622_v31 = vshll.u32 %v546_v7, 16  ;;  %v1136_v52 = vrot.slane %v1135_v37, 4  ;;  %v655_v7 = vshrl.u32 %v551_v58, 16  ;;  %v1162_v32 = vrot.slane %v1160_v11, 5  ;;  %v2715_v61 = vld [vmem:[%s3073_s8 + $0x10] sm:$0xf] }
  0x51   : > { %1959 = vmatpush.bf16.msra.mxu1 %v2943_v40  ;;  %1536 = vmatpush.bf16.msra.mxu3 %v2923_v38  ;;  %v1149_v38 = vor.u32 %v1148_v19, %v1145_v18  ;;  %v2920_v40 = vld [vmem:[%s3501_s1 + $0x1d8] sm:$0xff]  ;;  %v690_v18 = vunpack.c.l.b16 %v639_v0  ;;  %v1606_v5 = vshll.u32 %v2715_v61, 16  ;;  %v2872_v11 = vld [vmem:[%s3073_s8 + $0xc4] sm:$0xf0] }
  0x52   : > { %v624_v48 = vrot.slane %v622_v31, 5  ;;  %v657_v27 = vrot.slane %v655_v7, 4  ;;  %v1159_v31 = vrot.slane %v1157_v10, 4  ;;  %v2399_v10 = vld [vmem:[%s3073_s8 + $0xc0] sm:$0xf] }
  0x53   : > { %1782 = vmatpush.bf16.msra.mxu0 %v2931_v60 }
  0x54   : > { %1402 = vmatpush.bf16.msra.mxu2 %v2910_v53  ;;  %v1150_v53 = vrot.slane %v1149_v38, 4  ;;  %v625_v60 = vsel %vm3169_vm2, %v620_v47, %v624_v48  ;;  %v2396_v38 = vor.u32 %v2871_v16, %v2395_v15  ;;  %v1163_v48 = vor.u32 %v1162_v32, %v1159_v31 }
  0x55   : > { %1960 = vmatpush.bf16.msra.mxu1 %v2942_v54  ;;  %1537 = vmatpush.bf16.msra.mxu3 %v2922_v59  ;;  %v1154_v54 = vrot.slane %v1152_v39, 5  ;;  %v2906_v59 = vld [vmem:[%s3501_s1 + $0x188] sm:$0xff]  ;;  %v689_v17 = vunpack.c.l.b16 %v625_v60 }
  0x56   : > { %v2713_v60 = vld [vmem:[%s3073_s8 + $0x8] sm:$0xf] }
  0x57   : > { %1783 = vmatpush.bf16.msra.mxu0 %v2930_v9  ;;  %v1155_v2 = vsel %vm3169_vm2, %v1150_v53, %v1154_v54  ;;  %v2938_v9 = vld [vmem:[%s3502_s2 + $0x8] sm:$0xff]  ;;  %v695_v37 = vpack.c.b16 %v690_v18, %v689_v17  ;;  %v1608_v17 = vrot.slane %v1606_v5, 5 }
  0x58   : > { %1403 = vmatpush.bf16.msra.mxu2 %v2909_v1  ;;  %v1141_v1 = vsel %vm3169_vm2, %v1136_v52, %v1140_v50  ;;  %v1206_v20 = vunpack.c.l.b16 %v1155_v2  ;;  %v1180_v50 = vshll.u32 %v2520_v36, 16  ;;  %v1589_v2 = vshrl.u32 %v2713_v60, 16 }
  0x59   : > { %1961 = vmatpush.bf16.msra.mxu1 %v2941_v14  ;;  %1538 = vmatpush.bf16.msra.mxu3 %v2921_v6  ;;  %v644_v6 = vshll.u32 %v549_v57, 16  ;;  %v2905_v14 = vld [vmem:[%s3501_s1 + $0x180] sm:$0xff]  ;;  %v1205_v19 = vunpack.c.l.b16 %v1141_v1  ;;  %v1164_v57 = vrot.slane %v1163_v48, 4 }
  0x5b   : > { %1784 = vmatpush.bf16.msra.mxu0 %v2929_v41  ;;  %762 = vmatmul.bf16.gmra.mxu2 %v694_v42  ;;  %v646_v26 = vrot.slane %v644_v6, 5  ;;  %v1211_v39 = vpack.c.b16 %v1206_v20, %v1205_v19  ;;  %v2883_v41 = vld [vmem:[%s3073_s8 + $0xfc] sm:$0xf0]  ;;  %v2714_v20 = vld [vmem:[%s3073_s8 + $0xc] sm:$0x1] }
  0x5c   : > { %1404 = vmatpush.bf16.msra.mxu2 %v2908_v28  ;;  %1278 = vmatmul.bf16.gmra.mxu1 %v1210_v43  ;;  %v660_v28 = vrot.slane %v658_v8, 5  ;;  %v2925_v42 = vld [vmem:[%s3501_s1 + $0x200] sm:$0xff] }
  0x5d   : > { %1962 = vmatpush.bf16.msra.mxu1 %v2940_v35  ;;  %1539 = vmatpush.bf16.msra.mxu3 %v2920_v40  ;;  %v1176_v35 = vrot.slane %v1174_v13, 5  ;;  %v2467_v40 = vld [vmem:[%s3073_s8 + $0xf8] sm:$0xf]  ;;  %v647_v43 = vor.u32 %v646_v26, %v643_v25  ;;  %v2884_v13 = vld [vmem:[%s3073_s8 + $0x10c] sm:$0xf0]  ;;  %v1598_v25 = vshll.u32 %v2714_v20, 16 }
  0x5e   : > { %897 = vmatmul.bf16.gmra.mxu3 %v2392_v44  ;;  %1032 = vmatmul.bf16.gmra.mxu0 %v2464_v45  ;;  %v650_v44 = vshll.u32 %v550_v21, 16  ;;  %v664_v45 = vshll.u32 %v552_v22, 16  ;;  %v661_v47 = vor.u32 %v660_v28, %v657_v27  ;;  %v2468_v51 = vor.u32 %v2883_v41, %v2467_v40  ;;  %v2716_v21 = vld [vmem:[%s3073_s8 + $0x14] sm:$0x1]  ;;  %v2717_v28 = vld [vmem:[%s3073_s8 + $0x18] sm:$0xf] }
  0x5f   : > { %1785 = vmatpush.bf16.msra.mxu0 %v2928_v56  ;;  %v1177_v49 = vor.u32 %v1176_v35, %v1173_v34  ;;  %v648_v52 = vrot.slane %v647_v43, 4  ;;  %v2400_v22 = vor.u32 %v2872_v11, %v2399_v10  ;;  %v1612_v27 = vshll.u32 %v2716_v21, 16  ;;  %v2901_v40 = vld [vmem:[%s3073_s8 + $0xc] sm:$0xf0]  ;;  %v2599_v11 = vld [vmem:[%s3073_s8 + $0x18] sm:$0xf] }
  0x60   : > { %1405 = vmatpush.bf16.msra.mxu2 %v2907_v46  ;;  %v1166_v46 = vshll.u32 %v2518_v30, 16  ;;  %v652_v53 = vrot.slane %v650_v44, 5  ;;  %v666_v54 = vrot.slane %v664_v45, 5  ;;  %v662_v56 = vrot.slane %v661_v47, 4  ;;  %v2667_v43 = vld [vmem:[%s3073_s8 + $0x50] sm:$0xf] }
  0x61   : > { %1540 = vmatpush.bf16.msra.mxu3 %v2919_v55  ;;  %1963 = vmatpush.bf16.msra.mxu1 %v2939_v63  ;;  %v1178_v58 = vrot.slane %v1177_v49, 4  ;;  %v1600_v31 = vrot.slane %v1598_v25, 5  ;;  %v1614_v34 = vrot.slane %v1612_v27, 5  ;;  %v1617_v35 = vshrl.u32 %v2717_v28, 16  ;;  %v2913_v44 = vld [vmem:[%s3073_s8 + $0x54] sm:$0xf0] }
  0x62   : > { %v1168_v55 = vrot.slane %v1166_v46, 5  ;;  %v653_v62 = vsel %vm3169_vm2, %v648_v52, %v652_v53  ;;  %v667_v63 = vsel %vm3169_vm2, %v662_v56, %v666_v54  ;;  %v1620_v36 = vshll.u32 %v2717_v28, 16  ;;  %v2787_v45 = vld [vmem:[%s3073_s8 + $0xd8] sm:$0xf]  ;;  %v2933_v46 = vld [vmem:[%s3073_s8 + $0xdc] sm:$0xf0] }
  0x63   : > { %1786 = vmatpush.bf16.msra.mxu0 %v2927_v4  ;;  %v1603_v4 = vshrl.u32 %v2715_v61, 16  ;;  %v691_v6 = vunpack.c.l.b16 %v653_v62  ;;  %v692_v7 = vunpack.c.l.b16 %v667_v63  ;;  %v1619_v47 = vrot.slane %v1617_v35, 4  ;;  %v2718_v53 = vld [vmem:[%s3073_s8 + $0x1c] sm:$0x1]  ;;  %v2720_v54 = vld [vmem:[%s3073_s8 + $0x24] sm:$0x1] }
  0x64   : > { %1406 = vmatpush.bf16.msra.mxu2 %v2906_v59  ;;  %v1182_v59 = vrot.slane %v1180_v50, 5  ;;  %v1169_v0 = vsel %vm3169_vm2, %v1164_v57, %v1168_v55  ;;  %v1622_v48 = vrot.slane %v1620_v36, 5  ;;  %v2668_v56 = vor.u32 %v2913_v44, %v2667_v43 }
  0x65   : > { %1541 = vmatpush.bf16.msra.mxu3 %v2918_v3  ;;  %1964 = vmatpush.bf16.msra.mxu1 %v2938_v9  ;;  %v1592_v3 = vshll.u32 %v2713_v60, 16  ;;  %v1207_v8 = vunpack.c.l.b16 %v1169_v0  ;;  %v1605_v16 = vrot.slane %v1603_v4, 4  ;;  %v696_v18 = vpack.c.b16 %v692_v7, %v691_v6  ;;  %v2723_v4 = vld [vmem:[%s3073_s8 + $0x30] sm:$0xf] }
  0x66   : > { %v1183_v1 = vsel %vm3169_vm2, %v1178_v58, %v1182_v59  ;;  %v2788_v57 = vor.u32 %v2933_v46, %v2787_v45  ;;  %v1623_v58 = vor.u32 %v1622_v48, %v1619_v47  ;;  %v1626_v59 = vshll.u32 %v2718_v53, 16  ;;  %v2603_v46 = vld [vmem:[%s3073_s8 + $0x28] sm:$0xf]  ;;  %v2903_v47 = vld [vmem:[%s3073_s8 + $0x2c] sm:$0xf0] }
  0x67   : > { %1787 = vmatpush.bf16.msra.mxu0 %v2926_v24  ;;  %v1208_v9 = vunpack.c.l.b16 %v1183_v1  ;;  %v1594_v15 = vrot.slane %v1592_v3, 5  ;;  %v1609_v26 = vor.u32 %v1608_v17, %v1605_v16  ;;  %v1640_v61 = vshll.u32 %v2720_v54, 16  ;;  %v2721_v3 = vld [vmem:[%s3073_s8 + $0x28] sm:$0xf]  ;;  %v2795_v48 = vld [vmem:[%s3073_s8 + $0xf8] sm:$0xf] }
  0x68   : > { %1407 = vmatpush.bf16.msra.mxu2 %v2905_v14  ;;  %v1591_v14 = vrot.slane %v1589_v2, 4  ;;  %v1624_v63 = vrot.slane %v1623_v58, 4  ;;  %v1628_v0 = vrot.slane %v1626_v59, 5  ;;  %v1645_v7 = vshrl.u32 %v2721_v3, 16 }
  0x69   : > { %1542 = vmatpush.bf16.msra.mxu3 %v2917_v23  ;;  %1965 = vmatpush.bf16.msra.mxu1 %v2937_v29  ;;  %v1212_v19 = vpack.c.b16 %v1208_v9, %v1207_v8  ;;  %v2472_v23 = vor.u32 %v2884_v13, %v2471_v12  ;;  %v2719_v29 = vld [vmem:[%s3073_s8 + $0x20] sm:$0xf]  ;;  %v1610_v32 = vrot.slane %v1609_v26, 4  ;;  %v1642_v2 = vrot.slane %v1640_v61, 5  ;;  %v2728_v61 = vld [vmem:[%s3073_s8 + $0x44] sm:$0x1] }
  0x6a   : > { %v1595_v24 = vor.u32 %v1594_v15, %v1591_v14  ;;  %v1629_v5 = vsel %vm3169_vm2, %v1624_v63, %v1628_v0  ;;  %v1648_v8 = vshll.u32 %v2721_v3, 16  ;;  %v1659_v9 = vshrl.u32 %v2723_v4, 16  ;;  %v2902_v12 = vld [vmem:[%s3073_s8 + $0x1c] sm:$0xf0]  ;;  %v2791_v14 = vld [vmem:[%s3073_s8 + $0xe8] sm:$0xf] }
  0x6b   : > { %1788 = vmatpush.bf16.msra.mxu0 %v2925_v42  ;;  %767 = vmatmul.bf16.gmra.mxu2 %v695_v37  ;;  %v1631_v37 = vshrl.u32 %v2719_v29, 16  ;;  %v1615_v42 = vsel %vm3169_vm2, %v1610_v32, %v1614_v34  ;;  %v1662_v10 = vshll.u32 %v2723_v4, 16  ;;  %v2671_v13 = vld [vmem:[%s3073_s8 + $0x60] sm:$0xf]  ;;  %v2934_v15 = vld [vmem:[%s3073_s8 + $0xec] sm:$0xf0]  ;;  %v1719_v16 = vunpack.c.l.b16 %v1629_v5 }
  0x6c   : > { %1283 = vmatmul.bf16.gmra.mxu1 %v1211_v39  ;;  %v1596_v30 = vrot.slane %v1595_v24, 4  ;;  %v2595_v39 = vld [vmem:[%s3073_s8 + $0x8] sm:$0xf]  ;;  %v1718_v52 = vunpack.c.l.b16 %v1615_v42  ;;  %v1650_v20 = vrot.slane %v1648_v8, 5  ;;  %v1661_v21 = vrot.slane %v1659_v9, 4 }
  0x6d   : > { %v1633_v49 = vrot.slane %v1631_v37, 4  ;;  %v2596_v55 = vor.u32 %v2901_v40, %v2595_v39  ;;  %v2724_v24 = vld [vmem:[%s3073_s8 + $0x34] sm:$0x1]  ;;  %v2600_v25 = vor.u32 %v2902_v12, %v2599_v11  ;;  %v2792_v26 = vor.u32 %v2934_v15, %v2791_v14  ;;  %v2727_v39 = vld [vmem:[%s3073_s8 + $0x40] sm:$0xf] }
  0x6e   : > { %902 = vmatmul.bf16.gmra.mxu3 %v2396_v38  ;;  %1037 = vmatmul.bf16.gmra.mxu0 %v2468_v51  ;;  %v1634_v38 = vshll.u32 %v2719_v29, 16  ;;  %v1601_v41 = vsel %vm3169_vm2, %v1596_v30, %v1600_v31  ;;  %v1668_v32 = vshll.u32 %v2724_v24, 16  ;;  %v1687_v44 = vshrl.u32 %v2727_v39, 16  ;;  %v2916_v24 = vld [vmem:[%s3073_s8 + $0x84] sm:$0xf0] }
  0x6f   : > { %v1717_v51 = vunpack.c.l.b16 %v1601_v41  ;;  %v1690_v45 = vshll.u32 %v2727_v39, 16  ;;  %v2604_v58 = vor.u32 %v2903_v47, %v2603_v46  ;;  %v1696_v5 = vshll.u32 %v2728_v61, 16 }
  0x70   : > { %v1636_v50 = vrot.slane %v1634_v38, 5  ;;  %v1670_v37 = vrot.slane %v1668_v32, 5  ;;  %v2725_v38 = vld [vmem:[%s3073_s8 + $0x38] sm:$0xf] }
  0x71   : > { %v1725_v62 = vpack.c.b16 %v1718_v52, %v1717_v51  ;;  %v1673_v42 = vshrl.u32 %v2725_v38, 16  ;;  %v1676_v43 = vshll.u32 %v2725_v38, 16  ;;  %v2915_v51 = vld [vmem:[%s3073_s8 + $0x74] sm:$0xf0]  ;;  %v1698_v11 = vrot.slane %v1696_v5, 5 }
  0x72   : > { %v1637_v60 = vor.u32 %v1636_v50, %v1633_v49  ;;  %v2935_v49 = vld [vmem:[%s3073_s8 + $0xfc] sm:$0xf0]  ;;  %v2675_v50 = vld [vmem:[%s3073_s8 + $0x70] sm:$0xf] }
  0x73   : > { %v1675_v54 = vrot.slane %v1673_v42, 4  ;;  %v2796_v59 = vor.u32 %v2935_v49, %v2795_v48  ;;  %v2676_v63 = vor.u32 %v2915_v51, %v2675_v50 }
  0x74   : > { %v1638_v1 = vrot.slane %v1637_v60, 4  ;;  %v2726_v60 = vld [vmem:[%s3073_s8 + $0x3c] sm:$0x1] }
  0x75   : > { %v1682_v3 = vshll.u32 %v2726_v60, 16 }
  0x76   : > { %v1643_v6 = vsel %vm3169_vm2, %v1638_v1, %v1642_v2 }
  0x77   : > { %v1720_v17 = vunpack.c.l.b16 %v1643_v6  ;;  %v1684_v9 = vrot.slane %v1682_v3, 5 }
  0x79   : > { %v1726_v28 = vpack.c.b16 %v1720_v17, %v1719_v16 }
  0x7b   : > { %772 = vmatmul.bf16.gmra.mxu2 %v696_v18  ;;  %v2914_v18 = vld [vmem:[%s3073_s8 + $0x64] sm:$0xf0] }
  0x7c   : > { %1288 = vmatmul.bf16.gmra.mxu1 %v1212_v19  ;;  %v1647_v19 = vrot.slane %v1645_v7, 4  ;;  %v2672_v27 = vor.u32 %v2914_v18, %v2671_v13 }
  0x7e   : > { %907 = vmatmul.bf16.gmra.mxu3 %v2400_v22  ;;  %1042 = vmatmul.bf16.gmra.mxu0 %v2472_v23  ;;  %v1664_v22 = vrot.slane %v1662_v10, 5  ;;  %v2722_v23 = vld [vmem:[%s3073_s8 + $0x2c] sm:$0x1]  ;;  %v1651_v29 = vor.u32 %v1650_v20, %v1647_v19  ;;  %v2607_v19 = vld [vmem:[%s3073_s8 + $0x38] sm:$0xf] }
  0x7f   : > { %v1654_v30 = vshll.u32 %v2722_v23, 16  ;;  %v2904_v20 = vld [vmem:[%s3073_s8 + $0x3c] sm:$0xf0] }
  0x80   : > { %v1665_v31 = vor.u32 %v1664_v22, %v1661_v21  ;;  %v1652_v34 = vrot.slane %v1651_v29, 4  ;;  %v2799_v21 = vld [vmem:[%s3073_s8 + $0x108] sm:$0xf]  ;;  %v2936_v22 = vld [vmem:[%s3073_s8 + $0x10c] sm:$0xf0]  ;;  %v2608_v29 = vor.u32 %v2904_v20, %v2607_v19 }
  0x81   : > { %v1656_v35 = vrot.slane %v1654_v30, 5  ;;  %v2679_v23 = vld [vmem:[%s3073_s8 + $0x80] sm:$0xf]  ;;  %v2800_v30 = vor.u32 %v2936_v22, %v2799_v21  ;;  %s2835_s8 = sshll.u32 %s3510_s22, 6 }
  0x82   : > { %v1666_v36 = vrot.slane %v1665_v31, 4  ;;  %s3452_s17 = scalar_lea.vmem %s3505_s5, %s2835_s8  ;;  %s3464_s20 = scalar_lea.vmem %s3503_s3, %s2835_s8 }
  0x83   : > { %v1657_v40 = vsel %vm3169_vm2, %v1652_v34, %v1656_v35  ;;  %v2680_v34 = vor.u32 %v2916_v24, %v2679_v23 }
  0x84   : > { %v1671_v41 = vsel %vm3169_vm2, %v1666_v36, %v1670_v37  ;;  %v1721_v52 = vunpack.c.l.b16 %v1657_v40 }
  0x85   : > { %v1722_v53 = vunpack.c.l.b16 %v1671_v41 }
  0x87   : > { %v1727_v0 = vpack.c.b16 %v1722_v53, %v1721_v52 }
  0x8b   : > { %1408 = vmatmul.bf16.vlgmr.msra.gmra.mxu2 %v2596_v55  ;;  %v1678_v55 = vrot.slane %v1676_v43, 5 }
  0x8c   : > { %1966 = vmatmul.bf16.vlgmr.msra.gmra.mxu1 %v2788_v57  ;;  %v1692_v57 = vrot.slane %v1690_v45, 5 }
  0x8d   : > { %v1679_v2 = vor.u32 %v1678_v55, %v1675_v54 }
  0x8e   : > { %1543 = vmatmul.bf16.vlgmr.msra.gmra.mxu3 %v2668_v56  ;;  %1789 = vmatmul.bf16.vlgmr.msra.gmra.mxu0 %v1725_v62  ;;  %v1689_v56 = vrot.slane %v1687_v44, 4 }
  0x8f   : > { %v1680_v8 = vrot.slane %v1679_v2, 4 }
  0x90   : > { %v1693_v4 = vor.u32 %v1692_v57, %v1689_v56 }
  0x91   : > { %v1685_v16 = vsel %vm3169_vm2, %v1680_v8, %v1684_v9 }
  0x92   : > { %v1694_v10 = vrot.slane %v1693_v4, 4 }
  0x94   : > { %v1699_v17 = vsel %vm3169_vm2, %v1694_v10, %v1698_v11 }
  0x9b   : > { %1413 = vmatmul.bf16.gmra.mxu2 %v2600_v25  ;;  %v1723_v25 = vunpack.c.l.b16 %v1685_v16 }
  0x9c   : > { %1971 = vmatmul.bf16.gmra.mxu1 %v2792_v26  ;;  %v1724_v26 = vunpack.c.l.b16 %v1699_v17 }
  0x9e   : > { %1548 = vmatmul.bf16.gmra.mxu3 %v2672_v27  ;;  %1794 = vmatmul.bf16.gmra.mxu0 %v1726_v28  ;;  %v1728_v35 = vpack.c.b16 %v1724_v26, %v1723_v25 }
  0xa8   : > { %v416_v1 = vpop.f32.mrf.mxu0 }
  0xa9   : > { %v517_v62 = vpop.f32.mrf.mxu1 }
  0xaa   : > { %v518_v6 = vadd.f32 %v517_v62, %v416_v1 }
  0xab   : > { %1418 = vmatmul.bf16.gmra.mxu2 %v2604_v58 }
  0xac   : > { %1976 = vmatmul.bf16.gmra.mxu1 %v2796_v59 }
  0xae   : > { %1553 = vmatmul.bf16.gmra.mxu3 %v2676_v63  ;;  %1799 = vmatmul.bf16.gmra.mxu0 %v1727_v0  ;;  %v426_v7 = vpop.f32.mrf.mxu2 }
  0xb0   : > { %v418_v15 = vpop.f32.mrf.mxu0 }
  0xb1   : > { %v527_v12 = vpop.f32.mrf.mxu3  ;;  %v519_v14 = vpop.f32.mrf.mxu1 }
  0xb2   : > { %v3423_v13 = vadd.f32 %v527_v12, %v426_v7  ;;  %v520_v18 = vadd.f32 %v519_v14, %v418_v15 }
  0xb6   : > { %v428_v27 = vpop.f32.mrf.mxu2 }
  0xb8   : > { %v421_v36 = vpop.f32.mrf.mxu0 }
  0xb9   : > { %v529_v28 = vpop.f32.mrf.mxu3  ;;  %v522_v32 = vpop.f32.mrf.mxu1 }
  0xba   : > { %v530_v31 = vadd.f32 %v529_v28, %v428_v27  ;;  %v523_v33 = vadd.f32 %v522_v32, %v421_v36 }
  0xbb   : > { %1423 = vmatmul.bf16.gmra.mxu2 %v2608_v29 }
  0xbc   : > { %1981 = vmatmul.bf16.gmra.mxu1 %v2800_v30 }
  0xbe   : > { %1558 = vmatmul.bf16.gmra.mxu3 %v2680_v34  ;;  %1804 = vmatmul.bf16.gmra.mxu0 %v1728_v35  ;;  %v431_v37 = vpop.f32.mrf.mxu2 }
  0xc0   : > { %v423_v41 = vpop.f32.mrf.mxu0 }
  0xc1   : > { %v532_v38 = vpop.f32.mrf.mxu3  ;;  %v524_v40 = vpop.f32.mrf.mxu1 }
  0xc2   : > { %v533_v39 = vadd.f32 %v532_v38, %v431_v37  ;;  %v525_v42 = vadd.f32 %v524_v40, %v423_v41 }
  0xc6   : > { %v433_v43 = vpop.f32.mrf.mxu2 }
  0xc9   : > { %v534_v44 = vpop.f32.mrf.mxu3  ;;  %v1274_v46 = vpop.f32.mrf.mxu1 }
  0xca   : > { %v535_v45 = vadd.f32 %v534_v44, %v433_v43 }
  0xcb   : > { %v1028_v47 = vpop.f32.mrf.mxu0 }
  0xce   : > { %v758_v48 = vpop.f32.mrf.mxu2 }
  0xcf   : > { %v778_v49 = vadd.f32 %v758_v48, %v518_v6 }
  0xd1   : > { %v893_v50 = vpop.f32.mrf.mxu3  ;;  %v1276_v51 = vpop.f32.mrf.mxu1 }
  0xd2   : > { %v913_v52 = vadd.f32 %v893_v50, %v778_v49 }
  0xd3   : > { %v1030_v53 = vpop.f32.mrf.mxu0 }
  0xd4   : > { %v1048_v54 = vadd.f32 %v1028_v47, %v913_v52 }
  0xd6   : > { %v1294_v55 = vadd.f32 %v1274_v46, %v1048_v54  ;;  %v760_v56 = vpop.f32.mrf.mxu2 }
  0xd7   : > { %v779_v57 = vadd.f32 %v760_v56, %v520_v18 }
  0xd9   : > { %v895_v58 = vpop.f32.mrf.mxu3  ;;  %v1279_v59 = vpop.f32.mrf.mxu1 }
  0xda   : > { %v914_v60 = vadd.f32 %v895_v58, %v779_v57 }
  0xdb   : > { %v1033_v61 = vpop.f32.mrf.mxu0 }
  0xdc   : > { %v1049_v62 = vadd.f32 %v1030_v53, %v914_v60 }
  0xde   : > { %v3435_v63 = vadd.f32 %v1276_v51, %v1049_v62  ;;  %v763_v0 = vpop.f32.mrf.mxu2 }
  0xdf   : > { %v780_v1 = vadd.f32 %v763_v0, %v523_v33 }
  0xe1   : > { %v898_v2 = vpop.f32.mrf.mxu3  ;;  %v1281_v3 = vpop.f32.mrf.mxu1 }
  0xe2   : > { %v915_v4 = vadd.f32 %v898_v2, %v780_v1 }
  0xe3   : > { %v1035_v5 = vpop.f32.mrf.mxu0 }
  0xe4   : > { %v1050_v6 = vadd.f32 %v1033_v61, %v915_v4 }
  0xe6   : > { %v3437_v7 = vadd.f32 %v1279_v59, %v1050_v6  ;;  %v765_v8 = vpop.f32.mrf.mxu2 }
  0xe7   : > { %v781_v9 = vadd.f32 %v765_v8, %v525_v42 }
  0xe9   : > { %v900_v10 = vpop.f32.mrf.mxu3  ;;  %v1284_v11 = vpop.f32.mrf.mxu1 }
  0xea   : > { %v916_v12 = vadd.f32 %v900_v10, %v781_v9 }
  0xeb   : > { %v1038_v14 = vpop.f32.mrf.mxu0 }
  0xec   : > { %v1051_v15 = vadd.f32 %v1035_v5, %v916_v12 }
  0xee   : > { %v3439_v16 = vadd.f32 %v1281_v3, %v1051_v15  ;;  %v768_v17 = vpop.f32.mrf.mxu2 }
  0xef   : > { %v782_v18 = vadd.f32 %v768_v17, %v3423_v13 }
  0xf1   : > { %v903_v19 = vpop.f32.mrf.mxu3  ;;  %v1286_v20 = vpop.f32.mrf.mxu1 }
  0xf2   : > { %v917_v21 = vadd.f32 %v903_v19, %v782_v18 }
  0xf3   : > { %v1040_v22 = vpop.f32.mrf.mxu0 }
  0xf4   : > { %v1052_v23 = vadd.f32 %v1038_v14, %v917_v21 }
  0xf6   : > { %v3442_v24 = vadd.f32 %v1284_v11, %v1052_v23  ;;  %v770_v25 = vpop.f32.mrf.mxu2 }
  0xf7   : > { %v783_v26 = vadd.f32 %v770_v25, %v530_v31 }
  0xf9   : > { %v905_v27 = vpop.f32.mrf.mxu3  ;;  %v1289_v28 = vpop.f32.mrf.mxu1 }
  0xfa   : > { %v918_v29 = vadd.f32 %v905_v27, %v783_v26 }
  0xfb   : > { %v1043_v30 = vpop.f32.mrf.mxu0 }
  0xfc   : > { %v1053_v32 = vadd.f32 %v1040_v22, %v918_v29 }
  0xfe   : > { %v3444_v34 = vadd.f32 %v1286_v20, %v1053_v32  ;;  %v773_v35 = vpop.f32.mrf.mxu2 }
  0xff   : > { %v784_v36 = vadd.f32 %v773_v35, %v533_v39 }
 0x101   : > { %v908_v13 = vpop.f32.mrf.mxu3  ;;  %v1291_v33 = vpop.f32.mrf.mxu1 }
 0x102   : > { %v919_v37 = vadd.f32 %v908_v13, %v784_v36 }
 0x103   : > { %v1045_v38 = vpop.f32.mrf.mxu0 }
 0x104   : > { %v1054_v40 = vadd.f32 %v1043_v30, %v919_v37 }
 0x106   : > { %v3447_v41 = vadd.f32 %v1289_v28, %v1054_v40  ;;  %v775_v42 = vpop.f32.mrf.mxu2 }
 0x107   : > { %v785_v31 = vadd.f32 %v775_v42, %v535_v45 }
 0x109   : > { %v910_v43 = vpop.f32.mrf.mxu3  ;;  %v3454_v44 = vpop.f32.mrf.mxu1 }
 0x10a   : > { %v920_v39 = vadd.f32 %v910_v43, %v785_v31  ;;  %1987 = vst [vmem:[%s3452_s17] sm:$0xff] %v3454_v44 }
 0x10b   : > { %v1790_v46 = vpop.f32.mrf.mxu0 }
 0x10c   : > { %v1055_v47 = vadd.f32 %v1045_v38, %v920_v39 }
 0x10e   : > { %v3458_v48 = vadd.f32 %v1291_v33, %v1055_v47  ;;  %v1409_v49 = vpop.f32.mrf.mxu2 }
 0x10f   : > { %v1429_v50 = vadd.f32 %v1409_v49, %v1294_v55 }
 0x111   : > { %v1544_v51 = vpop.f32.mrf.mxu3  ;;  %v1969_v52 = vpop.f32.mrf.mxu1 }
 0x112   : > { %v1564_v53 = vadd.f32 %v1544_v51, %v1429_v50  ;;  %1988 = vst [vmem:[%s3452_s17 + $0x8] sm:$0xff] %v1969_v52  ;;  %v2010_v30 = vmul.f32 %v1969_v52, %v1969_v52  ;;  %v1995_v36 = vadd.f32 %v1969_v52, %v3454_v44 }
 0x113   : > { %v1792_v45 = vpop.f32.mrf.mxu0 }
 0x114   : > { %v1810_v54 = vadd.f32 %v1790_v46, %v1564_v53 }
 0x116   : > { %1818 = vst [vmem:[%s3464_s20] sm:$0xff] %v1810_v54  ;;  %v1411_v56 = vpop.f32.mrf.mxu2  ;;  %v1840_v62 = vmul.f32 %v1810_v54, %v1810_v54 }
 0x117   : > { %v1430_v57 = vadd.f32 %v1411_v56, %v3435_v63 }
 0x119   : > { %v1546_v58 = vpop.f32.mrf.mxu3  ;;  %v1972_v55 = vpop.f32.mrf.mxu1 }
 0x11a   : > { %v1565_v59 = vadd.f32 %v1546_v58, %v1430_v57  ;;  %1989 = vst [vmem:[%s3452_s17 + $0x10] sm:$0xff] %v1972_v55  ;;  %v2011_v35 = vmul.f32 %v1972_v55, %v1972_v55  ;;  %v1996_v42 = vadd.f32 %v1995_v36, %v1972_v55 }
 0x11b   : > { %v1795_v60 = vpop.f32.mrf.mxu0 }
 0x11c   : > { %v1811_v61 = vadd.f32 %v1792_v45, %v1565_v59 }
 0x11e   : > { %1819 = vst [vmem:[%s3464_s20 + $0x8] sm:$0xff] %v1811_v61  ;;  %v1826_v0 = vadd.f32 %v1811_v61, %v1810_v54  ;;  %v1841_v1 = vmul.f32 %v1811_v61, %v1811_v61  ;;  %v1414_v2 = vpop.f32.mrf.mxu2 }
 0x11f   : > { %v1431_v4 = vadd.f32 %v1414_v2, %v3437_v7 }
 0x120   : > { %v1848_v3 = vadd.f32 %v1841_v1, %v1840_v62 }
 0x121   : > { %v1549_v5 = vpop.f32.mrf.mxu3  ;;  %v1974_v6 = vpop.f32.mrf.mxu1 }
 0x122   : > { %v1566_v63 = vadd.f32 %v1549_v5, %v1431_v4  ;;  %1990 = vst [vmem:[%s3452_s17 + $0x18] sm:$0xff] %v1974_v6  ;;  %v2012_v38 = vmul.f32 %v1974_v6, %v1974_v6  ;;  %v1997_v50 = vadd.f32 %v1996_v42, %v1974_v6 }
 0x123   : > { %v1797_v8 = vpop.f32.mrf.mxu0 }
 0x124   : > { %v1812_v9 = vadd.f32 %v1795_v60, %v1566_v63 }
 0x126   : > { %1820 = vst [vmem:[%s3464_s20 + $0x10] sm:$0xff] %v1812_v9  ;;  %v1827_v10 = vadd.f32 %v1826_v0, %v1812_v9  ;;  %v1842_v11 = vmul.f32 %v1812_v9, %v1812_v9  ;;  %v1416_v12 = vpop.f32.mrf.mxu2 }
 0x127   : > { %v1432_v15 = vadd.f32 %v1416_v12, %v3439_v16  ;;  %v2009_v16 = vmul.f32 %v3454_v44, %v3454_v44 }
 0x128   : > { %v1849_v14 = vadd.f32 %v1848_v3, %v1842_v11 }
 0x129   : > { %v1551_v17 = vpop.f32.mrf.mxu3  ;;  %v1977_v18 = vpop.f32.mrf.mxu1  ;;  %v2017_v37 = vadd.f32 %v2010_v30, %v2009_v16 }
 0x12a   : > { %v1567_v19 = vadd.f32 %v1551_v17, %v1432_v15  ;;  %1991 = vst [vmem:[%s3452_s17 + $0x20] sm:$0xff] %v1977_v18  ;;  %v2013_v47 = vmul.f32 %v1977_v18, %v1977_v18  ;;  %v1998_v52 = vadd.f32 %v1997_v50, %v1977_v18 }
 0x12b   : > { %v1800_v20 = vpop.f32.mrf.mxu0  ;;  %v2018_v46 = vadd.f32 %v2017_v37, %v2011_v35 }
 0x12c   : > { %v1813_v7 = vadd.f32 %v1797_v8, %v1567_v19 }
 0x12d   : > { %v2019_v44 = vadd.f32 %v2018_v46, %v2012_v38 }
 0x12e   : > { %1821 = vst [vmem:[%s3464_s20 + $0x18] sm:$0xff] %v1813_v7  ;;  %v1828_v21 = vadd.f32 %v1827_v10, %v1813_v7  ;;  %v1843_v22 = vmul.f32 %v1813_v7, %v1813_v7  ;;  %v1419_v23 = vpop.f32.mrf.mxu2 }
 0x12f   : > { %v1433_v26 = vadd.f32 %v1419_v23, %v3442_v24  ;;  %v2020_v54 = vadd.f32 %v2019_v44, %v2013_v47 }
 0x130   : > { %v1850_v25 = vadd.f32 %v1849_v14, %v1843_v22 }
 0x131   : > { %v1554_v27 = vpop.f32.mrf.mxu3  ;;  %v1979_v28 = vpop.f32.mrf.mxu1 }
 0x132   : > { %v1568_v29 = vadd.f32 %v1554_v27, %v1433_v26  ;;  %1992 = vst [vmem:[%s3452_s17 + $0x28] sm:$0xff] %v1979_v28  ;;  %v2014_v53 = vmul.f32 %v1979_v28, %v1979_v28  ;;  %v1999_v56 = vadd.f32 %v1998_v52, %v1979_v28 }
 0x133   : > { %v1802_v40 = vpop.f32.mrf.mxu0 }
 0x134   : > { %v1814_v32 = vadd.f32 %v1800_v20, %v1568_v29 }
 0x136   : > { %1822 = vst [vmem:[%s3464_s20 + $0x20] sm:$0xff] %v1814_v32  ;;  %v1829_v13 = vadd.f32 %v1828_v21, %v1814_v32  ;;  %v1844_v33 = vmul.f32 %v1814_v32, %v1814_v32  ;;  %v1421_v24 = vpop.f32.mrf.mxu2 }
 0x137   : > { %v1434_v43 = vadd.f32 %v1421_v24, %v3444_v34  ;;  %v2021_v34 = vadd.f32 %v2020_v54, %v2014_v53 }
 0x138   : > { %v1851_v31 = vadd.f32 %v1850_v25, %v1844_v33 }
 0x139   : > { %v1556_v39 = vpop.f32.mrf.mxu3  ;;  %v1982_v49 = vpop.f32.mrf.mxu1 }
 0x13a   : > { %v1569_v51 = vadd.f32 %v1556_v39, %v1434_v43  ;;  %1993 = vst [vmem:[%s3452_s17 + $0x30] sm:$0xff] %v1982_v49  ;;  %v2015_v55 = vmul.f32 %v1982_v49, %v1982_v49  ;;  %v2000_v61 = vadd.f32 %v1999_v56, %v1982_v49 }
 0x13b   : > { %v1805_v1 = vpop.f32.mrf.mxu0 }
 0x13c   : > { %v1815_v45 = vadd.f32 %v1802_v40, %v1569_v51  ;;  %v2022_v3 = vadd.f32 %v2021_v34, %v2015_v55 }
 0x13e   : > { %1823 = vst [vmem:[%s3464_s20 + $0x28] sm:$0xff] %v1815_v45  ;;  %v1830_v57 = vadd.f32 %v1829_v13, %v1815_v45  ;;  %v1845_v58 = vmul.f32 %v1815_v45, %v1815_v45  ;;  %v1424_v59 = vpop.f32.mrf.mxu2 }
 0x13f   : > { %v1435_v62 = vadd.f32 %v1424_v59, %v3447_v41 }
 0x140   : > { %v1852_v60 = vadd.f32 %v1851_v31, %v1845_v58 }
 0x141   : > { %v1559_v0 = vpop.f32.mrf.mxu3  ;;  %v1984_v2 = vpop.f32.mrf.mxu1 }
 0x142   : > { %v1570_v4 = vadd.f32 %v1559_v0, %v1435_v62  ;;  %1994 = vst [vmem:[%s3452_s17 + $0x38] sm:$0xff] %v1984_v2  ;;  %v2001_v5 = vadd.f32 %v2000_v61, %v1984_v2  ;;  %v2016_v6 = vmul.f32 %v1984_v2, %v1984_v2 }
 0x143   : > { %v1807_v23 = vpop.f32.mrf.mxu0 }
 0x144   : > { %v1816_v63 = vadd.f32 %v1805_v1, %v1570_v4  ;;  %v2002_v8 = vrot.slane %v2001_v5, 4  ;;  %v2023_v9 = vadd.f32 %v2022_v3, %v2016_v6 }
 0x146   : > { %1824 = vst [vmem:[%s3464_s20 + $0x30] sm:$0xff] %v1816_v63  ;;  %v1831_v10 = vadd.f32 %v1830_v57, %v1816_v63  ;;  %v1846_v11 = vmul.f32 %v1816_v63, %v1816_v63  ;;  %v2003_v12 = vadd.f32 %v2002_v8, %v2001_v5  ;;  %v2024_v14 = vrot.slane %v2023_v9, 4  ;;  %v1426_v15 = vpop.f32.mrf.mxu2 }
 0x147   : > { %v1436_v19 = vadd.f32 %v1426_v15, %v3458_v48 }
 0x148   : > { %v1853_v17 = vadd.f32 %v1852_v60, %v1846_v11  ;;  %v2004_v41 = vrot.slane %v2003_v12, 2  ;;  %v2025_v18 = vadd.f32 %v2024_v14, %v2023_v9 }
 0x149   : > { %v1561_v7 = vpop.f32.mrf.mxu3 }
 0x14a   : > { %v2005_v20 = vadd.f32 %v2004_v41, %v2003_v12  ;;  %v2026_v21 = vrot.slane %v2025_v18, 2  ;;  %v1571_v22 = vadd.f32 %v1561_v7, %v1436_v19 }
 0x14c   : > { %v2006_v25 = vrot.slane %v2005_v20, 1  ;;  %v2027_v26 = vadd.f32 %v2026_v21, %v2025_v18  ;;  %v1817_v27 = vadd.f32 %v1807_v23, %v1571_v22 }
 0x14e   : > { %v2007_v28 = vadd.f32 %v2006_v25, %v2005_v20  ;;  %v2028_v29 = vrot.slane %v2027_v26, 1  ;;  %1825 = vst [vmem:[%s3464_s20 + $0x38] sm:$0xff] %v1817_v27  ;;  %v1832_v16 = vadd.f32 %v1831_v10, %v1817_v27  ;;  %v1847_v30 = vmul.f32 %v1817_v27, %v1817_v27 }
 0x150   : > { %2008 = vst [vmem:[%s284_s26] sm:$0x1] %v2007_v28  ;;  %v2029_v48 = vadd.f32 %v2028_v29, %v2027_v26  ;;  %v1833_v32 = vrot.slane %v1832_v16, 4  ;;  %v1854_v35 = vadd.f32 %v1853_v17, %v1847_v30 }
 0x152   : > { %2030 = vst [vmem:[%s284_s26 + $0x1] sm:$0x1] %v2029_v48  ;;  %v1834_v36 = vadd.f32 %v1833_v32, %v1832_v16  ;;  %v1855_v13 = vrot.slane %v1854_v35, 4 }
 0x154   : > { %v1835_v33 = vrot.slane %v1834_v36, 2  ;;  %v1856_v37 = vadd.f32 %v1855_v13, %v1854_v35 }
 0x156   : > { %v1836_v38 = vadd.f32 %v1835_v33, %v1834_v36  ;;  %v1857_v40 = vrot.slane %v1856_v37, 2 }
 0x158   : > { %v1837_v24 = vrot.slane %v1836_v38, 1  ;;  %v1858_v42 = vadd.f32 %v1857_v40, %v1856_v37 }
 0x15a   : > { %v1838_v31 = vadd.f32 %v1837_v24, %v1836_v38  ;;  %v1859_v43 = vrot.slane %v1858_v42, 1 }
 0x15c   : > { %1839 = vst [vmem:[%s275_s28] sm:$0x1] %v1838_v31  ;;  %v1860_v39 = vadd.f32 %v1859_v43, %v1858_v42 }
 0x15e   : > { %1861 = vst [vmem:[%s275_s28 + $0x1] sm:$0x1] %v1860_v39 }
 0x15f PF: > { %s17_s21 = sadd.s32 1, %s2976_s21  }
 0x160   : > { %p14_p4 = scmp.ge.s32.totalorder %s17_s21, 4  }
 0x162   :  { %16 = sbr.rel (!%p14_p4) target bundleno = 1 (0x1), region = 111 }

// kernel: residual_block_forward.4
= control target key start
LH: loop header
LB: loop body
LE: loop exit
PB: predicated region body
PF: predicated region fallthrough
CT: control target
= control target key end

     0   :  { %s2866_s18 = smov 0   ;;  %s3485_s0 = inlined_call_operand.vmem [shape: f32[2,8,8,128], index: 0, kind: input, shape index: {}]   ;;  %s3486_s1 = inlined_call_operand.vmem [shape: bf16[9,128,128], index: 1, kind: input, shape index: {}]   ;;  %s3487_s2 = inlined_call_operand.vmem [shape: f32[1,128], index: 2, kind: input, shape index: {}]   ;;  %s3488_s3 = inlined_call_operand.vmem [shape: f32[1,128], index: 3, kind: input, shape index: {}]   ;;  %s3489_s4 = inlined_call_operand.vmem [shape: f32[2,8,8,128], index: 4, kind: output, shape index: {0}]   ;;  %s3490_s5 = inlined_call_operand.vmem [shape: f32[2,2,128], index: 5, kind: output, shape index: {1}]  }
   0x1 LB: > { %s2214_s19 = sadd.s32 4294967295, %s2833_s18   ;;  %p2218_p0 = scmp.ge.s32.totalorder %s2833_s18, 1  ;;  %s2833_s18 = sphi %s2866_s18, %s16_s18  }
   0x2   : > { %p190_p1 = scmp.lt.s32.totalorder %s2833_s18, 3 }
   0x4   : > { %p191_p2 = pnand %p2218_p0, %p190_p1 }
   0x5   : > { %p222_p3 = scmp.lt.s32.totalorder (!%p191_p2), %s2214_s19, 1 }
   0x6   : > { %194 = sbr.rel (%p191_p2) target bundleno = 357 (0x165), region = 36 }
   0xb   : > { %v2735_v0 = vld [vmem:[%s3486_s1 + $0x78] sm:$0xff]  ;;  %v2835_v2 = vmov 0   ;;  %v2734_v3 = vld [vmem:[%s3486_s1 + $0x70] sm:$0xff]  ;;  %s3500_s19 = smov (!%p222_p3, %s2214_s19), 1  ;;  %v2733_v6 = vld [vmem:[%s3486_s1 + $0x68] sm:$0xff]  ;;  %vm386_vm0 = vcmask 1043456  }
   0xc   : > { %v2743_v1 = vld [vmem:[%s3486_s1 + $0xb8] sm:$0xff]  ;;  %293 = vst [vmem:[#allocation2 + $0x20] sm:$0xf] %v2835_v2  ;;  %2800 = vmatpush.bf16.msra.mxu1 %v2735_v0  ;;  %668 = vmatpush.bf16.msra.mxu0 %v2735_v0  ;;  %v2742_v4 = vld [vmem:[%s3486_s1 + $0xb0] sm:$0xff]  ;;  %s2714_s30 = sshll.u32 %s3500_s19, 6  ;;  %v2741_v10 = vld [vmem:[%s3486_s1 + $0xa8] sm:$0xff] }
   0xd   : > { %294 = vst [vmem:[#allocation2 + $0x24] sm:$0x1] %v2835_v2  ;;  %938 = vmatpush.bf16.msra.mxu2 %v2743_v1  ;;  %v2755_v5 = vld [vmem:[%s3486_s1 + $0xf8] sm:$0xff]  ;;  %v2754_v7 = vld [vmem:[%s3486_s1 + $0xf0] sm:$0xff]  ;;  %s2907_s12 = scalar_lea.vmem %s3485_s0, %s2714_s30  ;;  %v2917_v11 = vld [vmem:[%s3487_s2] ss:$0 sm:$0xff]  ;;  %s3456_s23 = scalar_lea.vmem %s3489_s4, %s2714_s30 }
   0xe   : > { %295 = vst [vmem:[#allocation2 + $0x28] sm:$0xf] %v2835_v2  ;;  %1072 = vmatpush.bf16.msra.mxu3 %v2755_v5  ;;  %v242_v8 = vld [vmem:[%s2907_s12 + $0x18] sm:$0xff]  ;;  %v243_v9 = vld [vmem:[%s2907_s12 + $0x20] sm:$0xff]  ;;  %v2753_v13 = vld [vmem:[%s3486_s1 + $0xe8] sm:$0xff]  ;;  %vm392_vm1 = vcmask 1040384  }
   0xf   : > { %296 = vst [vmem:[#allocation2 + $0x2c] sm:$0x1] %v2835_v2  ;;  %v2922_v12 = vld [vmem:[%s3488_s3] ss:$0 sm:$0xff]  ;;  %v253_v14 = vmul.f32 %v2917_v11, %v242_v8  ;;  %v254_v15 = vmul.f32 %v2917_v11, %v243_v9  ;;  %v244_v19 = vld [vmem:[%s2907_s12 + $0x28] sm:$0xff]  ;;  %v245_v23 = vld [vmem:[%s2907_s12 + $0x30] sm:$0xff] }
  0x10   : > { %2801 = vmatpush.bf16.msra.mxu1 %v2734_v3  ;;  %669 = vmatpush.bf16.msra.mxu0 %v2734_v3  ;;  %285 = vst [vmem:[#allocation2] sm:$0xf] %v2835_v2  ;;  %v239_v16 = vld [vmem:[%s2907_s12] sm:$0xff]  ;;  %v255_v24 = vmul.f32 %v2917_v11, %v244_v19  ;;  %v240_v26 = vld [vmem:[%s2907_s12 + $0x8] sm:$0xff]  ;;  %v2731_v27 = vld [vmem:[%s3486_s1 + $0x58] sm:$0xff]  ;;  %v256_v32 = vmul.f32 %v2917_v11, %v245_v23  ;;  %vm822_vm8 = vcmask 1042432  }
  0x11   : > { %939 = vmatpush.bf16.msra.mxu2 %v2742_v4  ;;  %286 = vst [vmem:[#allocation2 + $0x4] sm:$0x1] %v2835_v2  ;;  %v2732_v17 = vld [vmem:[%s3486_s1 + $0x60] sm:$0xff]  ;;  %v250_v18 = vmul.f32 %v2917_v11, %v239_v16  ;;  %v264_v21 = vadd.f32 %v2922_v12, %v253_v14  ;;  %v265_v22 = vadd.f32 %v2922_v12, %v254_v15  ;;  %v2739_v30 = vld [vmem:[%s3486_s1 + $0x98] sm:$0xff]  ;;  %vm387_vm2 = vsmask.f32 7938 }
  0x12   : > { %1073 = vmatpush.bf16.msra.mxu3 %v2754_v7  ;;  %287 = vst [vmem:[#allocation2 + $0x8] sm:$0xf] %v2835_v2  ;;  %v2740_v20 = vld [vmem:[%s3486_s1 + $0xa0] sm:$0xff]  ;;  %v266_v33 = vadd.f32 %v2922_v12, %v255_v24  ;;  %vm393_vm3 = vsmask.f32 256  ;;  %v241_v37 = vld [vmem:[%s2907_s12 + $0x10] sm:$0xff]  ;;  %v251_v38 = vmul.f32 %v2917_v11, %v240_v26  ;;  %vm2981_vm6 = vmand %vm386_vm0, %vm387_vm2  ;;  %v2989_v60 = vadd.f32 %v2922_v12, %v256_v32 }
  0x13   : > { %288 = vst [vmem:[#allocation2 + $0xc] sm:$0x1] %v2835_v2  ;;  %v261_v25 = vadd.f32 %v2922_v12, %v250_v18  ;;  %v272_v28 = vmax.f32 %v264_v21, 0.0  ;;  %v273_v29 = vmax.f32 %v265_v22, 0.0  ;;  %v2752_v36 = vld [vmem:[%s3486_s1 + $0xe0] sm:$0xff]  ;;  %v2730_v39 = vld [vmem:[%s3486_s1 + $0x50] sm:$0xff]  ;;  %v2977_v54 = vmul.f32 %v2917_v11, %v241_v37  ;;  %vm2996_vm7 = vmand %vm392_vm1, %vm393_vm3 }
  0x14   : > { %2802 = vmatpush.bf16.msra.mxu1 %v2733_v6  ;;  %670 = vmatpush.bf16.msra.mxu0 %v2733_v6  ;;  %289 = vst [vmem:[#allocation2 + $0x10] sm:$0xf] %v2835_v2  ;;  %v2738_v47 = vld [vmem:[%s3486_s1 + $0x90] sm:$0xff]  ;;  %v410_v48 = vld [vmem:[#allocation2 + $0x20] sm:$0xf]  ;;  %v274_v53 = vmax.f32 %v266_v33, 0.0  ;;  %v2992_v61 = vadd.f32 %v2922_v12, %v251_v38 }
  0x15   : > { %940 = vmatpush.bf16.msra.mxu2 %v2741_v10  ;;  %290 = vst [vmem:[#allocation2 + $0x14] sm:$0x1] %v2835_v2  ;;  %v269_v31 = vmax.f32 %v261_v25, 0.0  ;;  %v280_v34 = vpack.c.bf16 %v272_v28, %v272_v28  ;;  %v281_v35 = vpack.c.bf16 %v273_v29, %v273_v29  ;;  %v413_v49 = vld [vmem:[#allocation2 + $0x24] sm:$0x1]  ;;  %v2751_v8 = vld [vmem:[%s3486_s1 + $0xd8] sm:$0xff] }
  0x16   : > { %1074 = vmatpush.bf16.msra.mxu3 %v2753_v13  ;;  %291 = vst [vmem:[#allocation2 + $0x18] sm:$0xf] %v2835_v2  ;;  %v416_v50 = vld [vmem:[#allocation2 + $0x28] sm:$0xf]  ;;  %vm472_vm4 = vsmask.f32 3328  ;;  %v282_v15 = vpack.c.bf16 %v274_v53, %v274_v53 }
  0x17   : > { %292 = vst [vmem:[#allocation2 + $0x1c] sm:$0x1] %v2835_v2  ;;  %v277_v40 = vpack.c.bf16 %v269_v31, %v269_v31  ;;  %v440_v41 = vld [vmem:[#allocation2] sm:$0xf]  ;;  %v330_v43 = vshrl.u32 %v280_v34, 16  ;;  %v333_v44 = vshll.u32 %v280_v34, 16 }
  0x18   : > { %2803 = vmatpush.bf16.msra.mxu1 %v2732_v17  ;;  %671 = vmatpush.bf16.msra.mxu0 %v2732_v17  ;;  %297 = vst [vmem:[#allocation2 + $0x30] sm:$0xf] %v2835_v2  ;;  %v2969_v42 = vld [vmem:[#allocation2 + $0x4] sm:$0x1]  ;;  %v338_v45 = vshrl.u32 %v281_v35, 16  ;;  %v341_v46 = vshll.u32 %v281_v35, 16 }
  0x19   : > { %941 = vmatpush.bf16.msra.mxu2 %v2740_v20  ;;  %298 = vst [vmem:[#allocation2 + $0x34] sm:$0x1] %v2835_v2  ;;  %vm473_vm5 = vsmask.f32 7440  ;;  %v306_v51 = vshrl.u32 %v277_v40, 16  ;;  %v309_v52 = vshll.u32 %v277_v40, 16 }
  0x1a   : > { %1075 = vmatpush.bf16.msra.mxu3 %v2752_v36  ;;  %299 = vst [vmem:[#allocation2 + $0x38] sm:$0xf] %v2835_v2  ;;  %v332_v55 = vrot.slane %v330_v43, 7  ;;  %v340_v56 = vrot.slane %v338_v45, 7  ;;  %v419_v58 = vld [vmem:[#allocation2 + $0x2c] sm:$0x1]  ;;  %vm3061_vm11 = vmor %vm472_vm4, %vm473_vm5 }
  0x1b   : > { %300 = vst [vmem:[#allocation2 + $0x3c] sm:$0x1] %v2835_v2  ;;  %v2986_v59 = vld [vmem:[#allocation2 + $0x8] sm:$0xf]  ;;  %v308_v63 = vrot.slane %v306_v51, 7  ;;  %v476_v0 = vshrl.u32 %v440_v41, 16 }
  0x1c   : > { %2804 = vmatpush.bf16.msra.mxu1 %v2731_v27  ;;  %672 = vmatpush.bf16.msra.mxu0 %v2731_v27  ;;  %301 = vst [vmem:[#allocation2 + $0x40] sm:$0xf] %v2835_v2  ;;  %v479_v1 = vshll.u32 %v440_v41, 16  ;;  %v485_v3 = vshll.u32 %v2969_v42, 16  ;;  %v335_v4 = vor.u32 %v333_v44, %v332_v55  ;;  %v336_v5 = vrot.slane %v332_v55, 4  ;;  %v2729_v9 = vld [vmem:[%s3486_s1 + $0x48] sm:$0xff] }
  0x1d   : > { %942 = vmatpush.bf16.msra.mxu2 %v2739_v30  ;;  %v343_v6 = vor.u32 %v341_v46, %v340_v56  ;;  %v344_v7 = vrot.slane %v340_v56, 4  ;;  %302 = vst [vmem:[#allocation2 + $0x44] sm:$0x1] %v2835_v2  ;;  %v311_v10 = vor.u32 %v309_v52, %v308_v63  ;;  %v478_v13 = vrot.slane %v476_v0, 4  ;;  %v2737_v19 = vld [vmem:[%s3486_s1 + $0x88] sm:$0xff]  ;;  %v2728_v22 = vld [vmem:[%s3486_s1 + $0x40] sm:$0xff] }
  0x1e   : > { %303 = vst [vmem:[#allocation2 + $0x48] sm:$0xf] %v2835_v2  ;;  %v481_v14 = vrot.slane %v479_v1, 5  ;;  %v411_v16 = vsel %vm2981_vm6, %v335_v4, %v410_v48  ;;  %v414_v17 = vsel %vm2996_vm7, %v336_v5, %v413_v49  ;;  %v312_v20 = vrot.slane %v308_v63, 4  ;;  %v798_v21 = vld [vmem:[#allocation2] sm:$0xe]  ;;  %1076 = vmatpush.bf16.msra.mxu3 %v2751_v8 }
  0x1f   : > { %v417_v18 = vsel %vm2981_vm6, %v343_v6, %v416_v50  ;;  %412 = vst [vmem:[#allocation2 + $0x20] sm:$0xf] %v411_v16  ;;  %v420_v23 = vsel %vm2996_vm7, %v344_v7, %v419_v58  ;;  %v390_v24 = vsel %vm2981_vm6, %v311_v10, %v2986_v59  ;;  %v395_v25 = vld [vmem:[#allocation2 + $0xc] sm:$0x1]  ;;  %v487_v27 = vrot.slane %v485_v3, 5  ;;  %v2750_v28 = vld [vmem:[%s3486_s1 + $0xd0] sm:$0xff] }
  0x20   : > { %2805 = vmatpush.bf16.msra.mxu1 %v2730_v39  ;;  %673 = vmatpush.bf16.msra.mxu0 %v2730_v39  ;;  %v482_v26 = vor.u32 %v481_v14, %v478_v13  ;;  %415 = vst [vmem:[#allocation2 + $0x24] sm:$0x1] %v414_v17  ;;  %vm823_vm9 = vcmask 1046532   ;;  %v2320_v29 = vrot.slane %v798_v21, 9  ;;  %v827_v30 = vrot.slane %v2969_v42, 5  ;;  %v2727_v36 = vld [vmem:[%s3486_s1 + $0x38] sm:$0xff] }
  0x21   : > { %943 = vmatpush.bf16.msra.mxu2 %v2738_v47  ;;  %418 = vst [vmem:[#allocation2 + $0x28] sm:$0xf] %v417_v18  ;;  %vm3031_vm10 = vmor %vm822_vm8, %vm823_vm9  ;;  %v275_v33 = vmax.f32 %v2989_v60, 0.0  ;;  %v346_v34 = vshrl.u32 %v282_v15, 16  ;;  %v349_v35 = vshll.u32 %v282_v15, 16  ;;  %v2736_v37 = vld [vmem:[%s3486_s1 + $0x80] sm:$0xff]  ;;  %v396_v38 = vsel %vm2996_vm7, %v312_v20, %v395_v25 }
  0x22   : > { %v483_v31 = vrot.slane %v482_v26, 4  ;;  %421 = vst [vmem:[#allocation2 + $0x2c] sm:$0x1] %v420_v23  ;;  %v3046_v39 = vadd.f32 %v2922_v12, %v2977_v54  ;;  %v2763_v40 = vld [vmem:[%s3486_s1 + $0x138] sm:$0xff]  ;;  %v3054_v41 = vsel %vm3031_vm10, %v2320_v29, %v827_v30  ;;  %1077 = vmatpush.bf16.msra.mxu3 %v2750_v28  ;;  %v2749_v42 = vld [vmem:[%s3486_s1 + $0xc8] sm:$0xff]  ;;  %v270_v47 = vmax.f32 %v2992_v61, 0.0 }
  0x23   : > { %304 = vst [vmem:[#allocation2 + $0x4c] sm:$0x1] %v2835_v2  ;;  %v283_v43 = vpack.c.bf16 %v275_v33, %v275_v33  ;;  %v348_v44 = vrot.slane %v346_v34, 7  ;;  %v2726_v2 = vld [vmem:[%s3486_s1 + $0x30] sm:$0xff]  ;;  %v874_v54 = vunpack.c.l.b16 %v3054_v41  ;;  %v2783_v58 = vld [vmem:[%s3486_s1 + $0x1b8] sm:$0xff]  ;;  %v2748_v3 = vld [vmem:[%s3486_s1 + $0xc0] sm:$0xff] }
  0x24   : > { %2806 = vmatpush.bf16.msra.mxu1 %v2729_v9  ;;  %674 = vmatpush.bf16.msra.mxu0 %v2729_v9  ;;  %391 = vst [vmem:[#allocation2 + $0x8] sm:$0xf] %v390_v24  ;;  %v422_v46 = vld [vmem:[#allocation2 + $0x30] sm:$0xf]  ;;  %v488_v48 = vsel %vm3061_vm11, %v483_v31, %v487_v27  ;;  %v425_v52 = vld [vmem:[#allocation2 + $0x34] sm:$0x1]  ;;  %v3094_v9 = vpack.c.bf16 %v270_v47, %v270_v47 }
  0x25   : > { %944 = vmatpush.bf16.msra.mxu2 %v2737_v19  ;;  %397 = vst [vmem:[#allocation2 + $0xc] sm:$0x1] %v396_v38  ;;  %v351_v49 = vor.u32 %v349_v35, %v348_v44  ;;  %v352_v50 = vrot.slane %v348_v44, 4  ;;  %v354_v51 = vshrl.u32 %v283_v43, 16  ;;  %v2762_v55 = vld [vmem:[%s3486_s1 + $0x130] sm:$0xff]  ;;  %v357_v56 = vshll.u32 %v283_v43, 16 }
  0x26   : > { %v444_v53 = vld [vmem:[#allocation2 + $0x20] sm:$0xf]  ;;  %v271_v59 = vmax.f32 %v3046_v39, 0.0  ;;  %1078 = vmatpush.bf16.msra.mxu3 %v2749_v42  ;;  %v3087_v6 = vunpack.c.l.b16 %v488_v48  ;;  %v2725_v7 = vld [vmem:[%s3486_s1 + $0x28] sm:$0xff]  ;;  %v428_v17 = vld [vmem:[#allocation2 + $0x38] sm:$0xf] }
  0x27   : > { %v3079_v60 = vld [vmem:[#allocation2 + $0x24] sm:$0x1]  ;;  %v532_v61 = vshrl.u32 %v444_v53, 16  ;;  %v535_v63 = vshll.u32 %v444_v53, 16  ;;  %v356_v0 = vrot.slane %v354_v51, 7  ;;  %v423_v1 = vsel %vm2981_vm6, %v351_v49, %v422_v46  ;;  %v2761_v21 = vld [vmem:[%s3486_s1 + $0x128] sm:$0xff] }
  0x28   : > { %2807 = vmatpush.bf16.msra.mxu1 %v2728_v22  ;;  %675 = vmatpush.bf16.msra.mxu0 %v2728_v22  ;;  %v445_v4 = vld [vmem:[#allocation2 + $0x28] sm:$0xf]  ;;  %v541_v5 = vshll.u32 %v3079_v60, 16  ;;  %424 = vst [vmem:[#allocation2 + $0x30] sm:$0xf] %v423_v1  ;;  %v426_v8 = vsel %vm2996_vm7, %v352_v50, %v425_v52  ;;  %v3102_v29 = vpack.c.bf16 %v271_v59, %v271_v59  ;;  %v2724_v43 = vld [vmem:[%s3486_s1 + $0x20] sm:$0xff] }
  0x29   : > { %945 = vmatpush.bf16.msra.mxu2 %v2736_v37  ;;  %v3096_v10 = vld [vmem:[#allocation2 + $0x2c] sm:$0x1]  ;;  %v534_v13 = vrot.slane %v532_v61, 4  ;;  %v537_v14 = vrot.slane %v535_v63, 5  ;;  %v546_v15 = vshrl.u32 %v445_v4, 16  ;;  %v549_v16 = vshll.u32 %v445_v4, 16 }
  0x2a   : > { %v431_v18 = vld [vmem:[#allocation2 + $0x3c] sm:$0x1]  ;;  %v543_v19 = vrot.slane %v541_v5, 5  ;;  %v555_v20 = vshll.u32 %v3096_v10, 16  ;;  %v359_v22 = vor.u32 %v357_v56, %v356_v0  ;;  %v360_v23 = vrot.slane %v356_v0, 4  ;;  %1079 = vmatpush.bf16.msra.mxu3 %v2748_v3  ;;  %v2760_v46 = vld [vmem:[%s3486_s1 + $0x120] sm:$0xff] }
  0x2b   : > { %427 = vst [vmem:[#allocation2 + $0x34] sm:$0x1] %v426_v8  ;;  %v538_v24 = vor.u32 %v537_v14, %v534_v13  ;;  %v548_v25 = vrot.slane %v546_v15, 4  ;;  %v551_v26 = vrot.slane %v549_v16, 5  ;;  %v441_v27 = vld [vmem:[#allocation2 + $0x8] sm:$0xf] }
  0x2c   : > { %769 = vmatpush.bf16.msrb.mxu1 %v2727_v36  ;;  %1318 = vmatpush.bf16.msrb.mxu0 %v2763_v40  ;;  %v799_v28 = vld [vmem:[#allocation2 + $0x8] sm:$0xe]  ;;  %v557_v30 = vrot.slane %v555_v20, 5  ;;  %v465_v31 = vld [vmem:[#allocation2 + $0xc] sm:$0x1]  ;;  %v490_v33 = vshrl.u32 %v441_v27, 16  ;;  %v429_v44 = vsel %vm2981_vm6, %v359_v22, %v428_v17 }
  0x2d   : > { %1627 = vmatpush.bf16.msrb.mxu2 %v2783_v58  ;;  %v493_v34 = vshll.u32 %v441_v27, 16  ;;  %v2321_v35 = vrot.slane %v799_v28, 9  ;;  %v539_v36 = vrot.slane %v538_v24, 4  ;;  %v552_v37 = vor.u32 %v551_v26, %v548_v25  ;;  %430 = vst [vmem:[#allocation2 + $0x38] sm:$0xf] %v429_v44  ;;  %v2782_v8 = vld [vmem:[%s3486_s1 + $0x1b0] sm:$0xff] }
  0x2e   : > { %v499_v38 = vshll.u32 %v465_v31, 16  ;;  %v831_v39 = vrot.slane %v465_v31, 5  ;;  %v492_v40 = vrot.slane %v490_v33, 4  ;;  %v314_v63 = vshrl.u32 %v3094_v9, 16  ;;  %v2759_v41 = vld [vmem:[%s3486_s1 + $0x118] sm:$0xff]  ;;  %v2722_v22 = vld [vmem:[%s3486_s1 + $0x10] sm:$0xff] }
  0x2f   : > { %v495_v42 = vrot.slane %v493_v34, 5  ;;  %v544_v47 = vsel %vm3061_vm11, %v539_v36, %v543_v19  ;;  %v553_v48 = vrot.slane %v552_v37, 4  ;;  %v446_v51 = vld [vmem:[#allocation2 + $0x30] sm:$0xf]  ;;  %v317_v0 = vshll.u32 %v3094_v9, 16  ;;  %s2223_s30 = sshll.u32 %s3500_s19, 1 }
  0x30   : > { %770 = vmatpush.bf16.msrb.mxu1 %v2726_v2  ;;  %1319 = vmatpush.bf16.msrb.mxu0 %v2762_v55  ;;  %v432_v2 = vsel %vm2996_vm7, %v360_v23, %v431_v18  ;;  %v501_v49 = vrot.slane %v499_v38, 5  ;;  %v832_v50 = vsel %vm3031_vm10, %v2321_v35, %v831_v39  ;;  %v608_v52 = vunpack.c.l.b16 %v544_v47  ;;  %v398_v19 = vld [vmem:[#allocation2 + $0x10] sm:$0xf]  ;;  %v401_v24 = vld [vmem:[#allocation2 + $0x14] sm:$0x1]  ;;  %s235_s26 = scalar_lea.vmem %s3490_s5, %s2223_s30 }
  0x31   : > { %v496_v53 = vor.u32 %v495_v42, %v492_v40  ;;  %v875_v55 = vunpack.c.l.b16 %v832_v50  ;;  %433 = vst [vmem:[#allocation2 + $0x3c] sm:$0x1] %v432_v2  ;;  %v560_v56 = vshrl.u32 %v446_v51, 16  ;;  %v558_v58 = vsel %vm3061_vm11, %v553_v48, %v557_v30  ;;  %v404_v25 = vld [vmem:[#allocation2 + $0x18] sm:$0xf]  ;;  %1628 = vmatpush.bf16.msrb.mxu2 %v2782_v8  ;;  %v2758_v38 = vld [vmem:[%s3486_s1 + $0x110] sm:$0xff] }
  0x32   : > { %v3120_v59 = vld [vmem:[#allocation2 + $0x34] sm:$0x1]  ;;  %v563_v61 = vshll.u32 %v446_v51, 16  ;;  %v609_v1 = vunpack.c.l.b16 %v558_v58  ;;  %v316_v9 = vrot.slane %v314_v63, 7  ;;  %v322_v15 = vshrl.u32 %v3102_v29, 16  ;;  %v2721_v51 = vld [vmem:[%s3486_s1 + $0x8] sm:$0xff] }
  0x33   : > { %v497_v3 = vrot.slane %v496_v53, 4  ;;  %v882_v4 = vpack.c.b16 %v875_v55, %v874_v54  ;;  %v562_v5 = vrot.slane %v560_v56, 4  ;;  %v569_v14 = vshll.u32 %v3120_v59, 16  ;;  %v2791_v54 = vld [vmem:[%s3486_s1 + $0x1f8] sm:$0xff]  ;;  %v3172_v53 = vld [vmem:[#allocation2 + $0x8] sm:$0xf] }
  0x34   : > { %771 = vmatpush.bf16.msrb.mxu1 %v2725_v7  ;;  %1320 = vmatpush.bf16.msrb.mxu0 %v2761_v21  ;;  %v2723_v7 = vld [vmem:[%s3486_s1 + $0x18] sm:$0xff]  ;;  %v565_v13 = vrot.slane %v563_v61, 5  ;;  %v614_v16 = vpack.c.b16 %v609_v1, %v608_v52  ;;  %v325_v18 = vshll.u32 %v3102_v29, 16  ;;  %v319_v23 = vor.u32 %v317_v0, %v316_v9  ;;  %v2781_v29 = vld [vmem:[%s3486_s1 + $0x1a8] sm:$0xff]  ;;  %v2720_v63 = vld [vmem:[%s3486_s1] sm:$0xff] }
  0x35   : > { %v502_v17 = vsel %vm3061_vm11, %v497_v3, %v501_v49  ;;  %946 = vmatmul.bf16.vlgmr.msra.gmra.mxu2 %v882_v4  ;;  %v407_v26 = vld [vmem:[#allocation2 + $0x1c] sm:$0x1]  ;;  %1873 = vmatpush.bf16.msrb.mxu3 %v2791_v54  ;;  %v447_v27 = vld [vmem:[#allocation2 + $0x38] sm:$0xf]  ;;  %v571_v28 = vrot.slane %v569_v14, 5  ;;  %v320_v30 = vrot.slane %v316_v9, 4 }
  0x36   : > { %v605_v20 = vunpack.c.l.b16 %v502_v17  ;;  %v566_v21 = vor.u32 %v565_v13, %v562_v5  ;;  %686 = vmatmul.bf16.vlgmr.msra.gmra.mxu1 %v614_v16  ;;  %v324_v31 = vrot.slane %v322_v15, 7  ;;  %v574_v36 = vshrl.u32 %v447_v27, 16  ;;  %1629 = vmatpush.bf16.msrb.mxu2 %v2781_v29  ;;  %v2757_v52 = vld [vmem:[%s3486_s1 + $0x108] sm:$0xff]  ;;  %v2771_v0 = vld [vmem:[%s3486_s1 + $0x178] sm:$0xff]  ;;  %v2756_v1 = vld [vmem:[%s3486_s1 + $0x100] sm:$0xff] }
  0x37   : > { %v577_v37 = vshll.u32 %v447_v27, 16  ;;  %v402_v2 = vsel %vm2996_vm7, %v320_v30, %v401_v24  ;;  %v2394_v58 = vld [vmem:[#allocation2 + $0x8] sm:$0xf]  ;;  %v1126_v3 = vshrl.u32 %v3172_v53, 16  ;;  %v1129_v4 = vshll.u32 %v3172_v53, 16  ;;  %v2790_v16 = vld [vmem:[%s3486_s1 + $0x1f0] sm:$0xff] }
  0x38   : > { %772 = vmatpush.bf16.msrb.mxu1 %v2724_v43  ;;  %1321 = vmatpush.bf16.msrb.mxu0 %v2760_v46  ;;  %v612_v33 = vpack.c.b16 %v605_v20, %v3087_v6  ;;  %v3150_v34 = vld [vmem:[#allocation2 + $0x3c] sm:$0x1]  ;;  %v567_v35 = vrot.slane %v566_v21, 4  ;;  %v327_v40 = vor.u32 %v325_v18, %v324_v31  ;;  %v328_v42 = vrot.slane %v324_v31, 4  ;;  %403 = vst [vmem:[#allocation2 + $0x14] sm:$0x1] %v402_v2 }
  0x39   : > { %v583_v39 = vshll.u32 %v3150_v34, 16  ;;  %v399_v43 = vsel %vm2981_vm6, %v319_v23, %v398_v19  ;;  %v576_v6 = vrot.slane %v574_v36, 4  ;;  %v579_v44 = vrot.slane %v577_v37, 5  ;;  %v2770_v29 = vld [vmem:[%s3486_s1 + $0x170] sm:$0xff]  ;;  %1874 = vmatpush.bf16.msrb.mxu3 %v2790_v16  ;;  %v2779_v53 = vld [vmem:[%s3486_s1 + $0x198] sm:$0xff] }
  0x3a   : > { %676 = vmatmul.bf16.vlgmr.msra.gmra.mxu0 %v612_v33  ;;  %400 = vst [vmem:[#allocation2 + $0x10] sm:$0xf] %v399_v43  ;;  %v405_v46 = vsel %vm2981_vm6, %v327_v40, %v404_v25  ;;  %v408_v47 = vsel %vm2996_vm7, %v328_v42, %v407_v26  ;;  %v572_v48 = vsel %vm3061_vm11, %v567_v35, %v571_v28  ;;  %v2789_v43 = vld [vmem:[%s3486_s1 + $0x1e8] sm:$0xff] }
  0x3b   : > { %v580_v49 = vor.u32 %v579_v44, %v576_v6  ;;  %v585_v50 = vrot.slane %v583_v39, 5  ;;  %406 = vst [vmem:[#allocation2 + $0x18] sm:$0xf] %v405_v46  ;;  %v610_v56 = vunpack.c.l.b16 %v572_v48  ;;  %v2780_v39 = vld [vmem:[%s3486_s1 + $0x1a0] sm:$0xff]  ;;  %v3203_v46 = vld [vmem:[#allocation2 + $0xc] sm:$0x1] }
  0x3c   : > { %773 = vmatpush.bf16.msrb.mxu1 %v2723_v7  ;;  %1322 = vmatpush.bf16.msrb.mxu0 %v2759_v41  ;;  %409 = vst [vmem:[#allocation2 + $0x1c] sm:$0x1] %v408_v47  ;;  %v802_v48 = vld [vmem:[#allocation2 + $0x20] sm:$0xe] }
  0x3d   : > { %v581_v55 = vrot.slane %v580_v49, 4  ;;  %1630 = vmatpush.bf16.msrb.mxu2 %v2780_v39  ;;  %1875 = vmatpush.bf16.msrb.mxu3 %v2789_v43 }
  0x3f   : > { %v586_v61 = vsel %vm3061_vm11, %v581_v55, %v585_v50  ;;  %v466_v14 = vld [vmem:[#allocation2 + $0x14] sm:$0x1]  ;;  %v1128_v50 = vrot.slane %v1126_v3, 4  ;;  %v3214_v55 = vld [vmem:[%s3486_s1 + $0x238] sm:$0xff] }
  0x40   : > { %774 = vmatpush.bf16.msrb.mxu1 %v2722_v22  ;;  %1323 = vmatpush.bf16.msrb.mxu0 %v2758_v38  ;;  %v611_v5 = vunpack.c.l.b16 %v586_v61  ;;  %v513_v19 = vshll.u32 %v466_v14, 16  ;;  %v835_v21 = vrot.slane %v466_v14, 5  ;;  %v1131_v61 = vrot.slane %v1129_v4, 5 }
  0x41   : > { %v442_v7 = vld [vmem:[#allocation2 + $0x10] sm:$0xf]  ;;  %v1135_v14 = vshll.u32 %v3203_v46, 16  ;;  %1631 = vmatpush.bf16.msrb.mxu2 %v2779_v53  ;;  %v2767_v53 = vld [vmem:[%s3486_s1 + $0x158] sm:$0xff] }
  0x42   : > { %v2744_v8 = vld [vmem:[#allocation2 + $0xc] sm:$0xf0]  ;;  %v504_v9 = vshrl.u32 %v442_v7, 16  ;;  %v507_v15 = vshll.u32 %v442_v7, 16  ;;  %v615_v17 = vpack.c.b16 %v611_v5, %v610_v56  ;;  %v443_v18 = vld [vmem:[#allocation2 + $0x18] sm:$0xf]  ;;  %v1132_v16 = vor.u32 %v1131_v61, %v1128_v50 }
  0x43   : > { %v800_v13 = vld [vmem:[#allocation2 + $0x10] sm:$0xe]  ;;  %v2395_v41 = vor.u32 %v2744_v8, %v2394_v58  ;;  %v801_v20 = vld [vmem:[#allocation2 + $0x18] sm:$0xe]  ;;  %v467_v22 = vld [vmem:[#allocation2 + $0x1c] sm:$0x1] }
  0x44   : > { %775 = vmatpush.bf16.msrb.mxu1 %v2721_v51  ;;  %1324 = vmatpush.bf16.msrb.mxu0 %v2757_v52  ;;  %v2322_v54 = vrot.slane %v800_v13, 9  ;;  %v506_v23 = vrot.slane %v504_v9, 4  ;;  %v509_v24 = vrot.slane %v507_v15, 5  ;;  %v518_v25 = vshrl.u32 %v443_v18, 16  ;;  %v1111_v38 = vld [vmem:[#allocation2 + $0x10] sm:$0xf] }
  0x45   : > { %v521_v26 = vshll.u32 %v443_v18, 16  ;;  %1080 = vmatmul.bf16.vlgmr.msra.gmra.mxu3 %v2395_v41  ;;  %v515_v27 = vrot.slane %v513_v19, 5  ;;  %v527_v28 = vshll.u32 %v467_v22, 16  ;;  %v2323_v31 = vrot.slane %v801_v20, 9  ;;  %v2769_v52 = vld [vmem:[%s3486_s1 + $0x168] sm:$0xff] }
  0x46   : > { %v836_v30 = vsel %vm3031_vm10, %v2322_v54, %v835_v21  ;;  %v510_v33 = vor.u32 %v509_v24, %v506_v23  ;;  %v520_v35 = vrot.slane %v518_v25, 4  ;;  %v839_v37 = vrot.slane %v467_v22, 5  ;;  %691 = vmatmul.bf16.gmra.mxu1 %v615_v17  ;;  %v3218_v5 = vld [vmem:[#allocation2 + $0x14] sm:$0x1]  ;;  %v2745_v13 = vld [vmem:[#allocation2 + $0x1c] sm:$0xf0] }
  0x47   : > { %v523_v36 = vrot.slane %v521_v26, 5  ;;  %v529_v40 = vrot.slane %v527_v28, 5  ;;  %v876_v42 = vunpack.c.l.b16 %v836_v30  ;;  %v1140_v47 = vshrl.u32 %v1111_v38, 16  ;;  %v2398_v4 = vld [vmem:[#allocation2 + $0x18] sm:$0xf]  ;;  %v2788_v28 = vld [vmem:[%s3486_s1 + $0x1e0] sm:$0xff] }
  0x48   : > { %776 = vmatpush.bf16.msrb.mxu1 %v2720_v63  ;;  %1325 = vmatpush.bf16.msrb.mxu0 %v2756_v1  ;;  %v511_v6 = vrot.slane %v510_v33, 4  ;;  %v840_v2 = vsel %vm3031_vm10, %v2323_v31, %v839_v37  ;;  %v1143_v51 = vshll.u32 %v1111_v38, 16  ;;  %v2324_v15 = vrot.slane %v802_v48, 9  ;;  %v2274_v21 = vld [vmem:[#allocation2] sm:$0xf]  ;;  %v246_v26 = vld [vmem:[%s2907_s12 + $0x38] sm:$0xff] }
  0x49   : > { %v524_v44 = vor.u32 %v523_v36, %v520_v35  ;;  %v877_v49 = vunpack.c.l.b16 %v840_v2  ;;  %v1142_v63 = vrot.slane %v1140_v47, 4  ;;  %v843_v41 = vrot.slane %v3079_v60, 5  ;;  %v2716_v22 = vld [vmem:[#allocation2 + $0x4] sm:$0xf0]  ;;  %v1113_v24 = vld [vmem:[#allocation2 + $0x18] sm:$0xf]  ;;  %1876 = vmatpush.bf16.msrb.mxu3 %v2788_v28 }
  0x4a   : > { %v516_v56 = vsel %vm3061_vm11, %v511_v6, %v515_v27  ;;  %v1145_v7 = vrot.slane %v1143_v51, 5  ;;  %v1149_v18 = vshll.u32 %v3218_v5, 16  ;;  %v847_v19 = vrot.slane %v3096_v10, 5  ;;  %v1115_v25 = vld [vmem:[#allocation2 + $0x20] sm:$0xf]  ;;  %v2778_v30 = vld [vmem:[%s3486_s1 + $0x190] sm:$0xff] }
  0x4b   : > { %v525_v58 = vrot.slane %v524_v44, 4  ;;  %v606_v1 = vunpack.c.l.b16 %v516_v56  ;;  %v883_v3 = vpack.c.b16 %v877_v49, %v876_v42  ;;  %v2399_v23 = vor.u32 %v2745_v13, %v2398_v4  ;;  %v2768_v10 = vld [vmem:[%s3486_s1 + $0x160] sm:$0xff]  ;;  %v3244_v36 = vld [vmem:[%s3486_s1 + $0x230] sm:$0xff]  ;;  %1632 = vmatpush.bf16.msrb.mxu2 %v2778_v30  ;;  %v3256_v50 = vld [vmem:[#allocation2 + $0x1c] sm:$0x1] }
  0x4c   : > { %1492 = vmatpush.bf16.msra.mxu1 %v2771_v0  ;;  %v803_v0 = vld [vmem:[#allocation2 + $0x28] sm:$0xe]  ;;  %2047 = vmatpush.bf16.msra.mxu0 %v3214_v55  ;;  %v1146_v17 = vor.u32 %v1145_v7, %v1142_v63  ;;  %v1137_v27 = vrot.slane %v1135_v14, 5  ;;  %v844_v60 = vsel %vm3031_vm10, %v2324_v15, %v843_v41  ;;  %v1133_v31 = vrot.slane %v1132_v16, 4  ;;  %v3258_v51 = vld [vmem:[#allocation2 + $0x24] sm:$0x1] }
  0x4d   : > { %v530_v8 = vsel %vm3061_vm11, %v525_v58, %v529_v40  ;;  %951 = vmatmul.bf16.gmra.mxu2 %v883_v3  ;;  %v2325_v54 = vrot.slane %v803_v0, 9  ;;  %v1151_v33 = vrot.slane %v1149_v18, 5  ;;  %v2275_v37 = vor.u32 %v2716_v22, %v2274_v21  ;;  %v2787_v40 = vld [vmem:[%s3486_s1 + $0x1d8] sm:$0xff]  ;;  %v3269_v56 = vld [vmem:[%s3486_s1 + $0x228] sm:$0xff]  ;;  %v804_v0 = vld [vmem:[#allocation2 + $0x30] sm:$0xe] }
  0x4e   : > { %v607_v9 = vunpack.c.l.b16 %v530_v8  ;;  %v1154_v38 = vshrl.u32 %v1113_v24, 16  ;;  %v1157_v39 = vshll.u32 %v1113_v24, 16  ;;  %v257_v42 = vmul.f32 %v2917_v11, %v246_v26  ;;  %1877 = vmatpush.bf16.msrb.mxu3 %v2787_v40  ;;  %v805_v8 = vld [vmem:[#allocation2 + $0x38] sm:$0xe]  ;;  %v2402_v14 = vld [vmem:[#allocation2 + $0x28] sm:$0xf] }
  0x4f   : > { %v848_v35 = vsel %vm3031_vm10, %v2325_v54, %v847_v19  ;;  %v1168_v43 = vshrl.u32 %v1115_v25, 16  ;;  %v1171_v6 = vshll.u32 %v1115_v25, 16  ;;  %v878_v44 = vunpack.c.l.b16 %v844_v60  ;;  %v2776_v15 = vld [vmem:[%s3486_s1 + $0x180] sm:$0xff]  ;;  %v2746_v41 = vld [vmem:[#allocation2 + $0x2c] sm:$0xf0] }
  0x50   : > { %1493 = vmatpush.bf16.msra.mxu1 %v2770_v29  ;;  %v613_v20 = vpack.c.b16 %v607_v9, %v606_v1  ;;  %v1147_v29 = vrot.slane %v1146_v17, 4  ;;  %v879_v2 = vunpack.c.l.b16 %v848_v35  ;;  %2048 = vmatpush.bf16.msra.mxu0 %v3244_v36  ;;  %v268_v47 = vadd.f32 %v2922_v12, %v257_v42  ;;  %v2777_v12 = vld [vmem:[%s3486_s1 + $0x188] sm:$0xff]  ;;  %v2278_v25 = vld [vmem:[#allocation2 + $0x10] sm:$0xf]  ;;  %v437_v60 = vld [vmem:[#allocation2 + $0x44] sm:$0x1] }
  0x51   : > { %v1138_v48 = vsel %vm3061_vm11, %v1133_v31, %v1137_v27  ;;  %v1156_v11 = vrot.slane %v1154_v38, 4  ;;  %v1170_v61 = vrot.slane %v1168_v43, 4  ;;  %v1173_v63 = vrot.slane %v1171_v6, 5  ;;  %1633 = vmatpush.bf16.msrb.mxu2 %v2777_v12  ;;  %v434_v27 = vld [vmem:[#allocation2 + $0x40] sm:$0xf]  ;;  %v2786_v40 = vld [vmem:[%s3486_s1 + $0x1d0] sm:$0xff] }
  0x52   : > { %681 = vmatmul.bf16.gmra.mxu0 %v613_v20  ;;  %v1152_v49 = vsel %vm3061_vm11, %v1147_v29, %v1151_v33  ;;  %v276_v58 = vmax.f32 %v268_v47, 0.0  ;;  %v1254_v1 = vunpack.c.l.b16 %v1138_v48  ;;  %v884_v7 = vpack.c.b16 %v879_v2, %v878_v44  ;;  %v2717_v28 = vld [vmem:[#allocation2 + $0x14] sm:$0xf0]  ;;  %v1119_v38 = vld [vmem:[#allocation2 + $0x30] sm:$0xf]  ;;  %v2796_v42 = vld [vmem:[%s3486_s1 + $0x220] sm:$0xff]  ;;  %1878 = vmatpush.bf16.msrb.mxu3 %v2786_v40 }
  0x53   : > { %v1255_v3 = vunpack.c.l.b16 %v1152_v49  ;;  %v1163_v9 = vshll.u32 %v3256_v50, 16  ;;  %v1177_v4 = vshll.u32 %v3258_v51, 16  ;;  %v2326_v16 = vrot.slane %v804_v0, 9  ;;  %v2785_v48 = vld [vmem:[%s3486_s1 + $0x1c8] sm:$0xff]  ;;  %v1666_v12 = vld [vmem:[#allocation2 + $0x18] sm:$0xf] }
  0x54   : > { %1494 = vmatpush.bf16.msra.mxu1 %v2769_v52  ;;  %v1159_v52 = vrot.slane %v1157_v39, 5  ;;  %v284_v13 = vpack.c.bf16 %v276_v58, %v276_v58  ;;  %2049 = vmatpush.bf16.msra.mxu0 %v3269_v56  ;;  %v1174_v19 = vor.u32 %v1173_v63, %v1170_v61  ;;  %v851_v20 = vrot.slane %v3120_v59, 5  ;;  %v2765_v0 = vld [vmem:[%s3486_s1 + $0x148] sm:$0xff] }
  0x55   : > { %1085 = vmatmul.bf16.gmra.mxu3 %v2399_v23  ;;  %v2327_v21 = vrot.slane %v805_v8, 9  ;;  %v855_v22 = vrot.slane %v3150_v34, 5  ;;  %v1262_v23 = vpack.c.b16 %v1255_v3, %v1254_v1  ;;  %v2403_v26 = vor.u32 %v2746_v41, %v2402_v14  ;;  %1634 = vmatpush.bf16.msrb.mxu2 %v2776_v15  ;;  %v2795_v1 = vld [vmem:[%s3486_s1 + $0x218] sm:$0xff]  ;;  %v2784_v3 = vld [vmem:[%s3486_s1 + $0x1c0] sm:$0xff] }
  0x56   : > { %777 = vmatmul.bf16.vlgmr.msrb.gmra.mxu1 %v2275_v37  ;;  %v1160_v54 = vor.u32 %v1159_v52, %v1156_v11  ;;  %v362_v17 = vshrl.u32 %v284_v13, 16  ;;  %v365_v18 = vshll.u32 %v284_v13, 16  ;;  %v1165_v30 = vrot.slane %v1163_v9, 5  ;;  %v1117_v37 = vld [vmem:[#allocation2 + $0x28] sm:$0xf]  ;;  %1879 = vmatpush.bf16.msrb.mxu3 %v2785_v48 }
  0x57   : > { %v1175_v33 = vrot.slane %v1174_v19, 4  ;;  %v1179_v59 = vrot.slane %v1177_v4, 5  ;;  %v852_v34 = vsel %vm3031_vm10, %v2326_v16, %v851_v20  ;;  %v856_v35 = vsel %vm3031_vm10, %v2327_v21, %v855_v22  ;;  %v3316_v9 = vld [vmem:[#allocation2 + $0x34] sm:$0x1] }
  0x58   : > { %1495 = vmatpush.bf16.msra.mxu1 %v2768_v10  ;;  %v364_v24 = vrot.slane %v362_v17, 7  ;;  %v1161_v10 = vrot.slane %v1160_v54, 4  ;;  %v2279_v6 = vor.u32 %v2717_v28, %v2278_v25  ;;  %v880_v44 = vunpack.c.l.b16 %v852_v34  ;;  %2050 = vmatpush.bf16.msra.mxu0 %v2796_v42 }
  0x59   : > { %2808 = vmatpush.bf16.msra.mxu2 %v3214_v55  ;;  %v2766_v55 = vld [vmem:[%s3486_s1 + $0x150] sm:$0xff]  ;;  %v881_v2 = vunpack.c.l.b16 %v856_v35  ;;  %v1182_v47 = vshrl.u32 %v1117_v37, 16  ;;  %v1180_v62 = vsel %vm3061_vm11, %v1175_v33, %v1179_v59  ;;  %v1185_v49 = vshll.u32 %v1117_v37, 16 }
  0x5a   : > { %v367_v31 = vor.u32 %v365_v18, %v364_v24  ;;  %v368_v29 = vrot.slane %v364_v24, 4  ;;  %v1166_v57 = vsel %vm3061_vm11, %v1161_v10, %v1165_v30  ;;  %v1196_v11 = vshrl.u32 %v1119_v38, 16  ;;  %1880 = vmatpush.bf16.msrb.mxu3 %v2784_v3  ;;  %v2406_v18 = vld [vmem:[#allocation2 + $0x38] sm:$0xf]  ;;  %v2718_v10 = vld [vmem:[#allocation2 + $0x24] sm:$0xf0] }
  0x5b   : > { %v1199_v52 = vshll.u32 %v1119_v38, 16  ;;  %v1256_v58 = vunpack.c.l.b16 %v1166_v57  ;;  %v1257_v61 = vunpack.c.l.b16 %v1180_v62  ;;  %v885_v63 = vpack.c.b16 %v881_v2, %v880_v44  ;;  %v2764_v38 = vld [vmem:[%s3486_s1 + $0x140] sm:$0xff]  ;;  %v1670_v2 = vld [vmem:[#allocation2 + $0x28] sm:$0xf] }
  0x5c   : > { %1496 = vmatpush.bf16.msra.mxu1 %v2767_v53  ;;  %v435_v39 = vsel %vm2981_vm6, %v367_v31, %v434_v27  ;;  %v438_v43 = vsel %vm2996_vm7, %v368_v29, %v437_v60  ;;  %v1664_v53 = vld [vmem:[#allocation2 + $0x10] sm:$0xf]  ;;  %v1187_v8 = vrot.slane %v1185_v49, 5  ;;  %v1198_v13 = vrot.slane %v1196_v11, 4  ;;  %2051 = vmatpush.bf16.msra.mxu0 %v2795_v1  ;;  %v3321_v27 = vld [vmem:[#allocation2 + $0x14] sm:$0x1] }
  0x5d   : > { %956 = vmatmul.bf16.gmra.mxu2 %v884_v7  ;;  %436 = vst [vmem:[#allocation2 + $0x40] sm:$0xf] %v435_v39  ;;  %v1184_v7 = vrot.slane %v1182_v47, 4  ;;  %v1201_v14 = vrot.slane %v1199_v52, 5  ;;  %v1681_v4 = vshrl.u32 %v1664_v53, 16  ;;  %v1684_v15 = vshll.u32 %v1664_v53, 16 }
  0x5e   : > { %439 = vst [vmem:[#allocation2 + $0x44] sm:$0x1] %v438_v43  ;;  %2809 = vmatpush.bf16.msra.mxu2 %v3244_v36  ;;  %v3314_v36 = vld [vmem:[#allocation2 + $0x2c] sm:$0x1]  ;;  %v1695_v41 = vshrl.u32 %v1666_v12, 16  ;;  %v1698_v54 = vshll.u32 %v1666_v12, 16  ;;  %v1263_v17 = vpack.c.b16 %v1257_v61, %v1256_v58 }
  0x5f   : > { %v1191_v16 = vshll.u32 %v3314_v36, 16  ;;  %v1188_v19 = vor.u32 %v1187_v8, %v1184_v7  ;;  %v1202_v20 = vor.u32 %v1201_v14, %v1198_v13  ;;  %v1205_v21 = vshll.u32 %v3316_v9, 16  ;;  %v3323_v60 = vld [vmem:[#allocation2 + $0x1c] sm:$0x1]  ;;  %v2794_v39 = vld [vmem:[%s3486_s1 + $0x210] sm:$0xff]  ;;  %v2793_v43 = vld [vmem:[%s3486_s1 + $0x208] sm:$0xff] }
  0x60   : > { %1497 = vmatpush.bf16.msra.mxu1 %v2766_v55  ;;  %v1686_v24 = vrot.slane %v1684_v15, 5  ;;  %v1697_v25 = vrot.slane %v1695_v41, 4  ;;  %v1690_v34 = vshll.u32 %v3321_v27, 16  ;;  %v1704_v37 = vshll.u32 %v3323_v60, 16  ;;  %v1121_v55 = vld [vmem:[#allocation2 + $0x38] sm:$0xf]  ;;  %2052 = vmatpush.bf16.msra.mxu0 %v2794_v39 }
  0x61   : > { %v1193_v28 = vrot.slane %v1191_v16, 5  ;;  %v1189_v31 = vrot.slane %v1188_v19, 4  ;;  %v1203_v29 = vrot.slane %v1202_v20, 4  ;;  %v1207_v33 = vrot.slane %v1205_v21, 5  ;;  %v1668_v44 = vld [vmem:[#allocation2 + $0x20] sm:$0xf] }
  0x62   : > { %1326 = vmatmul.bf16.vlgmr.msrb.gmra.mxu0 %v1262_v23  ;;  %2810 = vmatpush.bf16.msra.mxu2 %v3269_v56  ;;  %v1683_v23 = vrot.slane %v1681_v4, 4  ;;  %v2282_v56 = vld [vmem:[#allocation2 + $0x20] sm:$0xf]  ;;  %v2562_v47 = vld [vmem:[#allocation2 + $0x10] sm:$0xf]  ;;  %v1692_v62 = vrot.slane %v1690_v34, 5 }
  0x63   : > { %v2283_v40 = vor.u32 %v2718_v10, %v2282_v56  ;;  %v1208_v57 = vsel %vm3061_vm11, %v1203_v29, %v1207_v33  ;;  %v1706_v11 = vrot.slane %v1704_v37, 5  ;;  %v2772_v52 = vld [vmem:[#allocation2 + $0x14] sm:$0xf0]  ;;  %v1210_v53 = vshrl.u32 %v1121_v55, 16  ;;  %v3347_v41 = vld [vmem:[#allocation2 + $0x3c] sm:$0x1] }
  0x64   : > { %1498 = vmatpush.bf16.msra.mxu1 %v2765_v0  ;;  %v2747_v22 = vld [vmem:[#allocation2 + $0x3c] sm:$0xf0]  ;;  %v1687_v59 = vor.u32 %v1686_v24, %v1683_v23  ;;  %v1213_v12 = vshll.u32 %v1121_v55, 16  ;;  %2053 = vmatpush.bf16.msra.mxu0 %v2793_v43  ;;  %v1709_v0 = vshrl.u32 %v1668_v44, 16  ;;  %v1723_v3 = vshrl.u32 %v1670_v2, 16 }
  0x65   : > { %1090 = vmatmul.bf16.gmra.mxu3 %v2403_v26  ;;  %v1700_v26 = vrot.slane %v1698_v54, 5  ;;  %v2407_v30 = vor.u32 %v2747_v22, %v2406_v18  ;;  %v1726_v7 = vshll.u32 %v1670_v2, 16  ;;  %v1259_v13 = vunpack.c.l.b16 %v1208_v57  ;;  %v3349_v19 = vld [vmem:[#allocation2 + $0x44] sm:$0x1]  ;;  %v3353_v56 = vld [vmem:[#allocation2 + $0x2c] sm:$0x1] }
  0x66   : > { %782 = vmatmul.bf16.gmra.mxu1 %v2279_v6  ;;  %2811 = vmatpush.bf16.msra.mxu2 %v2796_v42  ;;  %v1123_v42 = vld [vmem:[#allocation2 + $0x40] sm:$0xf]  ;;  %v1194_v6 = vsel %vm3061_vm11, %v1189_v31, %v1193_v28  ;;  %v1688_v48 = vrot.slane %v1687_v59, 4  ;;  %v2563_v14 = vor.u32 %v2772_v52, %v2562_v47  ;;  %v1212_v54 = vrot.slane %v1210_v53, 4  ;;  %v2286_v10 = vld [vmem:[#allocation2 + $0x30] sm:$0xf] }
  0x67   : > { %v1701_v35 = vor.u32 %v1700_v26, %v1697_v25  ;;  %v1224_v58 = vshrl.u32 %v1123_v42, 16  ;;  %v1227_v61 = vshll.u32 %v1123_v42, 16  ;;  %v1258_v8 = vunpack.c.l.b16 %v1194_v6  ;;  %v3351_v26 = vld [vmem:[#allocation2 + $0x24] sm:$0x1] }
  0x68   : > { %1499 = vmatpush.bf16.msra.mxu1 %v2764_v38  ;;  %v1693_v4 = vsel %vm3061_vm11, %v1688_v48, %v1692_v62  ;;  %v1215_v16 = vrot.slane %v1213_v12, 5  ;;  %v1711_v20 = vrot.slane %v1709_v0, 4  ;;  %v1725_v22 = vrot.slane %v1723_v3, 4  ;;  %v1355_v48 = vld [vmem:[#allocation2 + $0x8] sm:$0xe] }
  0x69   : > { %v1702_v49 = vrot.slane %v1701_v35, 4  ;;  %v1229_v18 = vrot.slane %v1227_v61, 5  ;;  %v1728_v23 = vrot.slane %v1726_v7, 5  ;;  %v1809_v24 = vunpack.c.l.b16 %v1693_v4  ;;  %v1356_v62 = vld [vmem:[#allocation2 + $0x10] sm:$0xe] }
  0x6a   : > { %2812 = vmatpush.bf16.msra.mxu2 %v2795_v1  ;;  %v1712_v1 = vshll.u32 %v1668_v44, 16  ;;  %v1264_v28 = vpack.c.b16 %v1259_v13, %v1258_v8  ;;  %v1216_v31 = vor.u32 %v1215_v16, %v1212_v54  ;;  %v1219_v29 = vshll.u32 %v3347_v41, 16  ;;  %v2566_v61 = vld [vmem:[#allocation2 + $0x20] sm:$0xf] }
  0x6b   : > { %v1707_v15 = vsel %vm3061_vm11, %v1702_v49, %v1706_v11  ;;  %v1233_v59 = vshll.u32 %v3349_v19, 16  ;;  %v1718_v35 = vshll.u32 %v3351_v26, 16  ;;  %v1729_v37 = vor.u32 %v1728_v23, %v1725_v22  ;;  %v1672_v49 = vld [vmem:[#allocation2 + $0x30] sm:$0xf]  ;;  %v1674_v11 = vld [vmem:[#allocation2 + $0x38] sm:$0xf] }
  0x6c   : > { %v1714_v21 = vrot.slane %v1712_v1, 5  ;;  %v1810_v25 = vunpack.c.l.b16 %v1707_v15  ;;  %v1732_v38 = vshll.u32 %v3353_v56, 16  ;;  %v1217_v55 = vrot.slane %v1216_v31, 4 }
  0x6d   : > { %961 = vmatmul.bf16.gmra.mxu2 %v885_v63  ;;  %v2792_v63 = vld [vmem:[%s3486_s1 + $0x200] sm:$0xff]  ;;  %v1221_v42 = vrot.slane %v1219_v29, 5  ;;  %v1235_v6 = vrot.slane %v1233_v59, 5  ;;  %v1720_v44 = vrot.slane %v1718_v35, 5  ;;  %v1730_v2 = vrot.slane %v1729_v37, 4 }
  0x6e   : > { %2813 = vmatpush.bf16.msra.mxu2 %v2794_v39  ;;  %2054 = vmatpush.bf16.msra.mxu0 %v2792_v63  ;;  %v1715_v34 = vor.u32 %v1714_v21, %v1711_v20  ;;  %v1817_v39 = vpack.c.b16 %v1810_v25, %v1809_v24  ;;  %v1734_v47 = vrot.slane %v1732_v38, 5  ;;  %v1381_v52 = vrot.slane %v3203_v46, 5  ;;  %v1910_v20 = vld [vmem:[#allocation2 + $0x10] sm:$0xe]  ;;  %v1911_v21 = vld [vmem:[#allocation2 + $0x18] sm:$0xe] }
  0x6f   : > { %v1385_v53 = vrot.slane %v3218_v5, 5  ;;  %v1222_v12 = vsel %vm3061_vm11, %v1217_v55, %v1221_v42  ;;  %v2488_v0 = vrot.slane %v1355_v48, 9  ;;  %v2489_v1 = vrot.slane %v1356_v62, 9  ;;  %v1357_v48 = vld [vmem:[#allocation2 + $0x18] sm:$0xe] }
  0x70   : > { %v1716_v57 = vrot.slane %v1715_v34, 4  ;;  %v1735_v7 = vsel %vm3061_vm11, %v1730_v2, %v1734_v47  ;;  %v1737_v46 = vshrl.u32 %v1672_v49, 16  ;;  %v1740_v8 = vshll.u32 %v1672_v49, 16  ;;  %v1358_v62 = vld [vmem:[#allocation2 + $0x20] sm:$0xe] }
  0x71   : > { %v1751_v5 = vshrl.u32 %v1674_v11, 16  ;;  %v1754_v13 = vshll.u32 %v1674_v11, 16  ;;  %v1382_v54 = vsel %vm3031_vm10, %v2488_v0, %v1381_v52  ;;  %v1386_v16 = vsel %vm3031_vm10, %v2489_v1, %v1385_v53  ;;  %v1676_v11 = vld [vmem:[#allocation2 + $0x40] sm:$0xf]  ;;  %v1678_v52 = vld [vmem:[#allocation2 + $0x48] sm:$0xf] }
  0x72   : > { %1331 = vmatmul.bf16.gmra.mxu0 %v1263_v17  ;;  %v1226_v17 = vrot.slane %v1224_v58, 4  ;;  %2814 = vmatpush.bf16.msra.mxu2 %v2793_v43  ;;  %v1721_v3 = vsel %vm3061_vm11, %v1716_v57, %v1720_v44  ;;  %v1739_v22 = vrot.slane %v1737_v46, 4  ;;  %v1742_v23 = vrot.slane %v1740_v8, 5 }
  0x73   : > { %v1753_v24 = vrot.slane %v1751_v5, 4  ;;  %v1756_v25 = vrot.slane %v1754_v13, 5  ;;  %v1936_v31 = vrot.slane %v3321_v27, 5  ;;  %v1940_v29 = vrot.slane %v3323_v60, 5  ;;  %v2570_v60 = vld [vmem:[#allocation2 + $0x30] sm:$0xf] }
  0x74   : > { %v1230_v33 = vor.u32 %v1229_v18, %v1226_v17  ;;  %v1811_v17 = vunpack.c.l.b16 %v1721_v3  ;;  %v1812_v18 = vunpack.c.l.b16 %v1735_v7  ;;  %v1429_v59 = vunpack.c.l.b16 %v1386_v16 }
  0x75   : > { %1095 = vmatmul.bf16.gmra.mxu3 %v2407_v30  ;;  %v2719_v30 = vld [vmem:[#allocation2 + $0x34] sm:$0xf0]  ;;  %v2656_v35 = vrot.slane %v1910_v20, 9  ;;  %v2657_v37 = vrot.slane %v1911_v21, 9  ;;  %v1743_v38 = vor.u32 %v1742_v23, %v1739_v22  ;;  %v2491_v0 = vrot.slane %v1358_v62, 9 }
  0x76   : > { %787 = vmatmul.bf16.gmra.mxu1 %v2283_v40  ;;  %2815 = vmatpush.bf16.msra.mxu2 %v2792_v63  ;;  %v2287_v40 = vor.u32 %v2719_v30, %v2286_v10  ;;  %v1231_v43 = vrot.slane %v1230_v33, 4  ;;  %v2773_v63 = vld [vmem:[#allocation2 + $0x24] sm:$0xf0]  ;;  %v3373_v10 = vld [vmem:[#allocation2 + $0x34] sm:$0x1]  ;;  %v1428_v33 = vunpack.c.l.b16 %v1382_v54  ;;  %v1818_v34 = vpack.c.b16 %v1812_v18, %v1811_v17 }
  0x77   : > { %v2567_v15 = vor.u32 %v2773_v63, %v2566_v61  ;;  %v3375_v30 = vld [vmem:[#allocation2 + $0x3c] sm:$0x1]  ;;  %v1941_v27 = vsel %vm3031_vm10, %v2657_v37, %v1940_v29  ;;  %v1744_v57 = vrot.slane %v1743_v38, 4  ;;  %v1393_v61 = vrot.slane %v3258_v51, 5  ;;  %v1677_v20 = vld [vmem:[#allocation2 + $0x44] sm:$0x1] }
  0x78   : > { %v1236_v58 = vsel %vm3061_vm11, %v1231_v43, %v1235_v6  ;;  %v1760_v55 = vshll.u32 %v3375_v30, 16  ;;  %v1436_v42 = vpack.c.b16 %v1429_v59, %v1428_v33  ;;  %v1937_v43 = vsel %vm3031_vm10, %v2656_v35, %v1936_v31  ;;  %v2774_v6 = vld [vmem:[#allocation2 + $0x34] sm:$0xf0]  ;;  %v1679_v21 = vld [vmem:[#allocation2 + $0x4c] sm:$0x1] }
  0x79   : > { %v1261_v4 = vunpack.c.l.b16 %v1236_v58  ;;  %v1983_v49 = vunpack.c.l.b16 %v1937_v43  ;;  %v1984_v53 = vunpack.c.l.b16 %v1941_v27  ;;  %v1389_v58 = vrot.slane %v3256_v50, 5 }
  0x7a   : > { %v1762_v47 = vrot.slane %v1760_v55, 5  ;;  %v2490_v63 = vrot.slane %v1357_v48, 9  ;;  %v1765_v7 = vshrl.u32 %v1676_v11, 16  ;;  %v1768_v46 = vshll.u32 %v1676_v11, 16  ;;  %v1360_v55 = vld [vmem:[#allocation2 + $0x30] sm:$0xe] }
  0x7b   : > { %v1779_v8 = vshrl.u32 %v1678_v52, 16  ;;  %v1782_v5 = vshll.u32 %v1678_v52, 16  ;;  %v1991_v13 = vpack.c.b16 %v1984_v53, %v1983_v49  ;;  %v1394_v50 = vsel %vm3031_vm10, %v2491_v0, %v1393_v61  ;;  %v1916_v53 = vld [vmem:[#allocation2 + $0x40] sm:$0xe] }
  0x7c   : > { %v1767_v54 = vrot.slane %v1765_v7, 4  ;;  %v1770_v16 = vrot.slane %v1768_v46, 5  ;;  %v1431_v23 = vunpack.c.l.b16 %v1394_v50  ;;  %v1944_v31 = vrot.slane %v3351_v26, 5 }
  0x7d   : > { %1635 = vmatmul.bf16.vlgmr.msrb.gmra.mxu2 %v2563_v14  ;;  %v1260_v14 = vunpack.c.l.b16 %v1222_v12  ;;  %v2571_v12 = vor.u32 %v2774_v6, %v2570_v60  ;;  %v1781_v17 = vrot.slane %v1779_v8, 4  ;;  %v1784_v18 = vrot.slane %v1782_v5, 5  ;;  %v2574_v6 = vld [vmem:[#allocation2 + $0x40] sm:$0xf]  ;;  %v1915_v5 = vld [vmem:[#allocation2 + $0x38] sm:$0xe] }
  0x7e   : > { %v1771_v29 = vor.u32 %v1770_v16, %v1767_v54  ;;  %v1774_v33 = vshll.u32 %v1677_v20, 16  ;;  %v1948_v37 = vrot.slane %v3353_v56, 5  ;;  %v1397_v56 = vrot.slane %v3314_v36, 5 }
  0x7f   : > { %v1785_v59 = vor.u32 %v1784_v18, %v1781_v17  ;;  %v1401_v48 = vrot.slane %v3316_v9, 5  ;;  %v1960_v9 = vrot.slane %v1677_v20, 5  ;;  %v2662_v7 = vrot.slane %v1916_v53, 9 }
  0x80   : > { %v1776_v43 = vrot.slane %v1774_v33, 5  ;;  %v1952_v50 = vrot.slane %v3373_v10, 5 }
  0x81   : > { %v1786_v27 = vrot.slane %v1785_v59, 4 }
  0x82   : > { %1336 = vmatmul.bf16.gmra.mxu0 %v1264_v28  ;;  %v1265_v28 = vpack.c.b16 %v1261_v4, %v1260_v14  ;;  %v1390_v14 = vsel %vm3031_vm10, %v2490_v63, %v1389_v58 }
  0x83   : > { %v1430_v22 = vunpack.c.l.b16 %v1390_v14 }
  0x85   : > { %1881 = vmatmul.bf16.vlgmr.msrb.gmra.mxu3 %v1817_v39  ;;  %v1746_v39 = vshll.u32 %v3373_v10, 16  ;;  %v1437_v38 = vpack.c.b16 %v1431_v23, %v1430_v22  ;;  %v1362_v22 = vld [vmem:[#allocation2 + $0x40] sm:$0xe] }
  0x86   : > { %792 = vmatmul.bf16.gmra.mxu1 %v2287_v40  ;;  %v1757_v40 = vor.u32 %v1756_v25, %v1753_v24  ;;  %v1913_v24 = vld [vmem:[#allocation2 + $0x28] sm:$0xe] }
  0x87   : > { %v1748_v44 = vrot.slane %v1746_v39, 5  ;;  %v2659_v35 = vrot.slane %v1913_v24, 9  ;;  %v1405_v24 = vrot.slane %v3347_v41, 5 }
  0x88   : > { %v1758_v2 = vrot.slane %v1757_v40, 4  ;;  %v1359_v40 = vld [vmem:[#allocation2 + $0x28] sm:$0xe] }
  0x89   : > { %v1749_v1 = vsel %vm3061_vm11, %v1744_v57, %v1748_v44  ;;  %v1949_v26 = vsel %vm3031_vm10, %v2659_v35, %v1948_v37  ;;  %v2775_v57 = vld [vmem:[#allocation2 + $0x44] sm:$0xf0] }
  0x8a   : > { %v1763_v3 = vsel %vm3061_vm11, %v1758_v2, %v1762_v47  ;;  %v1813_v51 = vunpack.c.l.b16 %v1749_v1  ;;  %v2492_v2 = vrot.slane %v1359_v40, 9  ;;  %v2493_v47 = vrot.slane %v1360_v55, 9 }
  0x8b   : > { %v1814_v4 = vunpack.c.l.b16 %v1763_v3  ;;  %v1986_v62 = vunpack.c.l.b16 %v1949_v26  ;;  %v2575_v49 = vor.u32 %v2775_v57, %v2574_v6  ;;  %v1964_v1 = vrot.slane %v1679_v21, 5  ;;  %v1914_v3 = vld [vmem:[#allocation2 + $0x30] sm:$0xe] }
  0x8c   : > { %v1398_v58 = vsel %vm3031_vm10, %v2492_v2, %v1397_v56  ;;  %v1402_v61 = vsel %vm3031_vm10, %v2493_v47, %v1401_v48  ;;  %v2660_v14 = vrot.slane %v1914_v3, 9 }
  0x8d   : > { %1640 = vmatmul.bf16.gmra.mxu2 %v2567_v15  ;;  %v1912_v15 = vld [vmem:[#allocation2 + $0x20] sm:$0xe]  ;;  %v1819_v25 = vpack.c.b16 %v1814_v4, %v1813_v51  ;;  %v1432_v8 = vunpack.c.l.b16 %v1398_v58  ;;  %v1433_v45 = vunpack.c.l.b16 %v1402_v61  ;;  %v2661_v51 = vrot.slane %v1915_v5, 9 }
  0x8e   : > { %v1956_v4 = vrot.slane %v3375_v30, 5  ;;  %v1953_v23 = vsel %vm3031_vm10, %v2660_v14, %v1952_v50 }
  0x8f   : > { %v1438_v16 = vpack.c.b16 %v1433_v45, %v1432_v8 }
  0x90   : > { %v1957_v10 = vsel %vm3031_vm10, %v2661_v51, %v1956_v4 }
  0x92   : > { %1341 = vmatmul.bf16.gmra.mxu0 %v1265_v28  ;;  %v2658_v28 = vrot.slane %v1912_v15, 9  ;;  %v1961_v15 = vsel %vm3031_vm10, %v2662_v7, %v1960_v9 }
  0x93   : > { %v1989_v18 = vunpack.c.l.b16 %v1961_v15 }
  0x94   : > { %v1945_v39 = vsel %vm3031_vm10, %v2658_v28, %v1944_v31  ;;  %v1409_v28 = vrot.slane %v3349_v19, 5  ;;  %v1987_v31 = vunpack.c.l.b16 %v1953_v23 }
  0x95   : > { %1886 = vmatmul.bf16.gmra.mxu3 %v1818_v34  ;;  %v1788_v34 = vshll.u32 %v1679_v21, 16  ;;  %v1985_v44 = vunpack.c.l.b16 %v1945_v39  ;;  %v1361_v21 = vld [vmem:[#allocation2 + $0x38] sm:$0xe] }
  0x96   : > { %1500 = vmatmul.bf16.vlgmr.msra.gmra.mxu1 %v1436_v42  ;;  %v1772_v42 = vrot.slane %v1771_v29, 4  ;;  %v2494_v30 = vrot.slane %v1361_v21, 9  ;;  %v1988_v29 = vunpack.c.l.b16 %v1957_v10 }
  0x97   : > { %v1790_v60 = vrot.slane %v1788_v34, 5  ;;  %v1992_v0 = vpack.c.b16 %v1986_v62, %v1985_v44 }
  0x98   : > { %v1777_v11 = vsel %vm3061_vm11, %v1772_v42, %v1776_v43  ;;  %v1406_v37 = vsel %vm3031_vm10, %v2494_v30, %v1405_v24  ;;  %v1993_v39 = vpack.c.b16 %v1988_v29, %v1987_v31 }
  0x99   : > { %v1791_v52 = vsel %vm3061_vm11, %v1786_v27, %v1790_v60  ;;  %v1815_v36 = vunpack.c.l.b16 %v1777_v11  ;;  %v1434_v40 = vunpack.c.l.b16 %v1406_v37 }
  0x9a   : > { %v1816_v63 = vunpack.c.l.b16 %v1791_v52 }
  0x9d   : > { %1645 = vmatmul.bf16.gmra.mxu2 %v2571_v12  ;;  %v1917_v12 = vld [vmem:[#allocation2 + $0x48] sm:$0xe] }
  0x9e   : > { %v2663_v46 = vrot.slane %v1917_v12, 9 }
  0xa0   : > { %v1965_v54 = vsel %vm3031_vm10, %v2663_v46, %v1964_v1 }
  0xa1   : > { %v1990_v20 = vunpack.c.l.b16 %v1965_v54 }
  0xa2   : > { %2055 = vmatmul.bf16.vlgmr.msra.gmra.mxu0 %v1991_v13  ;;  %v1820_v13 = vpack.c.b16 %v1816_v63, %v1815_v36 }
  0xa3   : > { %v1994_v33 = vpack.c.b16 %v1990_v20, %v1989_v18 }
  0xa5   : > { %1891 = vmatmul.bf16.gmra.mxu3 %v1819_v25  ;;  %v2495_v25 = vrot.slane %v1362_v22, 9 }
  0xa6   : > { %1505 = vmatmul.bf16.gmra.mxu1 %v1437_v38 }
  0xa7   : > { %v1410_v38 = vsel %vm3031_vm10, %v2495_v25, %v1409_v28 }
  0xa8   : > { %v1435_v55 = vunpack.c.l.b16 %v1410_v38 }
  0xaa   : > { %v1439_v41 = vpack.c.b16 %v1435_v55, %v1434_v40 }
  0xad   : > { %1650 = vmatmul.bf16.gmra.mxu2 %v2575_v49 }
  0xb2   : > { %2060 = vmatmul.bf16.gmra.mxu0 %v1992_v0 }
  0xb3   : > { %v687_v17 = vpop.f32.mrf.mxu1 }
  0xb5   : > { %1896 = vmatmul.bf16.gmra.mxu3 %v1820_v13 }
  0xb6   : > { %1510 = vmatmul.bf16.gmra.mxu1 %v1438_v16 }
  0xb7   : > { %v677_v59 = vpop.f32.mrf.mxu0 }
  0xb8   : > { %v947_v35 = vpop.f32.mrf.mxu2 }
  0xbb   : > { %v689_v34 = vpop.f32.mrf.mxu1 }
  0xbd   : > { %2070 = vmatmul.bf16.vlgmr.msra.gmra.mxu2 %v1994_v33 }
  0xbf   : > { %v679_v42 = vpop.f32.mrf.mxu0 }
  0xc0   : > { %v949_v43 = vpop.f32.mrf.mxu2 }
  0xc2   : > { %2065 = vmatmul.bf16.gmra.mxu0 %v1993_v39 }
  0xc3   : > { %v692_v19 = vpop.f32.mrf.mxu1 }
  0xc6   : > { %1515 = vmatmul.bf16.gmra.mxu1 %v1439_v41 }
  0xc8   : > { %v1081_v27 = vpop.f32.mrf.mxu3 }
  0xcb   : > { %v694_v60 = vpop.f32.mrf.mxu1 }
  0xcf   : > { %v682_v26 = vpop.f32.mrf.mxu0 }
  0xd0   : > { %v1083_v6 = vpop.f32.mrf.mxu3  ;;  %v952_v57 = vpop.f32.mrf.mxu2 }
  0xd3   : > { %v778_v44 = vpop.f32.mrf.mxu1 }
  0xd4   : > { %v779_v2 = vadd.f32 %v778_v44, %v677_v59 }
  0xd6   : > { %v967_v32 = vadd.f32 %v947_v35, %v779_v2 }
  0xd7   : > { %v684_v56 = vpop.f32.mrf.mxu0 }
  0xd8   : > { %v1086_v47 = vpop.f32.mrf.mxu3  ;;  %v954_v48 = vpop.f32.mrf.mxu2  ;;  %v1101_v29 = vadd.f32 %v1081_v27, %v967_v32 }
  0xdb   : > { %v780_v62 = vpop.f32.mrf.mxu1 }
  0xdc   : > { %v781_v49 = vadd.f32 %v780_v62, %v679_v42 }
  0xde   : > { %v968_v52 = vadd.f32 %v949_v43, %v781_v49 }
  0xdf   : > { %v1327_v11 = vpop.f32.mrf.mxu0 }
  0xe0   : > { %v3427_v53 = vpop.f32.mrf.mxu3  ;;  %v957_v12 = vpop.f32.mrf.mxu2  ;;  %v1102_v40 = vadd.f32 %v1083_v6, %v968_v52 }
  0xe3   : > { %v783_v58 = vpop.f32.mrf.mxu1 }
  0xe4   : > { %v784_v61 = vadd.f32 %v783_v58, %v682_v26 }
  0xe6   : > { %v969_v63 = vadd.f32 %v952_v57, %v784_v61 }
  0xe7   : > { %v1329_v36 = vpop.f32.mrf.mxu0 }
  0xe8   : > { %v3429_v0 = vpop.f32.mrf.mxu3  ;;  %v959_v9 = vpop.f32.mrf.mxu2  ;;  %v1348_v42 = vadd.f32 %v1329_v36, %v1102_v40  ;;  %v1103_v57 = vadd.f32 %v1086_v47, %v969_v63 }
  0xeb   : > { %v785_v1 = vpop.f32.mrf.mxu1 }
  0xec   : > { %v786_v3 = vadd.f32 %v785_v1, %v684_v56 }
  0xee   : > { %v970_v46 = vadd.f32 %v954_v48, %v786_v3 }
  0xef   : > { %v1332_v7 = vpop.f32.mrf.mxu0 }
  0xf0   : > { %v3431_v8 = vpop.f32.mrf.mxu3  ;;  %v962_v45 = vpop.f32.mrf.mxu2  ;;  %v1349_v56 = vadd.f32 %v1332_v7, %v1103_v57 }
  0xf3   : > { %v788_v5 = vpop.f32.mrf.mxu1 }
  0xf4   : > { %v789_v13 = vadd.f32 %v788_v5, %v687_v17 }
  0xf6   : > { %v971_v50 = vadd.f32 %v957_v12, %v789_v13 }
  0xf7   : > { %v1334_v14 = vpop.f32.mrf.mxu0 }
  0xf8   : > { %v3433_v51 = vpop.f32.mrf.mxu3  ;;  %v964_v4 = vpop.f32.mrf.mxu2  ;;  %v1105_v13 = vadd.f32 %v3429_v0, %v971_v50 }
  0xfb   : > { %v790_v15 = vpop.f32.mrf.mxu1 }
  0xfc   : > { %v791_v54 = vadd.f32 %v790_v15, %v689_v34  ;;  %v1347_v34 = vadd.f32 %v1327_v11, %v1101_v29  ;;  %v1104_v11 = vadd.f32 %v3427_v53, %v970_v46 }
  0xfe   : > { %v3437_v18 = vadd.f32 %v959_v9, %v791_v54  ;;  %v1350_v63 = vadd.f32 %v1334_v14, %v1104_v11 }
  0xff   : > { %v3435_v16 = vpop.f32.mrf.mxu0 }
 0x100   : > { %v1636_v20 = vpop.f32.mrf.mxu2  ;;  %v3439_v21 = vpop.f32.mrf.mxu3 }
 0x103   : > { %v793_v22 = vpop.f32.mrf.mxu1 }
 0x104   : > { %v794_v23 = vadd.f32 %v793_v22, %v692_v19 }
 0x106   : > { %v3443_v30 = vadd.f32 %v962_v45, %v794_v23 }
 0x107   : > { %v3441_v10 = vpop.f32.mrf.mxu0 }
 0x108   : > { %v1638_v17 = vpop.f32.mrf.mxu2  ;;  %v1882_v24 = vpop.f32.mrf.mxu3 }
 0x10b   : > { %v795_v25 = vpop.f32.mrf.mxu1 }
 0x10c   : > { %v796_v28 = vadd.f32 %v795_v25, %v694_v60 }
 0x10e   : > { %v3447_v33 = vadd.f32 %v964_v4, %v796_v28  ;;  %v1106_v28 = vadd.f32 %v3431_v8, %v3437_v18 }
 0x10f   : > { %v3445_v31 = vpop.f32.mrf.mxu0 }
 0x110   : > { %v1641_v59 = vpop.f32.mrf.mxu2  ;;  %v1884_v37 = vpop.f32.mrf.mxu3 }
 0x113   : > { %v1501_v35 = vpop.f32.mrf.mxu1 }
 0x114   : > { %v1521_v38 = vadd.f32 %v1501_v35, %v1347_v34  ;;  %v1352_v34 = vadd.f32 %v3441_v10, %v1106_v28 }
 0x116   : > { %v1656_v55 = vadd.f32 %v1636_v20, %v1521_v38  ;;  %v1351_v20 = vadd.f32 %v3435_v16, %v1105_v13 }
 0x117   : > { %v3449_v39 = vpop.f32.mrf.mxu0 }
 0x118   : > { %v1643_v41 = vpop.f32.mrf.mxu2  ;;  %v1902_v19 = vadd.f32 %v1882_v24, %v1656_v55  ;;  %v1887_v26 = vpop.f32.mrf.mxu3 }
 0x11b   : > { %v1503_v43 = vpop.f32.mrf.mxu1 }
 0x11c   : > { %v1522_v60 = vadd.f32 %v1503_v43, %v1348_v42  ;;  %v1107_v42 = vadd.f32 %v3433_v51, %v3443_v30 }
 0x11e   : > { %v1657_v2 = vadd.f32 %v1638_v17, %v1522_v60  ;;  %v1353_v60 = vadd.f32 %v3445_v31, %v1107_v42 }
 0x11f   : > { %v2056_v27 = vpop.f32.mrf.mxu0 }
 0x120   : > { %v2076_v44 = vadd.f32 %v2056_v27, %v1902_v19  ;;  %v1646_v6 = vpop.f32.mrf.mxu2  ;;  %v1903_v32 = vadd.f32 %v1884_v37, %v1657_v2  ;;  %v1889_v58 = vpop.f32.mrf.mxu3 }
 0x122   : > { %2084 = vst [vmem:[%s3456_s23] sm:$0xff] %v2076_v44  ;;  %v2106_v61 = vmul.f32 %v2076_v44, %v2076_v44 }
 0x123   : > { %v1506_v48 = vpop.f32.mrf.mxu1 }
 0x124   : > { %v1523_v62 = vadd.f32 %v1506_v48, %v1349_v56 }
 0x126   : > { %v1658_v12 = vadd.f32 %v1641_v59, %v1523_v62 }
 0x127   : > { %v2058_v49 = vpop.f32.mrf.mxu0 }
 0x128   : > { %v2077_v52 = vadd.f32 %v2058_v49, %v1903_v32  ;;  %v1648_v47 = vpop.f32.mrf.mxu2  ;;  %v1904_v3 = vadd.f32 %v1887_v26, %v1658_v12  ;;  %v1892_v54 = vpop.f32.mrf.mxu3 }
 0x12a   : > { %2085 = vst [vmem:[%s3456_s23 + $0x8] sm:$0xff] %v2077_v52  ;;  %v2092_v36 = vadd.f32 %v2077_v52, %v2076_v44  ;;  %v2107_v9 = vmul.f32 %v2077_v52, %v2077_v52 }
 0x12b   : > { %v1508_v45 = vpop.f32.mrf.mxu1 }
 0x12c   : > { %v2114_v1 = vadd.f32 %v2107_v9, %v2106_v61  ;;  %v1524_v7 = vadd.f32 %v1508_v45, %v1350_v63 }
 0x12e   : > { %v1659_v53 = vadd.f32 %v1643_v41, %v1524_v7 }
 0x12f   : > { %v2061_v5 = vpop.f32.mrf.mxu0 }
 0x130   : > { %v2078_v4 = vadd.f32 %v2061_v5, %v1904_v3  ;;  %v1905_v23 = vadd.f32 %v1889_v58, %v1659_v53  ;;  %v1651_v17 = vpop.f32.mrf.mxu2  ;;  %v1894_v16 = vpop.f32.mrf.mxu3 }
 0x132   : > { %2086 = vst [vmem:[%s3456_s23 + $0x10] sm:$0xff] %v2078_v4  ;;  %v2093_v46 = vadd.f32 %v2092_v36, %v2078_v4  ;;  %v2108_v15 = vmul.f32 %v2078_v4, %v2078_v4 }
 0x133   : > { %v1511_v14 = vpop.f32.mrf.mxu1 }
 0x134   : > { %v2115_v22 = vadd.f32 %v2114_v1, %v2108_v15  ;;  %v1525_v24 = vadd.f32 %v1511_v14, %v1351_v20 }
 0x136   : > { %v1660_v0 = vadd.f32 %v1646_v6, %v1525_v24  ;;  %v1108_v6 = vadd.f32 %v3439_v21, %v3447_v33 }
 0x137   : > { %v2063_v25 = vpop.f32.mrf.mxu0 }
 0x138   : > { %v2079_v29 = vadd.f32 %v2063_v25, %v1905_v23  ;;  %v1906_v37 = vadd.f32 %v1892_v54, %v1660_v0  ;;  %v1653_v55 = vpop.f32.mrf.mxu2  ;;  %v1897_v44 = vpop.f32.mrf.mxu3  ;;  %v1354_v31 = vadd.f32 %v3449_v39, %v1108_v6 }
 0x13a   : > { %2087 = vst [vmem:[%s3456_s23 + $0x18] sm:$0xff] %v2079_v29  ;;  %v2094_v50 = vadd.f32 %v2093_v46, %v2079_v29  ;;  %v2109_v59 = vmul.f32 %v2079_v29, %v2079_v29 }
 0x13b   : > { %v1513_v38 = vpop.f32.mrf.mxu1 }
 0x13c   : > { %v2116_v35 = vadd.f32 %v2115_v22, %v2109_v59  ;;  %v1526_v40 = vadd.f32 %v1513_v38, %v1352_v34 }
 0x13e   : > { %v1661_v8 = vadd.f32 %v1648_v47, %v1526_v40 }
 0x13f   : > { %v2066_v41 = vpop.f32.mrf.mxu0 }
 0x140   : > { %v2080_v19 = vadd.f32 %v2066_v41, %v1906_v37  ;;  %v1907_v10 = vadd.f32 %v1894_v16, %v1661_v8  ;;  %v2071_v30 = vpop.f32.mrf.mxu2  ;;  %v1899_v33 = vpop.f32.mrf.mxu3 }
 0x142   : > { %2088 = vst [vmem:[%s3456_s23 + $0x20] sm:$0xff] %v2080_v19  ;;  %v2095_v18 = vadd.f32 %v2094_v50, %v2080_v19  ;;  %v2110_v43 = vmul.f32 %v2080_v19, %v2080_v19 }
 0x143   : > { %v1516_v26 = vpop.f32.mrf.mxu1 }
 0x144   : > { %v2117_v27 = vadd.f32 %v2116_v35, %v2110_v43  ;;  %v1527_v57 = vadd.f32 %v1516_v26, %v1353_v60 }
 0x146   : > { %v1662_v51 = vadd.f32 %v1651_v17, %v1527_v57 }
 0x147   : > { %v2068_v2 = vpop.f32.mrf.mxu0 }
 0x148   : > { %v2081_v56 = vadd.f32 %v2068_v2, %v1907_v10  ;;  %v1908_v62 = vadd.f32 %v1897_v44, %v1662_v51  ;;  %v2073_v47 = vpop.f32.mrf.mxu2 }
 0x14a   : > { %2089 = vst [vmem:[%s3456_s23 + $0x28] sm:$0xff] %v2081_v56  ;;  %v2096_v32 = vadd.f32 %v2095_v18, %v2081_v56  ;;  %v2111_v48 = vmul.f32 %v2081_v56, %v2081_v56  ;;  %v2082_v11 = vadd.f32 %v2071_v30, %v1908_v62 }
 0x14b   : > { %v1518_v52 = vpop.f32.mrf.mxu1 }
 0x14c   : > { %v2118_v49 = vadd.f32 %v2117_v27, %v2111_v48  ;;  %2090 = vst [vmem:[%s3456_s23 + $0x30] sm:$0xff] %v2082_v11  ;;  %v2097_v12 = vadd.f32 %v2096_v32, %v2082_v11  ;;  %v2112_v58 = vmul.f32 %v2082_v11, %v2082_v11  ;;  %v1528_v61 = vadd.f32 %v1518_v52, %v1354_v31 }
 0x14e   : > { %v2119_v36 = vadd.f32 %v2118_v49, %v2112_v58  ;;  %v1663_v21 = vadd.f32 %v1653_v55, %v1528_v61 }
 0x150   : > { %v1909_v9 = vadd.f32 %v1899_v33, %v1663_v21 }
 0x152   : > { %v2083_v63 = vadd.f32 %v2073_v47, %v1909_v9 }
 0x154   : > { %2091 = vst [vmem:[%s3456_s23 + $0x38] sm:$0xff] %v2083_v63  ;;  %v2098_v1 = vadd.f32 %v2097_v12, %v2083_v63  ;;  %v2113_v3 = vmul.f32 %v2083_v63, %v2083_v63 }
 0x156   : > { %v2099_v45 = vrot.slane %v2098_v1, 4  ;;  %v2120_v7 = vadd.f32 %v2119_v36, %v2113_v3 }
 0x158   : > { %v2100_v39 = vadd.f32 %v2099_v45, %v2098_v1  ;;  %v2121_v5 = vrot.slane %v2120_v7, 4 }
 0x15a   : > { %v2101_v13 = vrot.slane %v2100_v39, 2  ;;  %v2122_v4 = vadd.f32 %v2121_v5, %v2120_v7 }
 0x15c   : > { %v2102_v53 = vadd.f32 %v2101_v13, %v2100_v39  ;;  %v2123_v46 = vrot.slane %v2122_v4, 2 }
 0x15e   : > { %v2103_v15 = vrot.slane %v2102_v53, 1  ;;  %v2124_v54 = vadd.f32 %v2123_v46, %v2122_v4 }
 0x160   : > { %v2104_v20 = vadd.f32 %v2103_v15, %v2102_v53  ;;  %v2125_v22 = vrot.slane %v2124_v54, 1 }
 0x162   : > { %2105 = vst [vmem:[%s235_s26] sm:$0x1] %v2104_v20  ;;  %v2126_v23 = vadd.f32 %v2125_v22, %v2124_v54 }
 0x164   : > { %2127 = vst [vmem:[%s235_s26 + $0x1] sm:$0x1] %v2126_v23 }
 0x165 PF: > { %s16_s18 = sadd.s32 1, %s2833_s18  }
 0x166   : > { %p13_p4 = scmp.ge.s32.totalorder %s16_s18, 4  }
 0x168   :  { %15 = sbr.rel (!%p13_p4) target bundleno = 1 (0x1), region = 88 }

</bundles_post_ra>
